<compile_context>
chip_gen: v5e
topology: v5e:2x2
jax: 0.10.0
libtpu: 0.0.40
codegen_flags: <defaults>
</compile_context>

<pallas_src>
import math

import jax
import jax.numpy as jnp
from jax.experimental import pallas as pl
from jax.experimental.pallas import tpu as pltpu

NEG_SLOPE = 0.01


# ----------------------------------------------------------------------------
# Pallas kernel: whole Actor forward fused in one kernel (single grid point;
# ~2.2 MB of bf16 weights + tiny activations fit trivially in VMEM).
# ----------------------------------------------------------------------------
def actor_kernel(s_ref,
                 w0_ref, b0_ref,
                 w1_ref, b1_ref,
                 w2_ref, b2_ref,
                 w3_ref, b3_ref,
                 wh_ref, bh_ref,      # fused head weight/bias over h: (512, AD+PD)
                 wpass_ref,           # zero-padded param_pass weight: (state_dim, AD+PD)
                 out_ref):            # lane-packed output: (B, AD+PD)
    s = s_ref[...]                    # f32 (B, state_dim)

    def linear(x_f32, w_ref, b_ref):
        # bf16 operands on the MXU, f32 accumulation, f32 bias add.
        y = jnp.dot(x_f32.astype(jnp.bfloat16), w_ref[...],
                    preferred_element_type=jnp.float32)
        return y + b_ref[...]

    def leaky_relu(x):
        return jnp.where(x > 0, x, NEG_SLOPE * x)

    # hidden trunk: state_dim -> 1024 -> 512 -> 512 -> 512
    h = leaky_relu(linear(s, w0_ref, b0_ref))
    h = leaky_relu(linear(h, w1_ref, b1_ref))
    h = leaky_relu(linear(h, w2_ref, b2_ref))
    h = leaky_relu(linear(h, w3_ref, b3_ref))

    # fused heads: [action | param] = h @ [wa|wp] + [ba|bp+bpp] + s @ [0|wpp]
    head = linear(h, wh_ref, bh_ref)
    head = head + jnp.dot(s.astype(jnp.bfloat16), wpass_ref[...],
                          preferred_element_type=jnp.float32)
    out_ref[...] = head


def actor_forward(s, params):
    """s: (B, state_dim) float32; params: flat list of f32 (W, b) arrays
    (weights stored (in_features, out_features), i.e. transposed vs PyTorch)."""
    (w0, b0, w1, b1, w2, b2, w3, b3, wa, ba, wp, bp, wpp, bpp) = params
    B, state_dim = s.shape
    action_dim = wa.shape[1]
    param_dim = wp.shape[1]
    out_dim = action_dim + param_dim

    bf16 = jnp.bfloat16
    # Fuse action/param heads into one matmul; fold param_pass bias into head bias.
    w_head = jnp.concatenate([wa, wp], axis=1).astype(bf16)            # (512, AD+PD)
    b_head = jnp.concatenate([ba, bp + bpp], axis=1)                   # (1, AD+PD) f32
    w_pass = jnp.concatenate(
        [jnp.zeros((state_dim, action_dim), jnp.float32), wpp], axis=1
    ).astype(bf16)                                                     # (state_dim, AD+PD)

    inputs = (s.astype(jnp.float32),
              w0.astype(bf16), b0,
              w1.astype(bf16), b1,
              w2.astype(bf16), b2,
              w3.astype(bf16), b3,
              w_head, b_head, w_pass)

    def full_spec(arr):
        # full-array block at the single grid point
        return pl.BlockSpec(arr.shape, lambda: (0,) * arr.ndim)

    in_specs = [full_spec(a) for a in inputs]
    out_specs = pl.BlockSpec((B, out_dim), lambda: (0, 0))
    out_shape = jax.ShapeDtypeStruct((B, out_dim), jnp.float32)

    # This kernel is HBM-bound on weight streaming; give XLA the real numbers.
    weight_mats = (w0, w1, w2, w3, w_head, w_pass)
    flops = 2 * B * sum(int(w.shape[0]) * int(w.shape[1]) for w in weight_mats)
    bytes_accessed = (sum(int(a.size) * a.dtype.itemsize for a in inputs)
                      + B * out_dim * 4)
    cost = pl.CostEstimate(flops=flops, transcendentals=0,
                           bytes_accessed=bytes_accessed)

    out = pl.pallas_call(
        actor_kernel,
        out_shape=out_shape,
        in_specs=in_specs,
        out_specs=out_specs,
        compiler_params=pltpu.CompilerParams(vmem_limit_bytes=24 << 20),
        cost_estimate=cost,
    )(*inputs)

    return out[:, :action_dim], out[:, action_dim:]


# ----------------------------------------------------------------------------
# Deterministic parameter init (mirrors Actor.__init__)
# ----------------------------------------------------------------------------
def init_actor_params(key, state_dim, action_dim, param_dim):
    hidden = (1024, 512, 512, 512)
    init_std = 0.001
    params = []
    last_dim = state_dim
    keys = jax.random.split(key, len(hidden) + 2)

    # hidden layers: kaiming_normal_(nonlinearity='leaky_relu', a=0) -> gain=sqrt(2),
    # fan_in mode, std = sqrt(2)/sqrt(fan_in); bias zeros.
    for i, h in enumerate(hidden):
        std = math.sqrt(2.0) / math.sqrt(last_dim)
        w = std * jax.random.normal(keys[i], (last_dim, h), dtype=jnp.float32)
        b = jnp.zeros((1, h), dtype=jnp.float32)
        params += [w, b]
        last_dim = h

    # action_layer: normal(std=0.001), zero bias
    wa = init_std * jax.random.normal(keys[-2], (last_dim, action_dim), dtype=jnp.float32)
    ba = jnp.zeros((1, action_dim), dtype=jnp.float32)
    # param_layer: normal(std=0.001), zero bias (frozen in torch; grads irrelevant here)
    wp = init_std * jax.random.normal(keys[-1], (last_dim, param_dim), dtype=jnp.float32)
    bp = jnp.zeros((1, param_dim), dtype=jnp.float32)
    # param_pass_layer: zeros weight and bias
    wpp = jnp.zeros((state_dim, param_dim), dtype=jnp.float32)
    bpp = jnp.zeros((1, param_dim), dtype=jnp.float32)

    params += [wa, ba, wp, bp, wpp, bpp]
    return params


# ----------------------------------------------------------------------------
# References for correctness checks.
# ----------------------------------------------------------------------------
def actor_ref_f32(s, params):
    (w0, b0, w1, b1, w2, b2, w3, b3, wa, ba, wp, bp, wpp, bpp) = params
    h = s
    for w, b in ((w0, b0), (w1, b1), (w2, b2), (w3, b3)):
        h = h @ w + b
        h = jnp.where(h > 0, h, NEG_SLOPE * h)
    action = h @ wa + ba
    param = h @ wp + bp + (s @ wpp + bpp)
    return action, param


def actor_ref_bf16(s, params):
    # mirrors the kernel's numerics: bf16 operands, f32 accumulation, f32 elementwise
    (w0, b0, w1, b1, w2, b2, w3, b3, wa, ba, wp, bp, wpp, bpp) = params

    def lin(x, w, b):
        return jnp.dot(x.astype(jnp.bfloat16), w.astype(jnp.bfloat16),
                       preferred_element_type=jnp.float32) + b

    h = s
    for w, b in ((w0, b0), (w1, b1), (w2, b2), (w3, b3)):
        h = lin(h, w, b)
        h = jnp.where(h > 0, h, NEG_SLOPE * h)
    action = lin(h, wa, ba)
    param = lin(h, wp, bp) + lin(s, wpp, bpp)
    return action, param


if __name__ == "__main__":
    key = jax.random.PRNGKey(0)
    k_param, k_in = jax.random.split(key)

    batch = 8
    state_dim = 32
    action_dim = 8
    param_dim = 8

    params = init_actor_params(k_param, state_dim, action_dim, param_dim)
    s = jax.random.normal(k_in, (batch, state_dim), dtype=jnp.float32)

    action, param = actor_forward(s, params)
    jax.block_until_ready((action, param))

    assert action.shape == (batch, action_dim) and param.shape == (batch, param_dim)

    # tight check against a bf16-matched reference
    a_bf, p_bf = actor_ref_bf16(s, params)
    assert jnp.allclose(action, a_bf, atol=1e-3, rtol=1e-3)
    assert jnp.allclose(param, p_bf, atol=1e-3, rtol=1e-3)

    # loose sanity check against the full-f32 reference (bf16 weight cast ~1% diff)
    a_f32, p_f32 = actor_ref_f32(s, params)
    assert jnp.allclose(action, a_f32, atol=5e-3, rtol=5e-2)
    assert jnp.allclose(param, p_f32, atol=5e-3, rtol=5e-2)

    print("KERNEL_OK")
</pallas_src>

<mosaic_0001>
module attributes {stable_mosaic.version = 11 : i64} {
  func.func @actor_kernel(%arg0: memref<8x32xf32, #tpu.memory_space<vmem>>, %arg1: memref<32x1024xbf16, #tpu.memory_space<vmem>>, %arg2: memref<1x1024xf32, #tpu.memory_space<vmem>>, %arg3: memref<1024x512xbf16, #tpu.memory_space<vmem>>, %arg4: memref<1x512xf32, #tpu.memory_space<vmem>>, %arg5: memref<512x512xbf16, #tpu.memory_space<vmem>>, %arg6: memref<1x512xf32, #tpu.memory_space<vmem>>, %arg7: memref<512x512xbf16, #tpu.memory_space<vmem>>, %arg8: memref<1x512xf32, #tpu.memory_space<vmem>>, %arg9: memref<512x16xbf16, #tpu.memory_space<vmem>>, %arg10: memref<1x16xf32, #tpu.memory_space<vmem>>, %arg11: memref<32x16xbf16, #tpu.memory_space<vmem>>, %arg12: memref<8x16xf32, #tpu.memory_space<vmem>>) attributes {dimension_semantics = [], scalar_prefetch = 0 : i64, scratch_operands = 0 : i64, tpu.core_type = #tpu.core_type<tc>} {
    %c0 = arith.constant 0 : index
    %c0_0 = arith.constant 0 : index
    %0 = vector.load %arg0[%c0, %c0_0] : memref<8x32xf32, #tpu.memory_space<vmem>>, vector<8x32xf32>
    %1 = arith.truncf %0 : vector<8x32xf32> to vector<8x32xbf16>
    %c0_1 = arith.constant 0 : index
    %c0_2 = arith.constant 0 : index
    %2 = vector.load %arg1[%c0_1, %c0_2] : memref<32x1024xbf16, #tpu.memory_space<vmem>>, vector<32x1024xbf16>
    %cst = arith.constant dense<0.000000e+00> : vector<8x1024xf32>
    %3 = tpu.matmul %1, %2, %cst {dimension_numbers = #tpu.dot_dimension_numbers<[1], [0], [0], [1], [0, 0, 1, 1], [], []>} : vector<8x32xbf16>, vector<32x1024xbf16>, vector<8x1024xf32> -> vector<8x1024xf32>
    %c0_3 = arith.constant 0 : index
    %c0_4 = arith.constant 0 : index
    %4 = vector.load %arg2[%c0_3, %c0_4] : memref<1x1024xf32, #tpu.memory_space<vmem>>, vector<1x1024xf32>
    %5 = vector.broadcast %4 : vector<1x1024xf32> to vector<8x1024xf32>
    %6 = arith.addf %3, %5 : vector<8x1024xf32>
    %cst_5 = arith.constant 0.000000e+00 : f32
    %7 = vector.broadcast %cst_5 : f32 to vector<8x1024xf32>
    %8 = arith.cmpf ogt, %6, %7 : vector<8x1024xf32>
    %cst_6 = arith.constant 0.00999999977 : f32
    %9 = vector.broadcast %cst_6 : f32 to vector<8x1024xf32>
    %10 = arith.mulf %9, %6 : vector<8x1024xf32>
    %11 = arith.select %8, %6, %10 : vector<8x1024xi1>, vector<8x1024xf32>
    %12 = arith.truncf %11 : vector<8x1024xf32> to vector<8x1024xbf16>
    %c0_7 = arith.constant 0 : index
    %c0_8 = arith.constant 0 : index
    %13 = vector.load %arg3[%c0_7, %c0_8] : memref<1024x512xbf16, #tpu.memory_space<vmem>>, vector<1024x512xbf16>
    %cst_9 = arith.constant dense<0.000000e+00> : vector<8x512xf32>
    %14 = tpu.matmul %12, %13, %cst_9 {dimension_numbers = #tpu.dot_dimension_numbers<[1], [0], [0], [1], [0, 0, 1, 1], [], []>} : vector<8x1024xbf16>, vector<1024x512xbf16>, vector<8x512xf32> -> vector<8x512xf32>
    %c0_10 = arith.constant 0 : index
    %c0_11 = arith.constant 0 : index
    %15 = vector.load %arg4[%c0_10, %c0_11] : memref<1x512xf32, #tpu.memory_space<vmem>>, vector<1x512xf32>
    %16 = vector.broadcast %15 : vector<1x512xf32> to vector<8x512xf32>
    %17 = arith.addf %14, %16 : vector<8x512xf32>
    %cst_12 = arith.constant 0.000000e+00 : f32
    %18 = vector.broadcast %cst_12 : f32 to vector<8x512xf32>
    %19 = arith.cmpf ogt, %17, %18 : vector<8x512xf32>
    %cst_13 = arith.constant 0.00999999977 : f32
    %20 = vector.broadcast %cst_13 : f32 to vector<8x512xf32>
    %21 = arith.mulf %20, %17 : vector<8x512xf32>
    %22 = arith.select %19, %17, %21 : vector<8x512xi1>, vector<8x512xf32>
    %23 = arith.truncf %22 : vector<8x512xf32> to vector<8x512xbf16>
    %c0_14 = arith.constant 0 : index
    %c0_15 = arith.constant 0 : index
    %24 = vector.load %arg5[%c0_14, %c0_15] : memref<512x512xbf16, #tpu.memory_space<vmem>>, vector<512x512xbf16>
    %cst_16 = arith.constant dense<0.000000e+00> : vector<8x512xf32>
    %25 = tpu.matmul %23, %24, %cst_16 {dimension_numbers = #tpu.dot_dimension_numbers<[1], [0], [0], [1], [0, 0, 1, 1], [], []>} : vector<8x512xbf16>, vector<512x512xbf16>, vector<8x512xf32> -> vector<8x512xf32>
    %c0_17 = arith.constant 0 : index
    %c0_18 = arith.constant 0 : index
    %26 = vector.load %arg6[%c0_17, %c0_18] : memref<1x512xf32, #tpu.memory_space<vmem>>, vector<1x512xf32>
    %27 = vector.broadcast %26 : vector<1x512xf32> to vector<8x512xf32>
    %28 = arith.addf %25, %27 : vector<8x512xf32>
    %cst_19 = arith.constant 0.000000e+00 : f32
    %29 = vector.broadcast %cst_19 : f32 to vector<8x512xf32>
    %30 = arith.cmpf ogt, %28, %29 : vector<8x512xf32>
    %cst_20 = arith.constant 0.00999999977 : f32
    %31 = vector.broadcast %cst_20 : f32 to vector<8x512xf32>
    %32 = arith.mulf %31, %28 : vector<8x512xf32>
    %33 = arith.select %30, %28, %32 : vector<8x512xi1>, vector<8x512xf32>
    %34 = arith.truncf %33 : vector<8x512xf32> to vector<8x512xbf16>
    %c0_21 = arith.constant 0 : index
    %c0_22 = arith.constant 0 : index
    %35 = vector.load %arg7[%c0_21, %c0_22] : memref<512x512xbf16, #tpu.memory_space<vmem>>, vector<512x512xbf16>
    %cst_23 = arith.constant dense<0.000000e+00> : vector<8x512xf32>
    %36 = tpu.matmul %34, %35, %cst_23 {dimension_numbers = #tpu.dot_dimension_numbers<[1], [0], [0], [1], [0, 0, 1, 1], [], []>} : vector<8x512xbf16>, vector<512x512xbf16>, vector<8x512xf32> -> vector<8x512xf32>
    %c0_24 = arith.constant 0 : index
    %c0_25 = arith.constant 0 : index
    %37 = vector.load %arg8[%c0_24, %c0_25] : memref<1x512xf32, #tpu.memory_space<vmem>>, vector<1x512xf32>
    %38 = vector.broadcast %37 : vector<1x512xf32> to vector<8x512xf32>
    %39 = arith.addf %36, %38 : vector<8x512xf32>
    %cst_26 = arith.constant 0.000000e+00 : f32
    %40 = vector.broadcast %cst_26 : f32 to vector<8x512xf32>
    %41 = arith.cmpf ogt, %39, %40 : vector<8x512xf32>
    %cst_27 = arith.constant 0.00999999977 : f32
    %42 = vector.broadcast %cst_27 : f32 to vector<8x512xf32>
    %43 = arith.mulf %42, %39 : vector<8x512xf32>
    %44 = arith.select %41, %39, %43 : vector<8x512xi1>, vector<8x512xf32>
    %45 = arith.truncf %44 : vector<8x512xf32> to vector<8x512xbf16>
    %c0_28 = arith.constant 0 : index
    %c0_29 = arith.constant 0 : index
    %46 = vector.load %arg9[%c0_28, %c0_29] : memref<512x16xbf16, #tpu.memory_space<vmem>>, vector<512x16xbf16>
    %cst_30 = arith.constant dense<0.000000e+00> : vector<8x16xf32>
    %47 = tpu.matmul %45, %46, %cst_30 {dimension_numbers = #tpu.dot_dimension_numbers<[1], [0], [0], [1], [0, 0, 1, 1], [], []>} : vector<8x512xbf16>, vector<512x16xbf16>, vector<8x16xf32> -> vector<8x16xf32>
    %c0_31 = arith.constant 0 : index
    %c0_32 = arith.constant 0 : index
    %48 = vector.load %arg10[%c0_31, %c0_32] : memref<1x16xf32, #tpu.memory_space<vmem>>, vector<1x16xf32>
    %49 = vector.broadcast %48 : vector<1x16xf32> to vector<8x16xf32>
    %50 = arith.addf %47, %49 : vector<8x16xf32>
    %51 = arith.truncf %0 : vector<8x32xf32> to vector<8x32xbf16>
    %c0_33 = arith.constant 0 : index
    %c0_34 = arith.constant 0 : index
    %52 = vector.load %arg11[%c0_33, %c0_34] : memref<32x16xbf16, #tpu.memory_space<vmem>>, vector<32x16xbf16>
    %cst_35 = arith.constant dense<0.000000e+00> : vector<8x16xf32>
    %53 = tpu.matmul %51, %52, %cst_35 {dimension_numbers = #tpu.dot_dimension_numbers<[1], [0], [0], [1], [0, 0, 1, 1], [], []>} : vector<8x32xbf16>, vector<32x16xbf16>, vector<8x16xf32> -> vector<8x16xf32>
    %54 = arith.addf %50, %53 : vector<8x16xf32>
    %c0_36 = arith.constant 0 : index
    %c0_37 = arith.constant 0 : index
    %55 = vector.load %arg12[%c0_36, %c0_37] : memref<8x16xf32, #tpu.memory_space<vmem>>, vector<8x16xf32>
    tpu.vector_store %arg12[%c0_36, %c0_37], %54 {strides = array<i32>} : memref<8x16xf32, #tpu.memory_space<vmem>>, vector<8x16xf32>,
    return
  }
}

</mosaic_0001>

<bundles_post_ra>
// kernel: tpu_custom_call.1
= control target key start
LH: loop header
LB: loop body
LE: loop exit
PB: predicated region body
PF: predicated region fallthrough
CT: control target
= control target key end

     0   :  { %17 = vsyncpa [#allocation3], 0  ;;  %s8158_s0 = inlined_call_operand.vmem [shape: f32[8,32], index: 0, kind: input, shape index: {}]   ;;  %s8159_s1 = inlined_call_operand.vmem [shape: bf16[32,1024], index: 1, kind: input, shape index: {}]   ;;  %s8160_s2 = inlined_call_operand.vmem [shape: f32[1,1024], index: 2, kind: input, shape index: {}]   ;;  %s8161_s3 = inlined_call_operand.hbm [shape: bf16[1024,512], index: 3, kind: input, shape index: {}]   ;;  %s8162_s4 = inlined_call_operand.vmem [shape: f32[1,512], index: 4, kind: input, shape index: {}]   ;;  %s8163_s5 = inlined_call_operand.hbm [shape: bf16[512,512], index: 5, kind: input, shape index: {}]   ;;  %s8164_s6 = inlined_call_operand.vmem [shape: f32[1,512], index: 6, kind: input, shape index: {}]   ;;  %s8165_s7 = inlined_call_operand.hbm [shape: bf16[512,512], index: 7, kind: input, shape index: {}]   ;;  %s8166_s8 = inlined_call_operand.vmem [shape: f32[1,512], index: 8, kind: input, shape index: {}]   ;;  %s8167_s9 = inlined_call_operand.vmem [shape: bf16[512,16], index: 9, kind: input, shape index: {}]   ;;  %s8168_s10 = inlined_call_operand.vmem [shape: f32[1,16], index: 10, kind: input, shape index: {}]   ;;  %s8169_s11 = inlined_call_operand.vmem [shape: bf16[32,16], index: 11, kind: input, shape index: {}]   ;;  %s8170_s12 = inlined_call_operand.hbm [shape: f32[8,16], index: 12, kind: output, shape index: {}]  }
   0x1   :  { %18 = vsyncpa [#allocation6], 0 }
   0x2   :  { %19 = vsyncpa [#allocation4], 0  ;;  %s45_s23 = sshll.u32 %s8163_s5, 4  ;;  %s7619_s24 = smov [#allocation5]   ;;  %s46_s23 = int_to_ptr.hbm [resolvable:$true] %s45_s23 }
   0x3   :  { %s47_s25 = sshll.u32 %s7619_s24, 4  ;;  %s30_s28 = sshll.u32 %s8161_s3, 4  ;;  %s48_s25 = int_to_ptr.vmem [resolvable:$true] %s47_s25  ;;  %s31_s28 = int_to_ptr.hbm [resolvable:$true] %s30_s28 }
   0x4   :  { %s7620_s29 = smov 256   ;;  %s7621_s30 = smov 16  }
   0x5   :  { %53 = dma.hbm_to_vmem [thread:$0]  %s46_s23, 16384, %s48_s25, [#allocation6], %s7620_s29, %s7620_s29, %s7621_s30  }
   0x6   :  { %s7622_s13 = smov [#allocation2]   ;;  %s60_s17 = sshll.u32 %s8165_s7, 4  ;;  %s61_s17 = int_to_ptr.hbm [resolvable:$true] %s60_s17 }
   0x7   :  { %s32_s14 = sshll.u32 %s7622_s13, 4  ;;  %s7623_s5 = smov [#allocation7]   ;;  %s33_s14 = int_to_ptr.vmem [resolvable:$true] %s32_s14 }
   0x8   :  { %38 = dma.hbm_to_vmem [thread:$0]  %s31_s28, 32768, %s33_s14, [#allocation3], %s7620_s29, %s7620_s29, %s7621_s30  }
   0x9   :  { %s62_s18 = sshll.u32 %s7623_s5, 4  ;;  %s63_s18 = int_to_ptr.vmem [resolvable:$true] %s62_s18 }
   0xa   :  { %68 = dma.hbm_to_vmem [thread:$0]  %s61_s17, 16384, %s63_s18, [#allocation6], %s7620_s29, %s7620_s29, %s7621_s30  }
   0xb   :  { %7613 = dma.done.wait [#allocation3], 32768  }
   0xc   :  { %7614 = vsyncadd [#allocation3], 4294934528 }
   0xd   :  { %7615 = dma.done.wait [#allocation6], 32768  }
   0xe   :  { %7616 = vsyncadd [#allocation6], 4294934528  ;;  %v4724_v0 = vld [vmem:[%s8159_s1 + $0x40] sm:$0xf]  ;;  %v6955_v2 = vld [vmem:[%s8159_s1 + $0x44] sm:$0xf] }
   0xf   :  { %v6959_v1 = vld [vmem:[%s8159_s1 + $0x5c] sm:$0xf0]  ;;  %v4726_v4 = vld [vmem:[%s8159_s1 + $0x60] sm:$0xf0]  ;;  %v4732_v5 = vld [vmem:[%s8159_s1 + $0x48] sm:$0xf] }
  0x10   :  { %v4725_v3 = vor.u32 %v6959_v1, %v4724_v0  ;;  %v6960_v6 = vld [vmem:[%s8159_s1 + $0x64] sm:$0xf0]  ;;  %v4729_v7 = vor.u32 %v6955_v2, %v4726_v4  ;;  %v6956_v9 = vld [vmem:[%s8159_s1 + $0x4c] sm:$0xf]  ;;  %v4692_v11 = vld [vmem:[%s8159_s1] sm:$0xf] }
  0x11   :  { %v4733_v8 = vor.u32 %v6960_v6, %v4732_v5  ;;  %v4734_v10 = vld [vmem:[%s8159_s1 + $0x68] sm:$0xf0]  ;;  %v6951_v13 = vld [vmem:[%s8159_s1 + $0x1c] sm:$0xf0]  ;;  %v6947_v14 = vld [vmem:[%s8159_s1 + $0x4] sm:$0xf] }
  0x12   :  { %216 = vmatpush.bf16.msra.mxu0 %v4725_v3  ;;  %v4737_v12 = vor.u32 %v6956_v9, %v4734_v10  ;;  %v4694_v15 = vld [vmem:[%s8159_s1 + $0x20] sm:$0xf0]  ;;  %229 = vmatpush.bf16.msra.mxu1 %v4729_v7  ;;  %v4693_v16 = vor.u32 %v6951_v13, %v4692_v11  ;;  %v4700_v18 = vld [vmem:[%s8159_s1 + $0x8] sm:$0xf]  ;;  %v6948_v20 = vld [vmem:[%s8159_s1 + $0xc] sm:$0xf] }
  0x13   :  { %242 = vmatpush.bf16.msra.mxu2 %v4733_v8  ;;  %v4697_v17 = vor.u32 %v6947_v14, %v4694_v15  ;;  %v6952_v19 = vld [vmem:[%s8159_s1 + $0x24] sm:$0xf0]  ;;  %v4702_v22 = vld [vmem:[%s8159_s1 + $0x28] sm:$0xf0]  ;;  %v90_v23 = vld [vmem:[%s8158_s0] sm:$0xff]  ;;  %vm206_vm0 = vcmask 261120  }
  0x14   :  { %255 = vmatpush.bf16.msra.mxu3 %v4737_v12  ;;  %v4701_v21 = vor.u32 %v6952_v19, %v4700_v18  ;;  %v4740_v24 = vld [vmem:[%s8159_s1 + $0x50] sm:$0xf]  ;;  %v4705_v25 = vor.u32 %v6948_v20, %v4702_v22  ;;  %v7753_v26 = vpack.c.bf16 %v90_v23, %v90_v23  ;;  %v6957_v28 = vld [vmem:[%s8159_s1 + $0x54] sm:$0xf]  ;;  %v4748_v32 = vld [vmem:[%s8159_s1 + $0x58] sm:$0xf] }
  0x15   :  { %v6961_v27 = vld [vmem:[%s8159_s1 + $0x6c] sm:$0xf0]  ;;  %v4742_v29 = vld [vmem:[%s8159_s1 + $0x70] sm:$0xf0]  ;;  %v6962_v33 = vld [vmem:[%s8159_s1 + $0x74] sm:$0xf0] }
  0x16   :  { %217 = vmatpush.bf16.msra.mxu0 %v4693_v16  ;;  %v4741_v30 = vor.u32 %v6961_v27, %v4740_v24  ;;  %v4745_v31 = vor.u32 %v6957_v28, %v4742_v29  ;;  %v6958_v34 = vld [vmem:[%s8159_s1 + $0x5c] sm:$0xf]  ;;  %230 = vmatpush.bf16.msra.mxu1 %v4697_v17  ;;  %v4749_v35 = vor.u32 %v6962_v33, %v4748_v32  ;;  %v4708_v37 = vld [vmem:[%s8159_s1 + $0x10] sm:$0xf]  ;;  %v6949_v41 = vld [vmem:[%s8159_s1 + $0x14] sm:$0xf] }
  0x17   :  { %243 = vmatpush.bf16.msra.mxu2 %v4701_v21  ;;  %v4750_v36 = vld [vmem:[%s8159_s1 + $0x78] sm:$0xf0]  ;;  %v6953_v38 = vld [vmem:[%s8159_s1 + $0x2c] sm:$0xf0]  ;;  %v4710_v42 = vld [vmem:[%s8159_s1 + $0x30] sm:$0xf0] }
  0x18   :  { %256 = vmatpush.bf16.msra.mxu3 %v4705_v25  ;;  %v4753_v39 = vor.u32 %v6958_v34, %v4750_v36  ;;  %v4709_v40 = vor.u32 %v6953_v38, %v4708_v37  ;;  %v4716_v43 = vld [vmem:[%s8159_s1 + $0x18] sm:$0xf]  ;;  %v4713_v44 = vor.u32 %v6949_v41, %v4710_v42  ;;  %v6950_v46 = vld [vmem:[%s8159_s1 + $0x1c] sm:$0xf]  ;;  %v4876_v48 = vld [vmem:[#allocation2 + $0xe0] sm:$0xf] }
  0x19   :  { %4754 = vmatmul.msk.bf16.vlgmr.msra.gmra.mxu0 %vm206_vm0, %v7753_v26  ;;  %v6954_v45 = vld [vmem:[%s8159_s1 + $0x34] sm:$0xf0]  ;;  %v4718_v47 = vld [vmem:[%s8159_s1 + $0x38] sm:$0xf0]  ;;  %4755 = vmatmul.msk.bf16.vlgmr.msra.gmra.mxu1 %vm206_vm0, %v7753_v26  ;;  %v6993_v49 = vld [vmem:[#allocation2 + $0xec] sm:$0xf0] }
  0x1a   :  { %268 = vmatpush.bf16.msrb.mxu0 %v4741_v30  ;;  %281 = vmatpush.bf16.msrb.mxu1 %v4745_v31  ;;  %v5004_v50 = vld [vmem:[#allocation2 + $0x1e0] sm:$0xf]  ;;  %v4717_v51 = vor.u32 %v6954_v45, %v4716_v43  ;;  %v4877_v52 = vor.u32 %v6993_v49, %v4876_v48  ;;  %v7025_v53 = vld [vmem:[#allocation2 + $0x1ec] sm:$0xf0]  ;;  %v4721_v56 = vor.u32 %v6950_v46, %v4718_v47  ;;  %s7624_s3 = smov [#allocation8]  }
  0x1b   :  { %4756 = vmatmul.msk.bf16.vlgmr.msra.gmra.mxu2 %vm206_vm0, %v7753_v26  ;;  %4757 = vmatmul.msk.bf16.vlgmr.msra.gmra.mxu3 %vm206_vm0, %v7753_v26  ;;  %v4860_v54 = vld [vmem:[#allocation2 + $0xc0] sm:$0xf]  ;;  %v6989_v55 = vld [vmem:[#allocation2 + $0xcc] sm:$0xf0]  ;;  %v5005_v57 = vor.u32 %v7025_v53, %v5004_v50 }
  0x1c   :  { %294 = vmatpush.bf16.msrb.mxu2 %v4749_v35  ;;  %307 = vmatpush.bf16.msrb.mxu3 %v4753_v39  ;;  %v4988_v58 = vld [vmem:[#allocation2 + $0x1c0] sm:$0xf]  ;;  %v7021_v59 = vld [vmem:[#allocation2 + $0x1cc] sm:$0xf0]  ;;  %v4861_v61 = vor.u32 %v6989_v55, %v4860_v54 }
  0x1d   :  { %v5132_v60 = vld [vmem:[#allocation2 + $0x2e0] sm:$0xf]  ;;  %v7057_v62 = vld [vmem:[#allocation2 + $0x2ec] sm:$0xf0]  ;;  %v4989_v1 = vor.u32 %v7021_v59, %v4988_v58 }
  0x1e   :  { %269 = vmatpush.bf16.msrb.mxu0 %v4709_v40  ;;  %282 = vmatpush.bf16.msrb.mxu1 %v4713_v44  ;;  %v5260_v63 = vld [vmem:[#allocation2 + $0x3e0] sm:$0xf]  ;;  %v7089_v0 = vld [vmem:[#allocation2 + $0x3ec] sm:$0xf0]  ;;  %v5133_v2 = vor.u32 %v7057_v62, %v5132_v60 }
  0x1f   :  { %v5261_v3 = vor.u32 %v7089_v0, %v5260_v63  ;;  %v4844_v4 = vld [vmem:[#allocation2 + $0xa0] sm:$0xf]  ;;  %v6985_v5 = vld [vmem:[#allocation2 + $0xac] sm:$0xf0] }
  0x20   :  { %v4972_v6 = vld [vmem:[#allocation2 + $0x1a0] sm:$0xf]  ;;  %295 = vmatpush.bf16.msrb.mxu2 %v4717_v51  ;;  %v7017_v7 = vld [vmem:[#allocation2 + $0x1ac] sm:$0xf0]  ;;  %308 = vmatpush.bf16.msrb.mxu3 %v4721_v56  ;;  %v4845_v13 = vor.u32 %v6985_v5, %v4844_v4 }
  0x21   :  { %v5116_v8 = vld [vmem:[#allocation2 + $0x2c0] sm:$0xf]  ;;  %v7053_v9 = vld [vmem:[#allocation2 + $0x2cc] sm:$0xf0]  ;;  %v4973_v15 = vor.u32 %v7017_v7, %v4972_v6 }
  0x22   :  { %1892 = vmatpush.bf16.msra.mxu0 %v4877_v52  ;;  %1905 = vmatpush.bf16.msra.mxu1 %v5005_v57  ;;  %v5117_v10 = vor.u32 %v7053_v9, %v5116_v8  ;;  %v5244_v11 = vld [vmem:[#allocation2 + $0x3c0] sm:$0xf]  ;;  %v7085_v12 = vld [vmem:[#allocation2 + $0x3cc] sm:$0xf0] }
  0x23   :  { %v5245_v14 = vor.u32 %v7085_v12, %v5244_v11  ;;  %v5100_v16 = vld [vmem:[#allocation2 + $0x2a0] sm:$0xf]  ;;  %v7049_v17 = vld [vmem:[#allocation2 + $0x2ac] sm:$0xf0] }
  0x24   :  { %1918 = vmatpush.bf16.msra.mxu2 %v5133_v2  ;;  %1931 = vmatpush.bf16.msra.mxu3 %v5261_v3  ;;  %v5228_v18 = vld [vmem:[#allocation2 + $0x3a0] sm:$0xf]  ;;  %v7081_v19 = vld [vmem:[#allocation2 + $0x3ac] sm:$0xf0]  ;;  %v5101_v23 = vor.u32 %v7049_v17, %v5100_v16 }
  0x25   :  { %v4828_v20 = vld [vmem:[#allocation2 + $0x80] sm:$0xf]  ;;  %v6981_v21 = vld [vmem:[#allocation2 + $0x8c] sm:$0xf0]  ;;  %v5229_v25 = vor.u32 %v7081_v19, %v5228_v18 }
  0x26   :  { %1893 = vmatpush.bf16.msra.mxu0 %v4861_v61  ;;  %1906 = vmatpush.bf16.msra.mxu1 %v4989_v1  ;;  %v4956_v22 = vld [vmem:[#allocation2 + $0x180] sm:$0xf]  ;;  %v7013_v24 = vld [vmem:[#allocation2 + $0x18c] sm:$0xf0]  ;;  %v4829_v31 = vor.u32 %v6981_v21, %v4828_v20 }
  0x27   :  { %v5084_v27 = vld [vmem:[#allocation2 + $0x280] sm:$0xf]  ;;  %v7045_v28 = vld [vmem:[#allocation2 + $0x28c] sm:$0xf0]  ;;  %v4957_v32 = vor.u32 %v7013_v24, %v4956_v22 }
  0x28   :  { %1919 = vmatpush.bf16.msra.mxu2 %v5117_v10  ;;  %1932 = vmatpush.bf16.msra.mxu3 %v5245_v14  ;;  %v5212_v29 = vld [vmem:[#allocation2 + $0x380] sm:$0xf]  ;;  %v7077_v30 = vld [vmem:[#allocation2 + $0x38c] sm:$0xf0]  ;;  %v5085_v36 = vor.u32 %v7045_v28, %v5084_v27 }
  0x29   :  { %v4812_v33 = vld [vmem:[#allocation2 + $0x60] sm:$0xf]  ;;  %v6977_v34 = vld [vmem:[#allocation2 + $0x6c] sm:$0xf0]  ;;  %4758 = vmatmul.msk.bf16.vlgmr.msrb.gmra.mxu0 %vm206_vm0, %v7753_v26  ;;  %v5213_v38 = vor.u32 %v7077_v30, %v5212_v29  ;;  %4759 = vmatmul.msk.bf16.vlgmr.msrb.gmra.mxu1 %vm206_vm0, %v7753_v26 }
  0x2a   :  { %1894 = vmatpush.bf16.msra.mxu0 %v4845_v13  ;;  %1907 = vmatpush.bf16.msra.mxu1 %v4973_v15  ;;  %v4940_v35 = vld [vmem:[#allocation2 + $0x160] sm:$0xf]  ;;  %v7009_v37 = vld [vmem:[#allocation2 + $0x16c] sm:$0xf0]  ;;  %v4813_v43 = vor.u32 %v6977_v34, %v4812_v33 }
  0x2b   :  { %v5068_v39 = vld [vmem:[#allocation2 + $0x260] sm:$0xf]  ;;  %v7041_v40 = vld [vmem:[#allocation2 + $0x26c] sm:$0xf0]  ;;  %4760 = vmatmul.msk.bf16.vlgmr.msrb.gmra.mxu2 %vm206_vm0, %v7753_v26  ;;  %4761 = vmatmul.msk.bf16.vlgmr.msrb.gmra.mxu3 %vm206_vm0, %v7753_v26  ;;  %v4941_v44 = vor.u32 %v7009_v37, %v4940_v35 }
  0x2c   :  { %1920 = vmatpush.bf16.msra.mxu2 %v5101_v23  ;;  %1933 = vmatpush.bf16.msra.mxu3 %v5229_v25  ;;  %v5196_v41 = vld [vmem:[#allocation2 + $0x360] sm:$0xf]  ;;  %v7073_v42 = vld [vmem:[#allocation2 + $0x36c] sm:$0xf0]  ;;  %v5069_v48 = vor.u32 %v7041_v40, %v5068_v39 }
  0x2d   :  { %v4796_v45 = vld [vmem:[#allocation2 + $0x40] sm:$0xf]  ;;  %v6973_v46 = vld [vmem:[#allocation2 + $0x4c] sm:$0xf0]  ;;  %v5197_v50 = vor.u32 %v7073_v42, %v5196_v41 }
  0x2e   :  { %1895 = vmatpush.bf16.msra.mxu0 %v4829_v31  ;;  %1908 = vmatpush.bf16.msra.mxu1 %v4957_v32  ;;  %v4924_v47 = vld [vmem:[#allocation2 + $0x140] sm:$0xf]  ;;  %v7005_v49 = vld [vmem:[#allocation2 + $0x14c] sm:$0xf0]  ;;  %v4797_v55 = vor.u32 %v6973_v46, %v4796_v45 }
  0x2f   :  { %v5052_v51 = vld [vmem:[#allocation2 + $0x240] sm:$0xf]  ;;  %v7037_v52 = vld [vmem:[#allocation2 + $0x24c] sm:$0xf0]  ;;  %v4925_v56 = vor.u32 %v7005_v49, %v4924_v47 }
  0x30   :  { %1921 = vmatpush.bf16.msra.mxu2 %v5085_v36  ;;  %1934 = vmatpush.bf16.msra.mxu3 %v5213_v38  ;;  %v5180_v53 = vld [vmem:[#allocation2 + $0x340] sm:$0xf]  ;;  %v7069_v54 = vld [vmem:[#allocation2 + $0x34c] sm:$0xf0]  ;;  %v5053_v60 = vor.u32 %v7037_v52, %v5052_v51 }
  0x31   :  { %v4780_v57 = vld [vmem:[#allocation2 + $0x20] sm:$0xf]  ;;  %v6969_v58 = vld [vmem:[#allocation2 + $0x2c] sm:$0xf0]  ;;  %v5181_v62 = vor.u32 %v7069_v54, %v5180_v53 }
  0x32   :  { %1896 = vmatpush.bf16.msra.mxu0 %v4813_v43  ;;  %1909 = vmatpush.bf16.msra.mxu1 %v4941_v44  ;;  %v4908_v59 = vld [vmem:[#allocation2 + $0x120] sm:$0xf]  ;;  %v7001_v61 = vld [vmem:[#allocation2 + $0x12c] sm:$0xf0]  ;;  %v4781_v3 = vor.u32 %v6969_v58, %v4780_v57 }
  0x33   :  { %v5036_v63 = vld [vmem:[#allocation2 + $0x220] sm:$0xf]  ;;  %v7033_v0 = vld [vmem:[#allocation2 + $0x22c] sm:$0xf0]  ;;  %v4909_v6 = vor.u32 %v7001_v61, %v4908_v59 }
  0x34   :  { %1922 = vmatpush.bf16.msra.mxu2 %v5069_v48  ;;  %1935 = vmatpush.bf16.msra.mxu3 %v5197_v50  ;;  %v5164_v1 = vld [vmem:[#allocation2 + $0x320] sm:$0xf]  ;;  %v7065_v2 = vld [vmem:[#allocation2 + $0x32c] sm:$0xf0]  ;;  %v5037_v10 = vor.u32 %v7033_v0, %v5036_v63 }
  0x35   :  { %v4764_v4 = vld [vmem:[#allocation2] sm:$0xf]  ;;  %v6965_v5 = vld [vmem:[#allocation2 + $0xc] sm:$0xf0]  ;;  %v5165_v14 = vor.u32 %v7065_v2, %v5164_v1 }
  0x36   :  { %1897 = vmatpush.bf16.msra.mxu0 %v4797_v55  ;;  %1910 = vmatpush.bf16.msra.mxu1 %v4925_v56  ;;  %v4892_v7 = vld [vmem:[#allocation2 + $0x100] sm:$0xf]  ;;  %v6997_v8 = vld [vmem:[#allocation2 + $0x10c] sm:$0xf0]  ;;  %v4765_v18 = vor.u32 %v6965_v5, %v4764_v4 }
  0x37   :  { %v5388_v9 = vld [vmem:[#allocation2 + $0x4e0] sm:$0xf]  ;;  %v7121_v11 = vld [vmem:[#allocation2 + $0x4ec] sm:$0xf0]  ;;  %v4893_v22 = vor.u32 %v6997_v8, %v4892_v7 }
  0x38   :  { %1923 = vmatpush.bf16.msra.mxu2 %v5053_v60  ;;  %1936 = vmatpush.bf16.msra.mxu3 %v5181_v62  ;;  %v5516_v12 = vld [vmem:[#allocation2 + $0x5e0] sm:$0xf]  ;;  %v7153_v13 = vld [vmem:[#allocation2 + $0x5ec] sm:$0xf0]  ;;  %v5389_v23 = vor.u32 %v7121_v11, %v5388_v9 }
  0x39   :  { %v5020_v15 = vld [vmem:[#allocation2 + $0x200] sm:$0xf]  ;;  %v7029_v16 = vld [vmem:[#allocation2 + $0x20c] sm:$0xf0]  ;;  %v5517_v27 = vor.u32 %v7153_v13, %v5516_v12 }
  0x3a   :  { %v5148_v17 = vld [vmem:[#allocation2 + $0x300] sm:$0xf]  ;;  %1898 = vmatpush.bf16.msra.mxu0 %v4781_v3  ;;  %v7061_v19 = vld [vmem:[#allocation2 + $0x30c] sm:$0xf0]  ;;  %1911 = vmatpush.bf16.msra.mxu1 %v4909_v6  ;;  %v5021_v30 = vor.u32 %v7029_v16, %v5020_v15 }
  0x3b   :  { %v5644_v20 = vld [vmem:[#allocation2 + $0x6e0] sm:$0xf]  ;;  %v7185_v21 = vld [vmem:[#allocation2 + $0x6ec] sm:$0xf0]  ;;  %v5149_v33 = vor.u32 %v7061_v19, %v5148_v17 }
  0x3c   :  { %1924 = vmatpush.bf16.msra.mxu2 %v5037_v10  ;;  %v5772_v24 = vld [vmem:[#allocation2 + $0x7e0] sm:$0xf]  ;;  %v7217_v25 = vld [vmem:[#allocation2 + $0x7ec] sm:$0xf0]  ;;  %1937 = vmatpush.bf16.msra.mxu3 %v5165_v14  ;;  %v5645_v34 = vor.u32 %v7185_v21, %v5644_v20 }
  0x3d   :  { %v5372_v28 = vld [vmem:[#allocation2 + $0x4c0] sm:$0xf]  ;;  %v7117_v29 = vld [vmem:[#allocation2 + $0x4cc] sm:$0xf0]  ;;  %v5773_v35 = vor.u32 %v7217_v25, %v5772_v24 }
  0x3e   :  { %v5500_v31 = vld [vmem:[#allocation2 + $0x5c0] sm:$0xf]  ;;  %v7149_v32 = vld [vmem:[#allocation2 + $0x5cc] sm:$0xf0]  ;;  %1899 = vmatpush.bf16.msra.mxu0 %v4765_v18  ;;  %1912 = vmatpush.bf16.msra.mxu1 %v4893_v22  ;;  %v5373_v38 = vor.u32 %v7117_v29, %v5372_v28 }
  0x3f   :  { %v5628_v36 = vld [vmem:[#allocation2 + $0x6c0] sm:$0xf]  ;;  %v7181_v37 = vld [vmem:[#allocation2 + $0x6cc] sm:$0xf0]  ;;  %v5501_v41 = vor.u32 %v7149_v32, %v5500_v31 }
  0x40   :  { %v5756_v39 = vld [vmem:[#allocation2 + $0x7c0] sm:$0xf]  ;;  %v7213_v40 = vld [vmem:[#allocation2 + $0x7cc] sm:$0xf0]  ;;  %1925 = vmatpush.bf16.msra.mxu2 %v5021_v30  ;;  %1938 = vmatpush.bf16.msra.mxu3 %v5149_v33  ;;  %v5629_v46 = vor.u32 %v7181_v37, %v5628_v36 }
  0x41   :  { %v5356_v42 = vld [vmem:[#allocation2 + $0x4a0] sm:$0xf]  ;;  %v7113_v43 = vld [vmem:[#allocation2 + $0x4ac] sm:$0xf0]  ;;  %v5757_v47 = vor.u32 %v7213_v40, %v5756_v39 }
  0x42   :  { %1944 = vmatpush.bf16.msrb.mxu0 %v5389_v23  ;;  %1957 = vmatpush.bf16.msrb.mxu1 %v5517_v27  ;;  %v5484_v44 = vld [vmem:[#allocation2 + $0x5a0] sm:$0xf]  ;;  %v7145_v45 = vld [vmem:[#allocation2 + $0x5ac] sm:$0xf0]  ;;  %v5357_v50 = vor.u32 %v7113_v43, %v5356_v42 }
  0x43   :  { %v5612_v48 = vld [vmem:[#allocation2 + $0x6a0] sm:$0xf]  ;;  %v7177_v49 = vld [vmem:[#allocation2 + $0x6ac] sm:$0xf0]  ;;  %v5485_v53 = vor.u32 %v7145_v45, %v5484_v44 }
  0x44   :  { %1970 = vmatpush.bf16.msrb.mxu2 %v5645_v34  ;;  %1983 = vmatpush.bf16.msrb.mxu3 %v5773_v35  ;;  %v5740_v51 = vld [vmem:[#allocation2 + $0x7a0] sm:$0xf]  ;;  %v7209_v52 = vld [vmem:[#allocation2 + $0x7ac] sm:$0xf0]  ;;  %v5613_v58 = vor.u32 %v7177_v49, %v5612_v48 }
  0x45   :  { %v5340_v54 = vld [vmem:[#allocation2 + $0x480] sm:$0xf]  ;;  %v7109_v55 = vld [vmem:[#allocation2 + $0x48c] sm:$0xf0]  ;;  %v5741_v59 = vor.u32 %v7209_v52, %v5740_v51 }
  0x46   :  { %1945 = vmatpush.bf16.msrb.mxu0 %v5373_v38  ;;  %1958 = vmatpush.bf16.msrb.mxu1 %v5501_v41  ;;  %v5468_v56 = vld [vmem:[#allocation2 + $0x580] sm:$0xf]  ;;  %v7141_v57 = vld [vmem:[#allocation2 + $0x58c] sm:$0xf0]  ;;  %v5341_v62 = vor.u32 %v7109_v55, %v5340_v54 }
  0x47   :  { %v5596_v60 = vld [vmem:[#allocation2 + $0x680] sm:$0xf]  ;;  %v7173_v61 = vld [vmem:[#allocation2 + $0x68c] sm:$0xf0]  ;;  %v5469_v1 = vor.u32 %v7141_v57, %v5468_v56 }
  0x48   :  { %1971 = vmatpush.bf16.msrb.mxu2 %v5629_v46  ;;  %1984 = vmatpush.bf16.msrb.mxu3 %v5757_v47  ;;  %v5724_v63 = vld [vmem:[#allocation2 + $0x780] sm:$0xf]  ;;  %v7205_v0 = vld [vmem:[#allocation2 + $0x78c] sm:$0xf0]  ;;  %v5597_v6 = vor.u32 %v7173_v61, %v5596_v60  ;;  %v6991_v60 = vld [vmem:[#allocation2 + $0xe4] sm:$0xf] }
  0x49   :  { %v5324_v2 = vld [vmem:[#allocation2 + $0x460] sm:$0xf]  ;;  %v7105_v3 = vld [vmem:[#allocation2 + $0x46c] sm:$0xf0]  ;;  %v5725_v7 = vor.u32 %v7205_v0, %v5724_v63  ;;  %v4878_v61 = vld [vmem:[#allocation2 + $0xf0] sm:$0xf0] }
  0x4a   :  { %1946 = vmatpush.bf16.msrb.mxu0 %v5357_v50  ;;  %1959 = vmatpush.bf16.msrb.mxu1 %v5485_v53  ;;  %v5452_v4 = vld [vmem:[#allocation2 + $0x560] sm:$0xf]  ;;  %v7137_v5 = vld [vmem:[#allocation2 + $0x56c] sm:$0xf0]  ;;  %v5325_v8 = vor.u32 %v7105_v3, %v5324_v2  ;;  %v5006_v0 = vld [vmem:[#allocation2 + $0x1f0] sm:$0xf0] }
  0x4b   :  { %v5453_v9 = vor.u32 %v7137_v5, %v5452_v4  ;;  %v5308_v10 = vld [vmem:[#allocation2 + $0x440] sm:$0xf]  ;;  %v7101_v11 = vld [vmem:[#allocation2 + $0x44c] sm:$0xf0]  ;;  %v4881_v5 = vor.u32 %v6991_v60, %v4878_v61  ;;  %v5102_v61 = vld [vmem:[#allocation2 + $0x2b0] sm:$0xf0] }
  0x4c   :  { %1972 = vmatpush.bf16.msrb.mxu2 %v5613_v58  ;;  %1985 = vmatpush.bf16.msrb.mxu3 %v5741_v59  ;;  %v5436_v12 = vld [vmem:[#allocation2 + $0x540] sm:$0xf]  ;;  %v7133_v13 = vld [vmem:[#allocation2 + $0x54c] sm:$0xf0]  ;;  %v5309_v14 = vor.u32 %v7101_v11, %v5308_v10  ;;  %v4862_v10 = vld [vmem:[#allocation2 + $0xd0] sm:$0xf0] }
  0x4d   :  { %v5437_v15 = vor.u32 %v7133_v13, %v5436_v12  ;;  %v5580_v16 = vld [vmem:[#allocation2 + $0x660] sm:$0xf]  ;;  %v7169_v17 = vld [vmem:[#allocation2 + $0x66c] sm:$0xf0]  ;;  %v7019_v13 = vld [vmem:[#allocation2 + $0x1c4] sm:$0xf] }
  0x4e   :  { %1947 = vmatpush.bf16.msrb.mxu0 %v5341_v62  ;;  %1960 = vmatpush.bf16.msrb.mxu1 %v5469_v1  ;;  %v5708_v18 = vld [vmem:[#allocation2 + $0x760] sm:$0xf]  ;;  %v5581_v19 = vor.u32 %v7169_v17, %v5580_v16  ;;  %v7201_v20 = vld [vmem:[#allocation2 + $0x76c] sm:$0xf0]  ;;  %v7023_v62 = vld [vmem:[#allocation2 + $0x1e4] sm:$0xf] }
  0x4f   :  { %v5709_v21 = vor.u32 %v7201_v20, %v5708_v18  ;;  %v5292_v22 = vld [vmem:[#allocation2 + $0x420] sm:$0xf]  ;;  %v7097_v23 = vld [vmem:[#allocation2 + $0x42c] sm:$0xf0]  ;;  %v7055_v18 = vld [vmem:[#allocation2 + $0x2e4] sm:$0xf] }
  0x50   :  { %1973 = vmatpush.bf16.msrb.mxu2 %v5597_v6  ;;  %1986 = vmatpush.bf16.msrb.mxu3 %v5725_v7  ;;  %v5420_v24 = vld [vmem:[#allocation2 + $0x520] sm:$0xf]  ;;  %v5293_v25 = vor.u32 %v7097_v23, %v5292_v22  ;;  %v7129_v27 = vld [vmem:[#allocation2 + $0x52c] sm:$0xf0]  ;;  %v7087_v20 = vld [vmem:[#allocation2 + $0x3e4] sm:$0xf] }
  0x51   :  { %v5421_v28 = vor.u32 %v7129_v27, %v5420_v24  ;;  %v5564_v29 = vld [vmem:[#allocation2 + $0x640] sm:$0xf]  ;;  %v7165_v30 = vld [vmem:[#allocation2 + $0x64c] sm:$0xf0]  ;;  %v5262_v24 = vld [vmem:[#allocation2 + $0x3f0] sm:$0xf0] }
  0x52   :  { %1948 = vmatpush.bf16.msrb.mxu0 %v5325_v8  ;;  %1961 = vmatpush.bf16.msrb.mxu1 %v5453_v9  ;;  %v5692_v31 = vld [vmem:[#allocation2 + $0x740] sm:$0xf]  ;;  %v5565_v32 = vor.u32 %v7165_v30, %v5564_v29  ;;  %v7197_v33 = vld [vmem:[#allocation2 + $0x74c] sm:$0xf0]  ;;  %v5009_v8 = vor.u32 %v7023_v62, %v5006_v0  ;;  %v6987_v9 = vld [vmem:[#allocation2 + $0xc4] sm:$0xf] }
  0x53   :  { %v5693_v34 = vor.u32 %v7197_v33, %v5692_v31  ;;  %v5276_v35 = vld [vmem:[#allocation2 + $0x400] sm:$0xf]  ;;  %v7093_v36 = vld [vmem:[#allocation2 + $0x40c] sm:$0xf0]  ;;  %v4865_v23 = vor.u32 %v6987_v9, %v4862_v10  ;;  %v4846_v27 = vld [vmem:[#allocation2 + $0xb0] sm:$0xf0] }
  0x54   :  { %1974 = vmatpush.bf16.msrb.mxu2 %v5581_v19  ;;  %1987 = vmatpush.bf16.msrb.mxu3 %v5709_v21  ;;  %v5404_v37 = vld [vmem:[#allocation2 + $0x500] sm:$0xf]  ;;  %v5277_v38 = vor.u32 %v7093_v36, %v5276_v35  ;;  %v7125_v39 = vld [vmem:[#allocation2 + $0x50c] sm:$0xf0]  ;;  %v5134_v19 = vld [vmem:[#allocation2 + $0x2f0] sm:$0xf0] }
  0x55   :  { %v5405_v40 = vor.u32 %v7125_v39, %v5404_v37  ;;  %v5548_v41 = vld [vmem:[#allocation2 + $0x620] sm:$0xf]  ;;  %v7161_v42 = vld [vmem:[#allocation2 + $0x62c] sm:$0xf0]  ;;  %v7015_v30 = vld [vmem:[#allocation2 + $0x1a4] sm:$0xf]  ;;  %v5265_v39 = vor.u32 %v7087_v20, %v5262_v24 }
  0x56   :  { %1949 = vmatpush.bf16.msrb.mxu0 %v5309_v14  ;;  %1962 = vmatpush.bf16.msrb.mxu1 %v5437_v15  ;;  %v5676_v43 = vld [vmem:[#allocation2 + $0x720] sm:$0xf]  ;;  %v5549_v44 = vor.u32 %v7161_v42, %v5548_v41  ;;  %v7193_v45 = vld [vmem:[#allocation2 + $0x72c] sm:$0xf0]  ;;  %v4990_v14 = vld [vmem:[#allocation2 + $0x1d0] sm:$0xf0] }
  0x57   :  { %v5677_v46 = vor.u32 %v7193_v45, %v5676_v43  ;;  %v5532_v47 = vld [vmem:[#allocation2 + $0x600] sm:$0xf]  ;;  %v7157_v48 = vld [vmem:[#allocation2 + $0x60c] sm:$0xf0]  ;;  %v4993_v29 = vor.u32 %v7019_v13, %v4990_v14  ;;  %v7051_v41 = vld [vmem:[#allocation2 + $0x2c4] sm:$0xf] }
  0x58   :  { %1975 = vmatpush.bf16.msrb.mxu2 %v5565_v32  ;;  %1988 = vmatpush.bf16.msrb.mxu3 %v5693_v34  ;;  %v5533_v49 = vor.u32 %v7157_v48, %v5532_v47  ;;  %v5660_v50 = vld [vmem:[#allocation2 + $0x700] sm:$0xf]  ;;  %v7189_v51 = vld [vmem:[#allocation2 + $0x70c] sm:$0xf0]  ;;  %v4974_v32 = vld [vmem:[#allocation2 + $0x1b0] sm:$0xf0]  ;;  %v5137_v34 = vor.u32 %v7055_v18, %v5134_v19 }
  0x59   :  { %v5661_v52 = vor.u32 %v7189_v51, %v5660_v50  ;;  %v7819_v53 = vld [vmem:[%s8160_s2] sm:$0xff]  ;;  %v5118_v42 = vld [vmem:[#allocation2 + $0x2d0] sm:$0xf0]  ;;  %v4977_v45 = vor.u32 %v7015_v30, %v4974_v32  ;;  %s4679_s2 = sshll.u32 %s8170_s12, 4  ;;  %s4680_s2 = int_to_ptr.hbm [resolvable:$true] %s4679_s2 }
  0x5a   :  { %1950 = vmatpush.bf16.msrb.mxu0 %v5293_v25  ;;  %1963 = vmatpush.bf16.msrb.mxu1 %v5421_v28  ;;  %v110_v54 = vperm.slane %v7819_v53, 0  ;;  %v111_v55 = vperm.slane %v7819_v53, 1  ;;  %v112_v2 = vperm.slane %v7819_v53, 2  ;;  %v113_v4 = vperm.slane %v7819_v53, 3  ;;  %v6983_v25 = vld [vmem:[#allocation2 + $0xa4] sm:$0xf] }
  0x5b   :  { %v114_v35 = vperm.slane %v7819_v53, 4  ;;  %v115_v36 = vperm.slane %v7819_v53, 5  ;;  %v7083_v43 = vld [vmem:[#allocation2 + $0x3c4] sm:$0xf]  ;;  %v4830_v48 = vld [vmem:[#allocation2 + $0x90] sm:$0xf0] }
  0x5c   :  { %1976 = vmatpush.bf16.msrb.mxu2 %v5549_v44  ;;  %1989 = vmatpush.bf16.msrb.mxu3 %v5677_v46  ;;  %v5246_v46 = vld [vmem:[#allocation2 + $0x3d0] sm:$0xf0]  ;;  %v6979_v47 = vld [vmem:[#allocation2 + $0x84] sm:$0xf]  ;;  %v116_v9 = vperm.slane %v7819_v53, 6  ;;  %v117_v13 = vperm.slane %v7819_v53, 7 }
  0x5d   :  { %v7011_v50 = vld [vmem:[#allocation2 + $0x184] sm:$0xf]  ;;  %v4958_v51 = vld [vmem:[#allocation2 + $0x190] sm:$0xf0]  ;;  %v4833_v60 = vor.u32 %v6979_v47, %v4830_v48 }
  0x5e   :  { %1951 = vmatpush.bf16.msrb.mxu0 %v5277_v38  ;;  %1964 = vmatpush.bf16.msrb.mxu1 %v5405_v40  ;;  %v4849_v40 = vor.u32 %v6983_v25, %v4846_v27  ;;  %v7079_v62 = vld [vmem:[#allocation2 + $0x3a4] sm:$0xf]  ;;  %v4798_v27 = vld [vmem:[#allocation2 + $0x50] sm:$0xf0] }
  0x5f   :  { %v7039_v32 = vld [vmem:[#allocation2 + $0x264] sm:$0xf] }
  0x60   :  { %1977 = vmatpush.bf16.msrb.mxu2 %v5533_v49  ;;  %1990 = vmatpush.bf16.msrb.mxu3 %v5661_v52  ;;  %v6999_v47 = vld [vmem:[#allocation2 + $0x124] sm:$0xf] }
  0x96   :  { %v219_v56 = vpop.f32.mrf.mxu0  ;;  %v232_v58 = vpop.f32.mrf.mxu1 }
  0x97   :  { %v220_v57 = vadd.f32 %v219_v56, %v110_v54  ;;  %v233_v59 = vadd.f32 %v232_v58, %v111_v55  ;;  %v5121_v55 = vor.u32 %v7051_v41, %v5118_v42  ;;  %v7047_v56 = vld [vmem:[#allocation2 + $0x2a4] sm:$0xf]  ;;  %v4782_v41 = vld [vmem:[#allocation2 + $0x30] sm:$0xf0] }
  0x98   :  { %v5105_v10 = vor.u32 %v7047_v56, %v5102_v61  ;;  %v7035_v56 = vld [vmem:[#allocation2 + $0x244] sm:$0xf] }
  0x99   :  { %vm314_vm1 = vcmp.gt.f32.partialorder %v220_v57, 0.0  ;;  %v322_v63 = vmul.f32 0.01, %v220_v57  ;;  %vm315_vm2 = vcmp.gt.f32.partialorder %v233_v59, 0.0  ;;  %v323_v1 = vmul.f32 0.01, %v233_v59 }
  0x9b   :  { %v330_v3 = vsel %vm314_vm1, %v220_v57, %v322_v63  ;;  %v331_v7 = vsel %vm315_vm2, %v233_v59, %v323_v1  ;;  %v5249_v59 = vor.u32 %v7083_v43, %v5246_v46  ;;  %v5230_v63 = vld [vmem:[#allocation2 + $0x3b0] sm:$0xf0]  ;;  %v4961_v1 = vor.u32 %v7011_v50, %v4958_v51 }
  0x9c   :  { %v7825_v6 = vpack.c.bf16 %v330_v3, %v330_v3  ;;  %v7827_v11 = vpack.c.bf16 %v331_v7, %v331_v7  ;;  %v4814_v3 = vld [vmem:[#allocation2 + $0x70] sm:$0xf0]  ;;  %v5233_v14 = vor.u32 %v7079_v62, %v5230_v63  ;;  %v6963_v63 = vld [vmem:[#allocation2 + $0x4] sm:$0xf] }
  0x9d   :  { %v4942_v7 = vld [vmem:[#allocation2 + $0x170] sm:$0xf0] }
  0x9e   :  { %v245_v12 = vpop.f32.mrf.mxu2  ;;  %v258_v16 = vpop.f32.mrf.mxu3  ;;  %1900 = vmatmul.bf16.vlgmr.msra.gmra.mxu0 %v7825_v6  ;;  %1913 = vmatmul.bf16.vlgmr.msra.gmra.mxu1 %v7827_v11  ;;  %v5182_v62 = vld [vmem:[#allocation2 + $0x350] sm:$0xf0] }
  0x9f   :  { %v246_v15 = vadd.f32 %v245_v12, %v112_v2  ;;  %v221_v17 = vpop.f32.mrf.mxu0  ;;  %v259_v21 = vadd.f32 %v258_v16, %v113_v4  ;;  %v234_v22 = vpop.f32.mrf.mxu1  ;;  %1996 = vmatpush.bf16.msra.mxu0 %v4881_v5  ;;  %2009 = vmatpush.bf16.msra.mxu1 %v5009_v8  ;;  %v6975_v2 = vld [vmem:[#allocation2 + $0x64] sm:$0xf]  ;;  %v5086_v16 = vld [vmem:[#allocation2 + $0x290] sm:$0xf0] }
  0xa0   :  { %v7007_v4 = vld [vmem:[#allocation2 + $0x164] sm:$0xf]  ;;  %v4817_v19 = vor.u32 %v6975_v2, %v4814_v3  ;;  %v5214_v22 = vld [vmem:[#allocation2 + $0x390] sm:$0xf0] }
  0xa1   :  { %vm316_vm3 = vcmp.gt.f32.partialorder %v246_v15, 0.0  ;;  %v324_v28 = vmul.f32 0.01, %v246_v15  ;;  %vm317_vm4 = vcmp.gt.f32.partialorder %v259_v21, 0.0  ;;  %v325_v31 = vmul.f32 0.01, %v259_v21 }
  0xa2   :  { %v4945_v20 = vor.u32 %v7007_v4, %v4942_v7  ;;  %v6995_v2 = vld [vmem:[#allocation2 + $0x104] sm:$0xf]  ;;  %v4894_v3 = vld [vmem:[#allocation2 + $0x110] sm:$0xf0] }
  0xa3   :  { %v332_v33 = vsel %vm316_vm3, %v246_v15, %v324_v28  ;;  %v333_v38 = vsel %vm317_vm4, %v259_v21, %v325_v31  ;;  %1997 = vmatpush.bf16.msra.mxu0 %v4865_v23  ;;  %2010 = vmatpush.bf16.msra.mxu1 %v4993_v29  ;;  %v7043_v15 = vld [vmem:[#allocation2 + $0x284] sm:$0xf]  ;;  %v4926_v29 = vld [vmem:[#allocation2 + $0x150] sm:$0xf0] }
  0xa4   :  { %v7833_v37 = vpack.c.bf16 %v332_v33, %v332_v33  ;;  %v7835_v44 = vpack.c.bf16 %v333_v38, %v333_v38  ;;  %v7075_v21 = vld [vmem:[#allocation2 + $0x384] sm:$0xf]  ;;  %v5089_v31 = vor.u32 %v7043_v15, %v5086_v16  ;;  %v5070_v33 = vld [vmem:[#allocation2 + $0x270] sm:$0xf0]  ;;  %v4897_v16 = vor.u32 %v6995_v2, %v4894_v3 }
  0xa5   :  { %v6971_v23 = vld [vmem:[#allocation2 + $0x44] sm:$0xf]  ;;  %v5217_v38 = vor.u32 %v7075_v21, %v5214_v22  ;;  %v5073_v51 = vor.u32 %v7039_v32, %v5070_v33  ;;  %v5150_v32 = vld [vmem:[#allocation2 + $0x310] sm:$0xf0] }
  0xa6   :  { %v247_v49 = vpop.f32.mrf.mxu2  ;;  %1926 = vmatmul.bf16.vlgmr.msra.gmra.mxu2 %v7833_v37  ;;  %v260_v52 = vpop.f32.mrf.mxu3  ;;  %1939 = vmatmul.bf16.vlgmr.msra.gmra.mxu3 %v7835_v44  ;;  %v7003_v28 = vld [vmem:[#allocation2 + $0x144] sm:$0xf] }
  0xa7   :  { %2022 = vmatpush.bf16.msra.mxu2 %v5137_v34  ;;  %v271_v54 = vpop.f32.mrf.mxu0  ;;  %2035 = vmatpush.bf16.msra.mxu3 %v5265_v39  ;;  %v284_v58 = vpop.f32.mrf.mxu1  ;;  %v7071_v34 = vld [vmem:[#allocation2 + $0x364] sm:$0xf]  ;;  %v5198_v39 = vld [vmem:[#allocation2 + $0x370] sm:$0xf0]  ;;  %v4929_v46 = vor.u32 %v7003_v28, %v4926_v29 }
  0xa8   :  { %v272_v57 = vadd.f32 %v271_v54, %v114_v35  ;;  %1998 = vmatpush.bf16.msra.mxu0 %v4849_v40  ;;  %v285_v0 = vadd.f32 %v284_v58, %v115_v36  ;;  %2011 = vmatpush.bf16.msra.mxu1 %v4977_v45  ;;  %v6967_v40 = vld [vmem:[#allocation2 + $0x24] sm:$0xf]  ;;  %v4801_v45 = vor.u32 %v6971_v23, %v4798_v27  ;;  %v4910_v49 = vld [vmem:[#allocation2 + $0x130] sm:$0xf0] }
  0xa9   :  { %v7067_v58 = vld [vmem:[#allocation2 + $0x344] sm:$0xf]  ;;  %v4913_v61 = vor.u32 %v6999_v47, %v4910_v49  ;;  %v5502_v28 = vld [vmem:[#allocation2 + $0x5d0] sm:$0xf0] }
  0xaa   :  { %vm318_vm5 = vcmp.gt.f32.partialorder %v272_v57, 0.0  ;;  %v326_v5 = vmul.f32 0.01, %v272_v57  ;;  %vm319_vm6 = vcmp.gt.f32.partialorder %v285_v0, 0.0  ;;  %v327_v8 = vmul.f32 0.01, %v285_v0 }
  0xab   :  { %2023 = vmatpush.bf16.msra.mxu2 %v5121_v55  ;;  %2036 = vmatpush.bf16.msra.mxu3 %v5249_v59  ;;  %v5201_v55 = vor.u32 %v7071_v34, %v5198_v39  ;;  %v7119_v4 = vld [vmem:[#allocation2 + $0x4e4] sm:$0xf]  ;;  %v5646_v34 = vld [vmem:[#allocation2 + $0x6f0] sm:$0xf0] }
  0xac   :  { %v334_v12 = vsel %vm318_vm5, %v272_v57, %v326_v5  ;;  %1999 = vmatpush.bf16.msra.mxu0 %v4833_v60  ;;  %v335_v18 = vsel %vm319_vm6, %v285_v0, %v327_v8  ;;  %2012 = vmatpush.bf16.msra.mxu1 %v4961_v1  ;;  %v5054_v57 = vld [vmem:[#allocation2 + $0x250] sm:$0xf0]  ;;  %v4785_v60 = vor.u32 %v6967_v40, %v4782_v41  ;;  %v7115_v22 = vld [vmem:[#allocation2 + $0x4c4] sm:$0xf] }
  0xad   :  { %v7841_v17 = vpack.c.bf16 %v334_v12, %v334_v12  ;;  %v7843_v24 = vpack.c.bf16 %v335_v18, %v335_v18  ;;  %v4766_v0 = vld [vmem:[#allocation2 + $0x10] sm:$0xf0]  ;;  %v5057_v5 = vor.u32 %v7035_v56, %v5054_v57  ;;  %v5185_v12 = vor.u32 %v7067_v58, %v5182_v62  ;;  %v7063_v18 = vld [vmem:[#allocation2 + $0x324] sm:$0xf] }
  0xae   :  { %v297_v25 = vpop.f32.mrf.mxu2  ;;  %v310_v53 = vpop.f32.mrf.mxu3  ;;  %v5390_v8 = vld [vmem:[#allocation2 + $0x4f0] sm:$0xf0]  ;;  %v4769_v15 = vor.u32 %v6963_v63, %v4766_v0  ;;  %v7147_v27 = vld [vmem:[#allocation2 + $0x5c4] sm:$0xf] }
  0xaf   :  { %v298_v30 = vadd.f32 %v297_v25, %v116_v9  ;;  %2024 = vmatpush.bf16.msra.mxu2 %v5105_v10  ;;  %1952 = vmatmul.bf16.vlgmr.msrb.gmra.mxu0 %v7841_v17  ;;  %v273_v35 = vpop.f32.mrf.mxu0  ;;  %v311_v36 = vadd.f32 %v310_v53, %v117_v13  ;;  %v286_v42 = vpop.f32.mrf.mxu1  ;;  %v7151_v9 = vld [vmem:[#allocation2 + $0x5e4] sm:$0xf]  ;;  %v5518_v10 = vld [vmem:[#allocation2 + $0x5f0] sm:$0xf0] }
  0xb0   :  { %2037 = vmatpush.bf16.msra.mxu3 %v5233_v14  ;;  %1965 = vmatmul.bf16.vlgmr.msrb.gmra.mxu1 %v7843_v24  ;;  %v7031_v13 = vld [vmem:[#allocation2 + $0x224] sm:$0xf]  ;;  %v5038_v14 = vld [vmem:[#allocation2 + $0x230] sm:$0xf0]  ;;  %v5521_v21 = vor.u32 %v7151_v9, %v5518_v10 }
  0xb1   :  { %vm320_vm7 = vcmp.gt.f32.partialorder %v298_v30, 0.0  ;;  %v328_v43 = vmul.f32 0.01, %v298_v30  ;;  %2000 = vmatpush.bf16.msra.mxu0 %v4817_v19  ;;  %2013 = vmatpush.bf16.msra.mxu1 %v4945_v20  ;;  %vm321_vm8 = vcmp.gt.f32.partialorder %v311_v36, 0.0  ;;  %v329_v48 = vmul.f32 0.01, %v311_v36 }
  0xb2   :  { %v5166_v19 = vld [vmem:[#allocation2 + $0x330] sm:$0xf0]  ;;  %v5393_v20 = vor.u32 %v7119_v4, %v5390_v8  ;;  %v5041_v23 = vor.u32 %v7031_v13, %v5038_v14  ;;  %v7183_v33 = vld [vmem:[#allocation2 + $0x6e4] sm:$0xf] }
  0xb3   :  { %v336_v50 = vsel %vm320_vm7, %v298_v30, %v328_v43  ;;  %2025 = vmatpush.bf16.msra.mxu2 %v5089_v31  ;;  %v337_v54 = vsel %vm321_vm8, %v311_v36, %v329_v48  ;;  %v5374_v25 = vld [vmem:[#allocation2 + $0x4d0] sm:$0xf0]  ;;  %v5169_v29 = vor.u32 %v7063_v18, %v5166_v19  ;;  %v7027_v30 = vld [vmem:[#allocation2 + $0x204] sm:$0xf]  ;;  %v5505_v36 = vor.u32 %v7147_v27, %v5502_v28 }
  0xb4   :  { %v7847_v52 = vpack.c.bf16 %v336_v50, %v336_v50  ;;  %2038 = vmatpush.bf16.msra.mxu3 %v5217_v38  ;;  %v7849_v59 = vpack.c.bf16 %v337_v54, %v337_v54  ;;  %v5022_v53 = vld [vmem:[#allocation2 + $0x210] sm:$0xf0]  ;;  %v7059_v31 = vld [vmem:[#allocation2 + $0x304] sm:$0xf]  ;;  %v5377_v35 = vor.u32 %v7115_v22, %v5374_v25  ;;  %v5649_v47 = vor.u32 %v7183_v33, %v5646_v34 }
  0xb5   :  { %2001 = vmatpush.bf16.msra.mxu0 %v4801_v45  ;;  %2014 = vmatpush.bf16.msra.mxu1 %v4929_v46  ;;  %v7215_v38 = vld [vmem:[#allocation2 + $0x7e4] sm:$0xf]  ;;  %v5774_v39 = vld [vmem:[#allocation2 + $0x7f0] sm:$0xf0]  ;;  %v5025_v41 = vor.u32 %v7027_v30, %v5022_v53  ;;  %v5153_v46 = vor.u32 %v7059_v31, %v5150_v32 }
  0xb6   :  { %1978 = vmatmul.bf16.vlgmr.msrb.gmra.mxu2 %v7847_v52  ;;  %v299_v1 = vpop.f32.mrf.mxu2  ;;  %1991 = vmatmul.bf16.vlgmr.msrb.gmra.mxu3 %v7849_v59  ;;  %v312_v7 = vpop.f32.mrf.mxu3  ;;  %v7111_v40 = vld [vmem:[#allocation2 + $0x4a4] sm:$0xf]  ;;  %v5358_v42 = vld [vmem:[#allocation2 + $0x4b0] sm:$0xf0]  ;;  %v5777_v48 = vor.u32 %v7215_v38, %v5774_v39 }
  0xb7   :  { %2026 = vmatpush.bf16.msra.mxu2 %v5073_v51  ;;  %v7143_v43 = vld [vmem:[#allocation2 + $0x5a4] sm:$0xf]  ;;  %v5486_v45 = vld [vmem:[#allocation2 + $0x5b0] sm:$0xf0]  ;;  %v5361_v51 = vor.u32 %v7111_v40, %v5358_v42 }
  0xb8   :  { %2039 = vmatpush.bf16.msra.mxu3 %v5201_v55  ;;  %v7179_v49 = vld [vmem:[#allocation2 + $0x6c4] sm:$0xf]  ;;  %v5630_v50 = vld [vmem:[#allocation2 + $0x6d0] sm:$0xf0]  ;;  %v5489_v54 = vor.u32 %v7143_v43, %v5486_v45 }
  0xb9   :  { %2002 = vmatpush.bf16.msra.mxu0 %v4785_v60  ;;  %2015 = vmatpush.bf16.msra.mxu1 %v4913_v61  ;;  %v7211_v55 = vld [vmem:[#allocation2 + $0x7c4] sm:$0xf]  ;;  %v5758_v56 = vld [vmem:[#allocation2 + $0x7d0] sm:$0xf0]  ;;  %v5633_v62 = vor.u32 %v7179_v49, %v5630_v50 }
  0xba   :  { %v7107_v57 = vld [vmem:[#allocation2 + $0x484] sm:$0xf]  ;;  %v5342_v58 = vld [vmem:[#allocation2 + $0x490] sm:$0xf0]  ;;  %v5761_v63 = vor.u32 %v7211_v55, %v5758_v56  ;;  %v6994_v56 = vld [vmem:[#allocation2 + $0xf4] sm:$0xf0] }
  0xbb   :  { %2027 = vmatpush.bf16.msra.mxu2 %v5057_v5  ;;  %v7139_v60 = vld [vmem:[#allocation2 + $0x584] sm:$0xf]  ;;  %v5470_v61 = vld [vmem:[#allocation2 + $0x590] sm:$0xf0]  ;;  %v5345_v2 = vor.u32 %v7107_v57, %v5342_v58  ;;  %v5012_v57 = vld [vmem:[#allocation2 + $0x1e8] sm:$0xf] }
  0xbc   :  { %2040 = vmatpush.bf16.msra.mxu3 %v5185_v12  ;;  %v7175_v0 = vld [vmem:[#allocation2 + $0x6a4] sm:$0xf]  ;;  %v5614_v1 = vld [vmem:[#allocation2 + $0x6b0] sm:$0xf0]  ;;  %v5473_v3 = vor.u32 %v7139_v60, %v5470_v61  ;;  %v7026_v58 = vld [vmem:[#allocation2 + $0x1f4] sm:$0xf0] }
  0xbd   :  { %2003 = vmatpush.bf16.msra.mxu0 %v4769_v15  ;;  %2016 = vmatpush.bf16.msra.mxu1 %v4897_v16  ;;  %v7207_v4 = vld [vmem:[#allocation2 + $0x7a4] sm:$0xf]  ;;  %v5742_v5 = vld [vmem:[#allocation2 + $0x7b0] sm:$0xf0]  ;;  %v5617_v12 = vor.u32 %v7175_v0, %v5614_v1 }
  0xbe   :  { %v7103_v7 = vld [vmem:[#allocation2 + $0x464] sm:$0xf]  ;;  %v5326_v8 = vld [vmem:[#allocation2 + $0x470] sm:$0xf0]  ;;  %v5745_v13 = vor.u32 %v7207_v4, %v5742_v5  ;;  %v5013_v4 = vor.u32 %v7026_v58, %v5012_v57  ;;  %v4868_v5 = vld [vmem:[#allocation2 + $0xc8] sm:$0xf] }
  0xbf   :  { %2028 = vmatpush.bf16.msra.mxu2 %v5041_v23  ;;  %v7135_v9 = vld [vmem:[#allocation2 + $0x564] sm:$0xf]  ;;  %v5454_v10 = vld [vmem:[#allocation2 + $0x570] sm:$0xf0]  ;;  %v5329_v16 = vor.u32 %v7103_v7, %v5326_v8  ;;  %v6990_v8 = vld [vmem:[#allocation2 + $0xd4] sm:$0xf0] }
  0xc0   :  { %2041 = vmatpush.bf16.msra.mxu3 %v5169_v29  ;;  %2004 = vmatmul.bf16.vlgmr.msra.gmra.mxu0 %v7825_v6  ;;  %v7171_v14 = vld [vmem:[#allocation2 + $0x684] sm:$0xf]  ;;  %v5598_v15 = vld [vmem:[#allocation2 + $0x690] sm:$0xf0]  ;;  %v5457_v18 = vor.u32 %v7135_v9, %v5454_v10  ;;  %v4996_v9 = vld [vmem:[#allocation2 + $0x1c8] sm:$0xf] }
  0xc1   :  { %2048 = vmatpush.bf16.msrb.mxu0 %v5393_v20  ;;  %2061 = vmatpush.bf16.msrb.mxu1 %v5521_v21  ;;  %v7203_v19 = vld [vmem:[#allocation2 + $0x784] sm:$0xf]  ;;  %v5726_v20 = vld [vmem:[#allocation2 + $0x790] sm:$0xf0]  ;;  %v5601_v27 = vor.u32 %v7171_v14, %v5598_v15  ;;  %v7022_v10 = vld [vmem:[#allocation2 + $0x1d4] sm:$0xf0] }
  0xc2   :  { %2017 = vmatmul.bf16.vlgmr.msra.gmra.mxu1 %v7827_v11  ;;  %v7099_v21 = vld [vmem:[#allocation2 + $0x444] sm:$0xf]  ;;  %v5310_v22 = vld [vmem:[#allocation2 + $0x450] sm:$0xf0]  ;;  %v5729_v28 = vor.u32 %v7203_v19, %v5726_v20  ;;  %v7058_v19 = vld [vmem:[#allocation2 + $0x2f4] sm:$0xf0]  ;;  %v4869_v20 = vor.u32 %v6990_v8, %v4868_v5 }
  0xc3   :  { %2029 = vmatpush.bf16.msra.mxu2 %v5025_v41  ;;  %v7131_v23 = vld [vmem:[#allocation2 + $0x544] sm:$0xf]  ;;  %v5438_v25 = vld [vmem:[#allocation2 + $0x550] sm:$0xf0]  ;;  %v5313_v53 = vor.u32 %v7099_v21, %v5310_v22  ;;  %v4997_v21 = vor.u32 %v7022_v10, %v4996_v9  ;;  %v5268_v22 = vld [vmem:[#allocation2 + $0x3e8] sm:$0xf] }
  0xc4   :  { %2042 = vmatpush.bf16.msra.mxu3 %v5153_v46  ;;  %v7167_v29 = vld [vmem:[#allocation2 + $0x664] sm:$0xf]  ;;  %v5582_v30 = vld [vmem:[#allocation2 + $0x670] sm:$0xf0]  ;;  %v5441_v31 = vor.u32 %v7131_v23, %v5438_v25  ;;  %v7090_v23 = vld [vmem:[#allocation2 + $0x3f4] sm:$0xf0] }
  0xc5   :  { %2049 = vmatpush.bf16.msrb.mxu0 %v5377_v35  ;;  %2062 = vmatpush.bf16.msrb.mxu1 %v5505_v36  ;;  %v7199_v32 = vld [vmem:[#allocation2 + $0x764] sm:$0xf]  ;;  %v5710_v33 = vld [vmem:[#allocation2 + $0x770] sm:$0xf0]  ;;  %v5585_v39 = vor.u32 %v7167_v29, %v5582_v30  ;;  %v4948_v58 = vld [vmem:[#allocation2 + $0x168] sm:$0xf] }
  0xc6   :  { %2030 = vmatmul.bf16.vlgmr.msra.gmra.mxu2 %v7833_v37  ;;  %v7095_v34 = vld [vmem:[#allocation2 + $0x424] sm:$0xf]  ;;  %v5294_v35 = vld [vmem:[#allocation2 + $0x430] sm:$0xf0]  ;;  %v5713_v40 = vor.u32 %v7199_v32, %v5710_v33  ;;  %v5269_v32 = vor.u32 %v7090_v23, %v5268_v22  ;;  %v5124_v33 = vld [vmem:[#allocation2 + $0x2c8] sm:$0xf] }
  0xc7   :  { %2074 = vmatpush.bf16.msrb.mxu2 %v5649_v47  ;;  %2043 = vmatmul.bf16.vlgmr.msra.gmra.mxu3 %v7835_v44  ;;  %v7127_v36 = vld [vmem:[#allocation2 + $0x524] sm:$0xf]  ;;  %v5422_v38 = vld [vmem:[#allocation2 + $0x530] sm:$0xf0]  ;;  %v5297_v45 = vor.u32 %v7095_v34, %v5294_v35  ;;  %v7054_v34 = vld [vmem:[#allocation2 + $0x2d4] sm:$0xf0] }
  0xc8   :  { %2087 = vmatpush.bf16.msrb.mxu3 %v5777_v48  ;;  %v7163_v41 = vld [vmem:[#allocation2 + $0x644] sm:$0xf]  ;;  %v5566_v42 = vld [vmem:[#allocation2 + $0x650] sm:$0xf0]  ;;  %v5425_v46 = vor.u32 %v7127_v36, %v5422_v38  ;;  %v5252_v36 = vld [vmem:[#allocation2 + $0x3c8] sm:$0xf] }
  0xc9   :  { %2050 = vmatpush.bf16.msrb.mxu0 %v5361_v51  ;;  %2063 = vmatpush.bf16.msrb.mxu1 %v5489_v54  ;;  %v7195_v43 = vld [vmem:[#allocation2 + $0x744] sm:$0xf]  ;;  %v5694_v47 = vld [vmem:[#allocation2 + $0x750] sm:$0xf0]  ;;  %v4884_v54 = vld [vmem:[#allocation2 + $0xe8] sm:$0xf]  ;;  %v5569_v55 = vor.u32 %v7163_v41, %v5566_v42  ;;  %v5125_v42 = vor.u32 %v7054_v34, %v5124_v33 }
  0xca   :  { %v7091_v48 = vld [vmem:[#allocation2 + $0x404] sm:$0xf]  ;;  %v5278_v49 = vld [vmem:[#allocation2 + $0x410] sm:$0xf0]  ;;  %v5697_v60 = vor.u32 %v7195_v43, %v5694_v47  ;;  %v7086_v38 = vld [vmem:[#allocation2 + $0x3d4] sm:$0xf0] }
  0xcb   :  { %2075 = vmatpush.bf16.msrb.mxu2 %v5633_v62  ;;  %v7123_v50 = vld [vmem:[#allocation2 + $0x504] sm:$0xf]  ;;  %v5406_v51 = vld [vmem:[#allocation2 + $0x510] sm:$0xf0]  ;;  %v6982_v41 = vld [vmem:[#allocation2 + $0x94] sm:$0xf0] }
  0xcc   :  { %2088 = vmatpush.bf16.msrb.mxu3 %v5761_v63  ;;  %v7159_v61 = vld [vmem:[#allocation2 + $0x624] sm:$0xf]  ;;  %v5550_v62 = vld [vmem:[#allocation2 + $0x630] sm:$0xf0]  ;;  %v5281_v63 = vor.u32 %v7091_v48, %v5278_v49  ;;  %v5409_v0 = vor.u32 %v7123_v50, %v5406_v51  ;;  %v4964_v43 = vld [vmem:[#allocation2 + $0x188] sm:$0xf] }
  0xcd   :  { %2051 = vmatpush.bf16.msrb.mxu0 %v5345_v2  ;;  %2064 = vmatpush.bf16.msrb.mxu1 %v5473_v3  ;;  %v7191_v1 = vld [vmem:[#allocation2 + $0x724] sm:$0xf]  ;;  %v5678_v2 = vld [vmem:[#allocation2 + $0x730] sm:$0xf0]  ;;  %v4885_v3 = vor.u32 %v6994_v56, %v4884_v54  ;;  %v5553_v7 = vor.u32 %v7159_v61, %v5550_v62  ;;  %v5108_v47 = vld [vmem:[#allocation2 + $0x2a8] sm:$0xf] }
  0xce   :  { %v5534_v14 = vld [vmem:[#allocation2 + $0x610] sm:$0xf0]  ;;  %v7187_v15 = vld [vmem:[#allocation2 + $0x704] sm:$0xf]  ;;  %v7050_v48 = vld [vmem:[#allocation2 + $0x2b4] sm:$0xf0] }
  0xcf   :  { %2076 = vmatpush.bf16.msrb.mxu2 %v5617_v12  ;;  %v5681_v12 = vor.u32 %v7191_v1, %v5678_v2  ;;  %v5236_v50 = vld [vmem:[#allocation2 + $0x3a8] sm:$0xf]  ;;  %v7082_v51 = vld [vmem:[#allocation2 + $0x3b4] sm:$0xf0]  ;;  %v5109_v57 = vor.u32 %v7050_v48, %v5108_v47 }
  0xd0   :  { %2089 = vmatpush.bf16.msrb.mxu3 %v5745_v13  ;;  %v7155_v13 = vld [vmem:[#allocation2 + $0x604] sm:$0xf]  ;;  %v6978_v56 = vld [vmem:[#allocation2 + $0x74] sm:$0xf0]  ;;  %v5237_v61 = vor.u32 %v7082_v51, %v5236_v50  ;;  %v5092_v62 = vld [vmem:[#allocation2 + $0x288] sm:$0xf] }
  0xd1   :  { %2052 = vmatpush.bf16.msrb.mxu0 %v5329_v16  ;;  %2065 = vmatpush.bf16.msrb.mxu1 %v5457_v18  ;;  %v5662_v16 = vld [vmem:[#allocation2 + $0x710] sm:$0xf0]  ;;  %v5140_v18 = vld [vmem:[#allocation2 + $0x2e8] sm:$0xf]  ;;  %v5537_v25 = vor.u32 %v7155_v13, %v5534_v14  ;;  %v7078_v2 = vld [vmem:[#allocation2 + $0x394] sm:$0xf0] }
  0xd2   :  { %v5665_v29 = vor.u32 %v7187_v15, %v5662_v16  ;;  %v5141_v30 = vor.u32 %v7058_v19, %v5140_v18  ;;  %v5220_v1 = vld [vmem:[#allocation2 + $0x388] sm:$0xf]  ;;  %v6974_v5 = vld [vmem:[#allocation2 + $0x54] sm:$0xf0] }
  0xd3   :  { %2077 = vmatpush.bf16.msrb.mxu2 %v5601_v27  ;;  %v4852_v27 = vld [vmem:[#allocation2 + $0xa8] sm:$0xf]  ;;  %v7006_v9 = vld [vmem:[#allocation2 + $0x154] sm:$0xf0]  ;;  %v5221_v10 = vor.u32 %v7078_v2, %v5220_v1 }
  0xd4   :  { %2090 = vmatpush.bf16.msrb.mxu3 %v5729_v28  ;;  %v6986_v28 = vld [vmem:[#allocation2 + $0xb4] sm:$0xf0]  ;;  %v4932_v8 = vld [vmem:[#allocation2 + $0x148] sm:$0xf] }
  0xd5   :  { %2053 = vmatpush.bf16.msrb.mxu0 %v5313_v53  ;;  %2066 = vmatpush.bf16.msrb.mxu1 %v5441_v31  ;;  %v4980_v53 = vld [vmem:[#allocation2 + $0x1a8] sm:$0xf]  ;;  %v7018_v31 = vld [vmem:[#allocation2 + $0x1b4] sm:$0xf0]  ;;  %v4853_v35 = vor.u32 %v6986_v28, %v4852_v27  ;;  %v4933_v18 = vor.u32 %v7006_v9, %v4932_v8 }
  0xd6   :  { %v7042_v13 = vld [vmem:[#allocation2 + $0x274] sm:$0xf0]  ;;  %v5204_v15 = vld [vmem:[#allocation2 + $0x368] sm:$0xf] }
  0xd7   :  { %2078 = vmatpush.bf16.msrb.mxu2 %v5585_v39  ;;  %v4981_v39 = vor.u32 %v7018_v31, %v4980_v53  ;;  %v7074_v16 = vld [vmem:[#allocation2 + $0x374] sm:$0xf0]  ;;  %v4788_v19 = vld [vmem:[#allocation2 + $0x28] sm:$0xf] }
  0xd8   :  { %2091 = vmatpush.bf16.msrb.mxu3 %v5713_v40  ;;  %v4836_v40 = vld [vmem:[#allocation2 + $0x88] sm:$0xf]  ;;  %v7002_v23 = vld [vmem:[#allocation2 + $0x134] sm:$0xf0] }
  0xd9   :  { %2054 = vmatpush.bf16.msrb.mxu0 %v5297_v45  ;;  %2067 = vmatpush.bf16.msrb.mxu1 %v5425_v46  ;;  %v7014_v45 = vld [vmem:[#allocation2 + $0x194] sm:$0xf0]  ;;  %v5253_v46 = vor.u32 %v7086_v38, %v5252_v36  ;;  %v4837_v49 = vor.u32 %v6982_v41, %v4836_v40  ;;  %v4916_v22 = vld [vmem:[#allocation2 + $0x128] sm:$0xf] }
  0xda   :  { %v4965_v54 = vor.u32 %v7014_v45, %v4964_v43  ;;  %v5060_v27 = vld [vmem:[#allocation2 + $0x248] sm:$0xf]  ;;  %v7038_v28 = vld [vmem:[#allocation2 + $0x254] sm:$0xf0] }
  0xdb   :  { %2079 = vmatpush.bf16.msrb.mxu2 %v5569_v55  ;;  %v4820_v55 = vld [vmem:[#allocation2 + $0x68] sm:$0xf]  ;;  %v7070_v53 = vld [vmem:[#allocation2 + $0x354] sm:$0xf0]  ;;  %v5061_v36 = vor.u32 %v7038_v28, %v5060_v27 }
  0xdc   :  { %2092 = vmatpush.bf16.msrb.mxu3 %v5697_v60  ;;  %v7010_v60 = vld [vmem:[#allocation2 + $0x174] sm:$0xf0]  ;;  %v4772_v31 = vld [vmem:[#allocation2 + $0x8] sm:$0xf] }
  0xdd   :  { %2055 = vmatpush.bf16.msrb.mxu0 %v5281_v63  ;;  %2068 = vmatpush.bf16.msrb.mxu1 %v5409_v0  ;;  %v7046_v63 = vld [vmem:[#allocation2 + $0x294] sm:$0xf0]  ;;  %v4821_v0 = vor.u32 %v6978_v56, %v4820_v55  ;;  %v4900_v34 = vld [vmem:[#allocation2 + $0x108] sm:$0xf] }
  0xde   :  { %v6966_v33 = vld [vmem:[#allocation2 + $0x14] sm:$0xf0]  ;;  %v5396_v38 = vld [vmem:[#allocation2 + $0x4e8] sm:$0xf] }
  0xdf   :  { %2080 = vmatpush.bf16.msrb.mxu2 %v5553_v7  ;;  %v5093_v7 = vor.u32 %v7046_v63, %v5092_v62  ;;  %v5524_v40 = vld [vmem:[#allocation2 + $0x5e8] sm:$0xf]  ;;  %v7034_v45 = vld [vmem:[#allocation2 + $0x234] sm:$0xf0] }
  0xe0   :  { %2093 = vmatpush.bf16.msrb.mxu3 %v5681_v12  ;;  %2056 = vmatmul.bf16.vlgmr.msrb.gmra.mxu0 %v7841_v17  ;;  %v5076_v12 = vld [vmem:[#allocation2 + $0x268] sm:$0xf]  ;;  %v7066_v48 = vld [vmem:[#allocation2 + $0x334] sm:$0xf0] }
  0xe1   :  { %2100 = vmatpush.bf16.msra.mxu0 %v4885_v3  ;;  %2113 = vmatpush.bf16.msra.mxu1 %v5013_v4  ;;  %v4949_v3 = vor.u32 %v7010_v60, %v4948_v58  ;;  %v4804_v4 = vld [vmem:[#allocation2 + $0x48] sm:$0xf]  ;;  %v7118_v56 = vld [vmem:[#allocation2 + $0x4d4] sm:$0xf0] }
  0xe2   :  { %2069 = vmatmul.bf16.vlgmr.msrb.gmra.mxu1 %v7843_v24  ;;  %v4805_v14 = vor.u32 %v6974_v5, %v4804_v4  ;;  %v5044_v43 = vld [vmem:[#allocation2 + $0x228] sm:$0xf]  ;;  %v7150_v58 = vld [vmem:[#allocation2 + $0x5d4] sm:$0xf0] }
  0xe3   :  { %2081 = vmatpush.bf16.msrb.mxu2 %v5537_v25  ;;  %v5205_v25 = vor.u32 %v7074_v16, %v5204_v15  ;;  %v5172_v47 = vld [vmem:[#allocation2 + $0x328] sm:$0xf]  ;;  %v5045_v55 = vor.u32 %v7034_v45, %v5044_v43  ;;  %v7030_v62 = vld [vmem:[#allocation2 + $0x214] sm:$0xf0] }
  0xe4   :  { %2094 = vmatpush.bf16.msrb.mxu3 %v5665_v29  ;;  %v5380_v51 = vld [vmem:[#allocation2 + $0x4c8] sm:$0xf]  ;;  %v5173_v60 = vor.u32 %v7066_v48, %v5172_v47  ;;  %v7186_v2 = vld [vmem:[#allocation2 + $0x6f4] sm:$0xf0] }
  0xe5   :  { %2101 = vmatpush.bf16.msra.mxu0 %v4869_v20  ;;  %2114 = vmatpush.bf16.msra.mxu1 %v4997_v21  ;;  %v6970_v20 = vld [vmem:[#allocation2 + $0x34] sm:$0xf0]  ;;  %v5077_v21 = vor.u32 %v7042_v13, %v5076_v12  ;;  %v5156_v63 = vld [vmem:[#allocation2 + $0x308] sm:$0xf] }
  0xe6   :  { %2082 = vmatmul.bf16.vlgmr.msrb.gmra.mxu2 %v7847_v52  ;;  %v4789_v29 = vor.u32 %v6970_v20, %v4788_v19  ;;  %v5652_v1 = vld [vmem:[#allocation2 + $0x6e8] sm:$0xf]  ;;  %v7218_v5 = vld [vmem:[#allocation2 + $0x7f4] sm:$0xf0] }
  0xe7   :  { %2126 = vmatpush.bf16.msra.mxu2 %v5141_v30  ;;  %2095 = vmatmul.bf16.vlgmr.msrb.gmra.mxu3 %v7849_v59  ;;  %v5188_v30 = vld [vmem:[#allocation2 + $0x348] sm:$0xf]  ;;  %v5653_v13 = vor.u32 %v7186_v2, %v5652_v1  ;;  %v7146_v15 = vld [vmem:[#allocation2 + $0x5b4] sm:$0xf0] }
  0xe8   :  { %2139 = vmatpush.bf16.msra.mxu3 %v5269_v32  ;;  %v4917_v32 = vor.u32 %v7002_v23, %v4916_v22  ;;  %v5189_v41 = vor.u32 %v7070_v53, %v5188_v30  ;;  %v5780_v4 = vld [vmem:[#allocation2 + $0x7e8] sm:$0xf]  ;;  %v7182_v19 = vld [vmem:[#allocation2 + $0x6d4] sm:$0xf0] }
  0xe9   :  { %2102 = vmatpush.bf16.msra.mxu0 %v4853_v35  ;;  %2115 = vmatpush.bf16.msra.mxu1 %v4981_v39  ;;  %v6998_v35 = vld [vmem:[#allocation2 + $0x114] sm:$0xf0]  ;;  %v5364_v9 = vld [vmem:[#allocation2 + $0x4a8] sm:$0xf]  ;;  %v5781_v16 = vor.u32 %v7218_v5, %v5780_v4 }
  0xea   :  { %v7122_v39 = vld [vmem:[#allocation2 + $0x4f4] sm:$0xf0]  ;;  %v5604_v45 = vld [vmem:[#allocation2 + $0x688] sm:$0xf] }
  0xeb   :  { %2127 = vmatpush.bf16.msra.mxu2 %v5125_v42  ;;  %v7154_v42 = vld [vmem:[#allocation2 + $0x5f4] sm:$0xf0]  ;;  %v5397_v50 = vor.u32 %v7122_v39, %v5396_v38  ;;  %v5332_v38 = vld [vmem:[#allocation2 + $0x468] sm:$0xf] }
  0xec   :  { %2140 = vmatpush.bf16.msra.mxu3 %v5253_v46  ;;  %v4773_v46 = vor.u32 %v6966_v33, %v4772_v31  ;;  %v7214_v22 = vld [vmem:[#allocation2 + $0x7d4] sm:$0xf0]  ;;  %v5620_v31 = vld [vmem:[#allocation2 + $0x6a8] sm:$0xf] }
  0xed   :  { %2103 = vmatpush.bf16.msra.mxu0 %v4837_v49  ;;  %2116 = vmatpush.bf16.msra.mxu1 %v4965_v54  ;;  %v4901_v49 = vor.u32 %v6998_v35, %v4900_v34  ;;  %v5525_v54 = vor.u32 %v7154_v42, %v5524_v40  ;;  %v7110_v27 = vld [vmem:[#allocation2 + $0x494] sm:$0xf0]  ;;  %v5748_v34 = vld [vmem:[#allocation2 + $0x7a8] sm:$0xf] }
  0xee   :  { %v7142_v30 = vld [vmem:[#allocation2 + $0x594] sm:$0xf0]  ;;  %v5732_v48 = vld [vmem:[#allocation2 + $0x788] sm:$0xf] }
  0xef   :  { %2128 = vmatpush.bf16.msra.mxu2 %v5109_v57  ;;  %v5508_v57 = vld [vmem:[#allocation2 + $0x5c8] sm:$0xf]  ;;  %v7210_v35 = vld [vmem:[#allocation2 + $0x7b4] sm:$0xf0] }
  0xf0   :  { %2141 = vmatpush.bf16.msra.mxu3 %v5237_v61  ;;  %v5028_v61 = vld [vmem:[#allocation2 + $0x208] sm:$0xf]  ;;  %v7106_v39 = vld [vmem:[#allocation2 + $0x474] sm:$0xf0]  ;;  %v5749_v43 = vor.u32 %v7210_v35, %v5748_v34  ;;  %v6988_v35 = vld [vmem:[#allocation2 + $0xcc] sm:$0xf] }
  0xf1   :  { %2104 = vmatpush.bf16.msra.mxu0 %v4821_v0  ;;  %2117 = vmatpush.bf16.msra.mxu1 %v4949_v3  ;;  %v7062_v0 = vld [vmem:[#allocation2 + $0x314] sm:$0xf0]  ;;  %v5381_v3 = vor.u32 %v7118_v56, %v5380_v51  ;;  %v5029_v8 = vor.u32 %v7030_v62, %v5028_v61  ;;  %v5333_v47 = vor.u32 %v7106_v39, %v5332_v38  ;;  %v5316_v51 = vld [vmem:[#allocation2 + $0x448] sm:$0xf]  ;;  %v4870_v39 = vld [vmem:[#allocation2 + $0xd8] sm:$0xf0] }
  0xf2   :  { %v5157_v12 = vor.u32 %v7062_v0, %v5156_v63  ;;  %v7138_v42 = vld [vmem:[#allocation2 + $0x574] sm:$0xf0]  ;;  %v5444_v56 = vld [vmem:[#allocation2 + $0x548] sm:$0xf] }
  0xf3   :  { %2129 = vmatpush.bf16.msra.mxu2 %v5093_v7  ;;  %v5509_v7 = vor.u32 %v7150_v58, %v5508_v57  ;;  %v7134_v57 = vld [vmem:[#allocation2 + $0x554] sm:$0xf0]  ;;  %v5716_v63 = vld [vmem:[#allocation2 + $0x768] sm:$0xf] }
  0xf4   :  { %2142 = vmatpush.bf16.msra.mxu3 %v5221_v10  ;;  %v7114_v10 = vld [vmem:[#allocation2 + $0x4b4] sm:$0xf0]  ;;  %v5445_v1 = vor.u32 %v7134_v57, %v5444_v56  ;;  %v5300_v2 = vld [vmem:[#allocation2 + $0x428] sm:$0xf]  ;;  %v6984_v57 = vld [vmem:[#allocation2 + $0xac] sm:$0xf] }
  0xf5   :  { %2105 = vmatpush.bf16.msra.mxu0 %v4805_v14  ;;  %2118 = vmatpush.bf16.msra.mxu1 %v4933_v18  ;;  %v5492_v14 = vld [vmem:[#allocation2 + $0x5a8] sm:$0xf]  ;;  %v5365_v20 = vor.u32 %v7114_v10, %v5364_v9  ;;  %v7170_v61 = vld [vmem:[#allocation2 + $0x674] sm:$0xf0] }
  0xf6   :  { %v5636_v18 = vld [vmem:[#allocation2 + $0x6c8] sm:$0xf]  ;;  %v5493_v23 = vor.u32 %v7146_v15, %v5492_v14  ;;  %v7202_v0 = vld [vmem:[#allocation2 + $0x774] sm:$0xf0] }
  0xf7   :  { %2130 = vmatpush.bf16.msra.mxu2 %v5077_v21  ;;  %v5764_v21 = vld [vmem:[#allocation2 + $0x7c8] sm:$0xf]  ;;  %v5637_v28 = vor.u32 %v7182_v19, %v5636_v18  ;;  %v7166_v10 = vld [vmem:[#allocation2 + $0x654] sm:$0xf0] }
  0xf8   :  { %2143 = vmatpush.bf16.msra.mxu3 %v5205_v25  ;;  %v5348_v25 = vld [vmem:[#allocation2 + $0x488] sm:$0xf]  ;;  %v5765_v53 = vor.u32 %v7214_v22, %v5764_v21  ;;  %v7198_v14 = vld [vmem:[#allocation2 + $0x754] sm:$0xf0]  ;;  %v6992_v22 = vld [vmem:[#allocation2 + $0xec] sm:$0xf] }
  0xf9   :  { %2106 = vmatpush.bf16.msra.mxu0 %v4789_v29  ;;  %2119 = vmatpush.bf16.msra.mxu1 %v4917_v32  ;;  %v5476_v29 = vld [vmem:[#allocation2 + $0x588] sm:$0xf]  ;;  %v7178_v32 = vld [vmem:[#allocation2 + $0x6b4] sm:$0xf0]  ;;  %v5349_v33 = vor.u32 %v7110_v27, %v5348_v25  ;;  %v7024_v25 = vld [vmem:[#allocation2 + $0x1ec] sm:$0xf] }
  0xfa   :  { %v5621_v40 = vor.u32 %v7178_v32, %v5620_v31  ;;  %v5428_v5 = vld [vmem:[#allocation2 + $0x528] sm:$0xf]  ;;  %v7094_v18 = vld [vmem:[#allocation2 + $0x414] sm:$0xf0] }
  0xfb   :  { %2131 = vmatpush.bf16.msra.mxu2 %v5061_v36  ;;  %v5477_v36 = vor.u32 %v7142_v30, %v5476_v29  ;;  %v5572_v9 = vld [vmem:[#allocation2 + $0x648] sm:$0xf]  ;;  %v7162_v30 = vld [vmem:[#allocation2 + $0x634] sm:$0xf0] }
  0xfc   :  { %2144 = vmatpush.bf16.msra.mxu3 %v5189_v41  ;;  %v5460_v41 = vld [vmem:[#allocation2 + $0x568] sm:$0xf]  ;;  %v5573_v21 = vor.u32 %v7166_v10, %v5572_v9  ;;  %v7194_v32 = vld [vmem:[#allocation2 + $0x734] sm:$0xf0]  ;;  %v4838_v9 = vld [vmem:[#allocation2 + $0x98] sm:$0xf0] }
  0xfd   :  { %2107 = vmatpush.bf16.msra.mxu0 %v4773_v46  ;;  %2120 = vmatpush.bf16.msra.mxu1 %v4901_v49  ;;  %v7174_v46 = vld [vmem:[#allocation2 + $0x694] sm:$0xf0]  ;;  %v5284_v15 = vld [vmem:[#allocation2 + $0x408] sm:$0xf] }
  0xfe   :  { %v7206_v49 = vld [vmem:[#allocation2 + $0x794] sm:$0xf0]  ;;  %v5412_v19 = vld [vmem:[#allocation2 + $0x508] sm:$0xf] }
  0xff   :  { %2132 = vmatpush.bf16.msra.mxu2 %v5045_v55  ;;  %v5605_v55 = vor.u32 %v7174_v46, %v5604_v45  ;;  %v5733_v58 = vor.u32 %v7206_v49, %v5732_v48  ;;  %v5556_v29 = vld [vmem:[#allocation2 + $0x628] sm:$0xf]  ;;  %v7158_v45 = vld [vmem:[#allocation2 + $0x614] sm:$0xf0]  ;;  %v7056_v48 = vld [vmem:[#allocation2 + $0x2ec] sm:$0xf] }
 0x100   :  { %2145 = vmatpush.bf16.msra.mxu3 %v5173_v60  ;;  %2108 = vmatmul.bf16.vlgmr.msra.gmra.mxu0 %v7825_v6  ;;  %v5588_v60 = vld [vmem:[#allocation2 + $0x668] sm:$0xf]  ;;  %v5557_v38 = vor.u32 %v7162_v30, %v5556_v29  ;;  %v5142_v49 = vld [vmem:[#allocation2 + $0x2f8] sm:$0xf0]  ;;  %v7008_v29 = vld [vmem:[#allocation2 + $0x16c] sm:$0xf] }
 0x101   :  { %2152 = vmatpush.bf16.msrb.mxu0 %v5397_v50  ;;  %2165 = vmatpush.bf16.msrb.mxu1 %v5525_v54  ;;  %v5461_v50 = vor.u32 %v7138_v42, %v5460_v41  ;;  %v7102_v54 = vld [vmem:[#allocation2 + $0x454] sm:$0xf0]  ;;  %v5589_v4 = vor.u32 %v7170_v61, %v5588_v60  ;;  %v5684_v31 = vld [vmem:[#allocation2 + $0x728] sm:$0xf]  ;;  %v4998_v41 = vld [vmem:[#allocation2 + $0x1d8] sm:$0xf0]  ;;  %v5145_v61 = vor.u32 %v7056_v48, %v5142_v49 }
 0x102   :  { %2121 = vmatmul.bf16.vlgmr.msra.gmra.mxu1 %v7827_v11  ;;  %v5317_v62 = vor.u32 %v7102_v54, %v5316_v51  ;;  %v5685_v42 = vor.u32 %v7194_v32, %v5684_v31  ;;  %v5668_v46 = vld [vmem:[#allocation2 + $0x708] sm:$0xf]  ;;  %v7088_v51 = vld [vmem:[#allocation2 + $0x3ec] sm:$0xf]  ;;  %v5270_v54 = vld [vmem:[#allocation2 + $0x3f8] sm:$0xf0] }
 0x103   :  { %2133 = vmatpush.bf16.msra.mxu2 %v5029_v8  ;;  %v5717_v8 = vor.u32 %v7202_v0, %v5716_v63  ;;  %v4982_v63 = vld [vmem:[#allocation2 + $0x1b8] sm:$0xf0]  ;;  %v5273_v0 = vor.u32 %v7088_v51, %v5270_v54  ;;  %v7044_v31 = vld [vmem:[#allocation2 + $0x28c] sm:$0xf] }
 0x104   :  { %2146 = vmatpush.bf16.msra.mxu3 %v5157_v12  ;;  %v4950_v30 = vld [vmem:[#allocation2 + $0x178] sm:$0xf0] }
 0x105   :  { %2153 = vmatpush.bf16.msrb.mxu0 %v5381_v3  ;;  %2166 = vmatpush.bf16.msrb.mxu1 %v5509_v7  ;;  %v7098_v3 = vld [vmem:[#allocation2 + $0x434] sm:$0xf0]  ;;  %v5094_v32 = vld [vmem:[#allocation2 + $0x298] sm:$0xf0] }
 0x106   :  { %2134 = vmatmul.bf16.vlgmr.msra.gmra.mxu2 %v7833_v37  ;;  %v7130_v7 = vld [vmem:[#allocation2 + $0x534] sm:$0xf0]  ;;  %v5301_v12 = vor.u32 %v7098_v3, %v5300_v2  ;;  %v5126_v2 = vld [vmem:[#allocation2 + $0x2d8] sm:$0xf0] }
 0x107   :  { %2178 = vmatpush.bf16.msrb.mxu2 %v5653_v13  ;;  %2147 = vmatmul.bf16.vlgmr.msra.gmra.mxu3 %v7835_v44  ;;  %v5700_v13 = vld [vmem:[#allocation2 + $0x748] sm:$0xf]  ;;  %v5206_v51 = vld [vmem:[#allocation2 + $0x378] sm:$0xf0] }
 0x108   :  { %2191 = vmatpush.bf16.msrb.mxu3 %v5781_v16  ;;  %v5429_v16 = vor.u32 %v7130_v7, %v5428_v5  ;;  %v5701_v27 = vor.u32 %v7198_v14, %v5700_v13  ;;  %v5254_v5 = vld [vmem:[#allocation2 + $0x3d8] sm:$0xf0] }
 0x109   :  { %2154 = vmatpush.bf16.msrb.mxu0 %v5365_v20  ;;  %2167 = vmatpush.bf16.msrb.mxu1 %v5493_v23  ;;  %v7126_v20 = vld [vmem:[#allocation2 + $0x514] sm:$0xf0]  ;;  %v4886_v23 = vld [vmem:[#allocation2 + $0xf8] sm:$0xf0] }
 0x10a   :  { %v4889_v34 = vor.u32 %v6992_v22, %v4886_v23  ;;  %v4966_v13 = vld [vmem:[#allocation2 + $0x198] sm:$0xf0] }
 0x10b   :  { %2179 = vmatpush.bf16.msrb.mxu2 %v5637_v28  ;;  %v5014_v28 = vld [vmem:[#allocation2 + $0x1f8] sm:$0xf0] }
 0x10c   :  { %2192 = vmatpush.bf16.msrb.mxu3 %v5765_v53  ;;  %v5285_v53 = vor.u32 %v7094_v18, %v5284_v15  ;;  %v5110_v18 = vld [vmem:[#allocation2 + $0x2b8] sm:$0xf0] }
 0x10d   :  { %2155 = vmatpush.bf16.msrb.mxu0 %v5349_v33  ;;  %2168 = vmatpush.bf16.msrb.mxu1 %v5477_v36  ;;  %v5413_v33 = vor.u32 %v7126_v20, %v5412_v19  ;;  %v5017_v36 = vor.u32 %v7024_v25, %v5014_v28  ;;  %v5238_v22 = vld [vmem:[#allocation2 + $0x3b8] sm:$0xf0]  ;;  %v6976_v25 = vld [vmem:[#allocation2 + $0x6c] sm:$0xf] }
 0x10f   :  { %2180 = vmatpush.bf16.msrb.mxu2 %v5621_v40  ;;  %v7020_v40 = vld [vmem:[#allocation2 + $0x1cc] sm:$0xf] }
 0x110   :  { %2193 = vmatpush.bf16.msrb.mxu3 %v5749_v43  ;;  %v5540_v43 = vld [vmem:[#allocation2 + $0x608] sm:$0xf] }
 0x111   :  { %2156 = vmatpush.bf16.msrb.mxu0 %v5333_v47  ;;  %2169 = vmatpush.bf16.msrb.mxu1 %v5461_v50  ;;  %v7190_v47 = vld [vmem:[#allocation2 + $0x714] sm:$0xf0]  ;;  %v4873_v50 = vor.u32 %v6988_v35, %v4870_v39  ;;  %v5541_v56 = vor.u32 %v7158_v45, %v5540_v43  ;;  %v5222_v35 = vld [vmem:[#allocation2 + $0x398] sm:$0xf0] }
 0x112   :  { %v5669_v60 = vor.u32 %v7190_v47, %v5668_v46  ;;  %v4806_v39 = vld [vmem:[#allocation2 + $0x58] sm:$0xf0]  ;;  %v7040_v46 = vld [vmem:[#allocation2 + $0x26c] sm:$0xf] }
 0x113   :  { %2181 = vmatpush.bf16.msrb.mxu2 %v5605_v55  ;;  %v5001_v55 = vor.u32 %v7020_v40, %v4998_v41  ;;  %v5097_v40 = vor.u32 %v7044_v31, %v5094_v32  ;;  %v7004_v41 = vld [vmem:[#allocation2 + $0x14c] sm:$0xf]  ;;  %v5078_v47 = vld [vmem:[#allocation2 + $0x278] sm:$0xf0] }
 0x114   :  { %2194 = vmatpush.bf16.msrb.mxu3 %v5733_v58  ;;  %v4854_v58 = vld [vmem:[#allocation2 + $0xb8] sm:$0xf0]  ;;  %v7116_v31 = vld [vmem:[#allocation2 + $0x4cc] sm:$0xf] }
 0x115   :  { %2157 = vmatpush.bf16.msrb.mxu0 %v5317_v62  ;;  %2170 = vmatpush.bf16.msrb.mxu1 %v5445_v1  ;;  %v7016_v62 = vld [vmem:[#allocation2 + $0x1ac] sm:$0xf]  ;;  %v4857_v3 = vor.u32 %v6984_v57, %v4854_v58  ;;  %v5081_v57 = vor.u32 %v7040_v46, %v5078_v47  ;;  %v5654_v46 = vld [vmem:[#allocation2 + $0x6f8] sm:$0xf0] }
 0x116   :  { %v7052_v1 = vld [vmem:[#allocation2 + $0x2cc] sm:$0xf]  ;;  %v4985_v7 = vor.u32 %v7016_v62, %v4982_v63  ;;  %v5062_v63 = vld [vmem:[#allocation2 + $0x258] sm:$0xf0] }
 0x117   :  { %2182 = vmatpush.bf16.msrb.mxu2 %v5589_v4  ;;  %v7084_v4 = vld [vmem:[#allocation2 + $0x3cc] sm:$0xf]  ;;  %v5129_v10 = vor.u32 %v7052_v1, %v5126_v2 }
 0x118   :  { %2195 = vmatpush.bf16.msrb.mxu3 %v5717_v8  ;;  %v6980_v8 = vld [vmem:[#allocation2 + $0x8c] sm:$0xf]  ;;  %v5257_v15 = vor.u32 %v7084_v4, %v5254_v5 }
 0x119   :  { %2158 = vmatpush.bf16.msrb.mxu0 %v5301_v12  ;;  %2171 = vmatpush.bf16.msrb.mxu1 %v5429_v16  ;;  %v7012_v12 = vld [vmem:[#allocation2 + $0x18c] sm:$0xf]  ;;  %v4841_v20 = vor.u32 %v6980_v8, %v4838_v9  ;;  %v4774_v8 = vld [vmem:[#allocation2 + $0x18] sm:$0xf0] }
 0x11a   :  { %v7048_v16 = vld [vmem:[#allocation2 + $0x2ac] sm:$0xf]  ;;  %v4969_v23 = vor.u32 %v7012_v12, %v4966_v13 }
 0x11b   :  { %2183 = vmatpush.bf16.msrb.mxu2 %v5573_v21  ;;  %v7867_v14 = vpop.f32.mrf.mxu0  ;;  %v7870_v19 = vpop.f32.mrf.mxu1  ;;  %v7080_v21 = vld [vmem:[#allocation2 + $0x3ac] sm:$0xf]  ;;  %v5113_v28 = vor.u32 %v7048_v16, %v5110_v18 }
 0x11c   :  { %2196 = vmatpush.bf16.msrb.mxu3 %v5701_v27  ;;  %v4822_v27 = vld [vmem:[#allocation2 + $0x78] sm:$0xf0]  ;;  %v7000_v58 = vld [vmem:[#allocation2 + $0x12c] sm:$0xf] }
 0x11d   :  { %2159 = vmatpush.bf16.msrb.mxu0 %v5285_v53  ;;  %2172 = vmatpush.bf16.msrb.mxu1 %v5413_v33  ;;  %v5241_v53 = vor.u32 %v7080_v21, %v5238_v22  ;;  %v4825_v33 = vor.u32 %v6976_v25, %v4822_v27  ;;  %v7036_v62 = vld [vmem:[#allocation2 + $0x24c] sm:$0xf]  ;;  %v5526_v21 = vld [vmem:[#allocation2 + $0x5f8] sm:$0xf0] }
 0x11e   :  { %v7068_v2 = vld [vmem:[#allocation2 + $0x34c] sm:$0xf]  ;;  %v5065_v12 = vor.u32 %v7036_v62, %v5062_v63  ;;  %v5494_v62 = vld [vmem:[#allocation2 + $0x5b8] sm:$0xf0] }
 0x11f   :  { %2184 = vmatpush.bf16.msrb.mxu2 %v5557_v38  ;;  %v6972_v38 = vld [vmem:[#allocation2 + $0x4c] sm:$0xf] }
 0x120   :  { %2197 = vmatpush.bf16.msrb.mxu3 %v5685_v42  ;;  %2160 = vmatmul.bf16.vlgmr.msrb.gmra.mxu0 %v7841_v17  ;;  %v4934_v42 = vld [vmem:[#allocation2 + $0x158] sm:$0xf0]  ;;  %v4809_v49 = vor.u32 %v6972_v38, %v4806_v39  ;;  %v6964_v4 = vld [vmem:[#allocation2 + $0xc] sm:$0xf] }
 0x121   :  { %2204 = vmatpush.bf16.msra.mxu0 %v4889_v34  ;;  %2217 = vmatpush.bf16.msra.mxu1 %v5017_v36  ;;  %v7076_v34 = vld [vmem:[#allocation2 + $0x38c] sm:$0xf]  ;;  %v4953_v36 = vor.u32 %v7008_v29, %v4950_v30  ;;  %v4937_v54 = vor.u32 %v7004_v41, %v4934_v42  ;;  %v4777_v27 = vor.u32 %v6964_v4, %v4774_v8  ;;  %v5174_v29 = vld [vmem:[#allocation2 + $0x338] sm:$0xf0] }
 0x122   :  { %2173 = vmatmul.bf16.vlgmr.msrb.gmra.mxu1 %v7843_v24  ;;  %v5225_v45 = vor.u32 %v7076_v34, %v5222_v35  ;;  %v6996_v9 = vld [vmem:[#allocation2 + $0x10c] sm:$0xf]  ;;  %v5382_v34 = vld [vmem:[#allocation2 + $0x4d8] sm:$0xf0] }
 0x123   :  { %2185 = vmatpush.bf16.msrb.mxu2 %v5541_v56  ;;  %v1903_v43 = vpop.f32.mrf.mxu0  ;;  %v1916_v48 = vpop.f32.mrf.mxu1  ;;  %v4790_v56 = vld [vmem:[#allocation2 + $0x38] sm:$0xf0]  ;;  %v7120_v13 = vld [vmem:[#allocation2 + $0x4ec] sm:$0xf] }
 0x124   :  { %2198 = vmatpush.bf16.msrb.mxu3 %v5669_v60  ;;  %v4918_v60 = vld [vmem:[#allocation2 + $0x138] sm:$0xf0]  ;;  %v7152_v16 = vld [vmem:[#allocation2 + $0x5ec] sm:$0xf]  ;;  %v5385_v48 = vor.u32 %v7116_v31, %v5382_v34 }
 0x125   :  { %2205 = vmatpush.bf16.msra.mxu0 %v4873_v50  ;;  %2218 = vmatpush.bf16.msra.mxu1 %v5001_v55  ;;  %v7072_v50 = vld [vmem:[#allocation2 + $0x36c] sm:$0xf]  ;;  %v5529_v32 = vor.u32 %v7152_v16, %v5526_v21  ;;  %v5158_v43 = vld [vmem:[#allocation2 + $0x318] sm:$0xf0] }
 0x126   :  { %2186 = vmatmul.bf16.vlgmr.msrb.gmra.mxu2 %v7847_v52  ;;  %v6968_v55 = vld [vmem:[#allocation2 + $0x2c] sm:$0xf]  ;;  %v5766_v8 = vld [vmem:[#allocation2 + $0x7d8] sm:$0xf0] }
 0x127   :  { %2230 = vmatpush.bf16.msra.mxu2 %v5145_v61  ;;  %2199 = vmatmul.bf16.vlgmr.msrb.gmra.mxu3 %v7849_v59  ;;  %v5209_v61 = vor.u32 %v7072_v50, %v5206_v51  ;;  %v4793_v1 = vor.u32 %v6968_v55, %v4790_v56  ;;  %v7032_v22 = vld [vmem:[#allocation2 + $0x22c] sm:$0xf]  ;;  %v5782_v50 = vld [vmem:[#allocation2 + $0x7f8] sm:$0xf0] }
 0x128   :  { %2243 = vmatpush.bf16.msra.mxu3 %v5273_v0  ;;  %v7148_v35 = vld [vmem:[#allocation2 + $0x5cc] sm:$0xf]  ;;  %v5366_v56 = vld [vmem:[#allocation2 + $0x4b8] sm:$0xf0] }
 0x129   :  { %2206 = vmatpush.bf16.msra.mxu0 %v4857_v3  ;;  %2219 = vmatpush.bf16.msra.mxu1 %v4985_v7  ;;  %v7873_v0 = vpop.f32.mrf.mxu2  ;;  %v5190_v3 = vld [vmem:[#allocation2 + $0x358] sm:$0xf0]  ;;  %v7875_v5 = vpop.f32.mrf.mxu3  ;;  %v4921_v7 = vor.u32 %v7000_v58, %v4918_v60  ;;  %v7028_v39 = vld [vmem:[#allocation2 + $0x20c] sm:$0xf] }
 0x12a   :  { %v7060_v41 = vld [vmem:[#allocation2 + $0x30c] sm:$0xf]  ;;  %v5622_v21 = vld [vmem:[#allocation2 + $0x6b8] sm:$0xf0] }
 0x12b   :  { %2231 = vmatpush.bf16.msra.mxu2 %v5129_v10  ;;  %v4902_v10 = vld [vmem:[#allocation2 + $0x118] sm:$0xf0]  ;;  %v7112_v55 = vld [vmem:[#allocation2 + $0x4ac] sm:$0xf]  ;;  %v5161_v58 = vor.u32 %v7060_v41, %v5158_v43 }
 0x12c   :  { %2244 = vmatpush.bf16.msra.mxu3 %v5257_v15  ;;  %v5398_v15 = vld [vmem:[#allocation2 + $0x4f8] sm:$0xf0]  ;;  %v7877_v18 = vpop.f32.mrf.mxu0  ;;  %v4905_v30 = vor.u32 %v6996_v9, %v4902_v10  ;;  %v5369_v4 = vor.u32 %v7112_v55, %v5366_v56  ;;  %v7108_v10 = vld [vmem:[#allocation2 + $0x48c] sm:$0xf] }
 0x12d   :  { %2207 = vmatpush.bf16.msra.mxu0 %v4841_v20  ;;  %2220 = vmatpush.bf16.msra.mxu1 %v4969_v23  ;;  %v5193_v20 = vor.u32 %v7068_v2, %v5190_v3  ;;  %v5046_v23 = vld [vmem:[#allocation2 + $0x238] sm:$0xf0]  ;;  %v7879_v25 = vpop.f32.mrf.mxu1  ;;  %v7180_v2 = vld [vmem:[#allocation2 + $0x6cc] sm:$0xf] }
 0x12e   :  { %v5638_v3 = vld [vmem:[#allocation2 + $0x6d8] sm:$0xf0] }
 0x12f   :  { %2232 = vmatpush.bf16.msra.mxu2 %v5113_v28  ;;  %v7064_v28 = vld [vmem:[#allocation2 + $0x32c] sm:$0xf]  ;;  %v5318_v43 = vld [vmem:[#allocation2 + $0x458] sm:$0xf0] }
 0x130   :  { %2245 = vmatpush.bf16.msra.mxu3 %v5241_v53  ;;  %v5401_v53 = vor.u32 %v7120_v13, %v5398_v15  ;;  %v5177_v38 = vor.u32 %v7064_v28, %v5174_v29  ;;  %v7140_v13 = vld [vmem:[#allocation2 + $0x58c] sm:$0xf]  ;;  %v5478_v15 = vld [vmem:[#allocation2 + $0x598] sm:$0xf0] }
 0x131   :  { %2208 = vmatpush.bf16.msra.mxu0 %v4825_v33  ;;  %2221 = vmatpush.bf16.msra.mxu1 %v4953_v36  ;;  %v5049_v33 = vor.u32 %v7032_v22, %v5046_v23  ;;  %v5510_v36 = vld [vmem:[#allocation2 + $0x5d8] sm:$0xf0]  ;;  %v1929_v42 = vpop.f32.mrf.mxu2  ;;  %v1942_v47 = vpop.f32.mrf.mxu3  ;;  %v5481_v29 = vor.u32 %v7140_v13, %v5478_v15  ;;  %v7092_v15 = vld [vmem:[#allocation2 + $0x40c] sm:$0xf] }
 0x132   :  { %v5513_v51 = vor.u32 %v7148_v35, %v5510_v36  ;;  %v5750_v28 = vld [vmem:[#allocation2 + $0x7b8] sm:$0xf0]  ;;  %v7172_v36 = vld [vmem:[#allocation2 + $0x68c] sm:$0xf] }
 0x133   :  { %2233 = vmatpush.bf16.msra.mxu2 %v5097_v40  ;;  %v5030_v40 = vld [vmem:[#allocation2 + $0x218] sm:$0xf0]  ;;  %v7100_v42 = vld [vmem:[#allocation2 + $0x44c] sm:$0xf] }
 0x134   :  { %2246 = vmatpush.bf16.msra.mxu3 %v5225_v45  ;;  %v7184_v45 = vld [vmem:[#allocation2 + $0x6ec] sm:$0xf]  ;;  %v5321_v56 = vor.u32 %v7100_v42, %v5318_v43  ;;  %v5702_v13 = vld [vmem:[#allocation2 + $0x758] sm:$0xf0]  ;;  %v5884_v43 = vld [vmem:[#allocation5 + $0xc0] sm:$0xf] }
 0x135   :  { %2209 = vmatpush.bf16.msra.mxu0 %v4809_v49  ;;  %2222 = vmatpush.bf16.msra.mxu1 %v4937_v54  ;;  %v7216_v49 = vld [vmem:[#allocation2 + $0x7ec] sm:$0xf]  ;;  %v5033_v54 = vor.u32 %v7028_v39, %v5030_v40  ;;  %v5657_v60 = vor.u32 %v7184_v45, %v5654_v46  ;;  %v1968_v63 = vpop.f32.mrf.mxu1  ;;  %v7896_v45 = vld [vmem:[%s8162_s4] sm:$0xf] }
 0x136   :  { %v7204_v40 = vld [vmem:[#allocation2 + $0x78c] sm:$0xf]  ;;  %v5302_v63 = vld [vmem:[#allocation2 + $0x438] sm:$0xf0] }
 0x137   :  { %2234 = vmatpush.bf16.msra.mxu2 %v5081_v57  ;;  %v1955_v57 = vpop.f32.mrf.mxu0  ;;  %v7132_v47 = vld [vmem:[#allocation2 + $0x54c] sm:$0xf] }
 0x138   :  { %2247 = vmatpush.bf16.msra.mxu3 %v5209_v61  ;;  %v7144_v61 = vld [vmem:[#allocation2 + $0x5ac] sm:$0xf] }
 0x139   :  { %2210 = vmatpush.bf16.msra.mxu0 %v4793_v1  ;;  %2223 = vmatpush.bf16.msra.mxu1 %v4921_v7  ;;  %v5785_v1 = vor.u32 %v7216_v49, %v5782_v50  ;;  %v7212_v7 = vld [vmem:[#allocation2 + $0x7cc] sm:$0xf]  ;;  %v5497_v9 = vor.u32 %v7144_v61, %v5494_v62  ;;  %v7885_v22 = vpop.f32.mrf.mxu3 }
 0x13a   :  { %v5769_v16 = vor.u32 %v7212_v7, %v5766_v8  ;;  %v7200_v57 = vld [vmem:[#allocation2 + $0x76c] sm:$0xf] }
 0x13b   :  { %2235 = vmatpush.bf16.msra.mxu2 %v5065_v12  ;;  %v5641_v12 = vor.u32 %v7180_v2, %v5638_v3  ;;  %v7096_v62 = vld [vmem:[#allocation2 + $0x42c] sm:$0xf]  ;;  %v5430_v3 = vld [vmem:[#allocation2 + $0x538] sm:$0xf0] }
 0x13c   :  { %2248 = vmatpush.bf16.msra.mxu3 %v5193_v20  ;;  %v7176_v20 = vld [vmem:[#allocation2 + $0x6ac] sm:$0xf] }
 0x13d   :  { %2211 = vmatpush.bf16.msra.mxu0 %v4777_v27  ;;  %2224 = vmatpush.bf16.msra.mxu1 %v4905_v30  ;;  %v7208_v27 = vld [vmem:[#allocation2 + $0x7ac] sm:$0xf]  ;;  %v5625_v31 = vor.u32 %v7176_v20, %v5622_v21  ;;  %v5286_v21 = vld [vmem:[#allocation2 + $0x418] sm:$0xf0] }
 0x13e   :  { %v7104_v30 = vld [vmem:[#allocation2 + $0x46c] sm:$0xf]  ;;  %v5753_v35 = vor.u32 %v7208_v27, %v5750_v28  ;;  %v5414_v27 = vld [vmem:[#allocation2 + $0x518] sm:$0xf0] }
 0x13f   :  { %2236 = vmatpush.bf16.msra.mxu2 %v5049_v33  ;;  %v5462_v33 = vld [vmem:[#allocation2 + $0x578] sm:$0xf0]  ;;  %v7889_v34 = vpop.f32.mrf.mxu0  ;;  %v7128_v2 = vld [vmem:[#allocation2 + $0x52c] sm:$0xf] }
 0x140   :  { %2249 = vmatpush.bf16.msra.mxu3 %v5177_v38  ;;  %2212 = vmatmul.bf16.vlgmr.msra.gmra.mxu0 %v7825_v6  ;;  %v5350_v6 = vld [vmem:[#allocation2 + $0x498] sm:$0xf0]  ;;  %v7891_v38 = vpop.f32.mrf.mxu1  ;;  %v7164_v8 = vld [vmem:[#allocation2 + $0x64c] sm:$0xf]  ;;  %v5433_v20 = vor.u32 %v7128_v2, %v5430_v3  ;;  %v7241_v2 = vld [vmem:[#allocation5 + $0xac] sm:$0xf0] }
 0x141   :  { %2256 = vmatpush.bf16.msrb.mxu0 %v5401_v53  ;;  %2269 = vmatpush.bf16.msrb.mxu1 %v5529_v32  ;;  %v5353_v23 = vor.u32 %v7108_v10, %v5350_v6  ;;  %v5334_v53 = vld [vmem:[#allocation2 + $0x478] sm:$0xf0]  ;;  %v7136_v32 = vld [vmem:[#allocation2 + $0x56c] sm:$0xf]  ;;  %v1994_v55 = vpop.f32.mrf.mxu3  ;;  %v5305_v6 = vor.u32 %v7096_v62, %v5302_v63  ;;  %v605_v3 = vperm.slane %v7896_v45, 1 }
 0x142   :  { %2225 = vmatmul.bf16.vlgmr.msra.gmra.mxu1 %v7827_v11  ;;  %v7883_v11 = vpop.f32.mrf.mxu2  ;;  %v5337_v39 = vor.u32 %v7104_v30, %v5334_v53  ;;  %v5465_v41 = vor.u32 %v7136_v32, %v5462_v33  ;;  %v7249_v30 = vld [vmem:[#allocation5 + $0xec] sm:$0xf0]  ;;  %v6028_v53 = vld [vmem:[#allocation5 + $0x1e0] sm:$0xf]  ;;  %v7160_v33 = vld [vmem:[#allocation2 + $0x62c] sm:$0xf] }
 0x143   :  { %2237 = vmatpush.bf16.msra.mxu2 %v5033_v54  ;;  %v5590_v54 = vld [vmem:[#allocation2 + $0x678] sm:$0xf0]  ;;  %v7281_v32 = vld [vmem:[#allocation5 + $0x1ec] sm:$0xf0]  ;;  %v7156_v55 = vld [vmem:[#allocation2 + $0x60c] sm:$0xf] }
 0x144   :  { %2250 = vmatpush.bf16.msra.mxu3 %v5161_v58  ;;  %v5718_v58 = vld [vmem:[#allocation2 + $0x778] sm:$0xf0] }
 0x145   :  { %2257 = vmatpush.bf16.msrb.mxu0 %v5385_v48  ;;  %2270 = vmatpush.bf16.msrb.mxu1 %v5513_v51  ;;  %v5446_v48 = vld [vmem:[#allocation2 + $0x558] sm:$0xf0]  ;;  %v7168_v51 = vld [vmem:[#allocation2 + $0x66c] sm:$0xf]  ;;  %v5721_v7 = vor.u32 %v7200_v57, %v5718_v58 }
 0x146   :  { %2238 = vmatmul.bf16.vlgmr.msra.gmra.mxu2 %v7833_v37  ;;  %v5606_v37 = vld [vmem:[#allocation2 + $0x698] sm:$0xf0]  ;;  %v5449_v61 = vor.u32 %v7132_v47, %v5446_v48  ;;  %v7245_v48 = vld [vmem:[#allocation5 + $0xcc] sm:$0xf0]  ;;  %v7188_v57 = vld [vmem:[#allocation2 + $0x70c] sm:$0xf] }
 0x147   :  { %2282 = vmatpush.bf16.msrb.mxu2 %v5657_v60  ;;  %2251 = vmatmul.bf16.vlgmr.msra.gmra.mxu3 %v7835_v44  ;;  %v5734_v44 = vld [vmem:[#allocation2 + $0x798] sm:$0xf0]  ;;  %v5609_v46 = vor.u32 %v7172_v36, %v5606_v37  ;;  %v604_v60 = vperm.slane %v7896_v45, 0 }
 0x148   :  { %2295 = vmatpush.bf16.msrb.mxu3 %v5785_v1  ;;  %v5737_v50 = vor.u32 %v7204_v40, %v5734_v44  ;;  %v5593_v1 = vor.u32 %v7168_v51, %v5590_v54  ;;  %v2020_v10 = vpop.f32.mrf.mxu1  ;;  %v5686_v40 = vld [vmem:[#allocation2 + $0x738] sm:$0xf0] }
 0x149   :  { %2258 = vmatpush.bf16.msrb.mxu0 %v5369_v4  ;;  %2271 = vmatpush.bf16.msrb.mxu1 %v5497_v9  ;;  %v2007_v4 = vpop.f32.mrf.mxu0  ;;  %v5574_v9 = vld [vmem:[#allocation2 + $0x658] sm:$0xf0] }
 0x14a   :  { %v1981_v49 = vpop.f32.mrf.mxu2  ;;  %v5577_v28 = vor.u32 %v7164_v8, %v5574_v9  ;;  %v7902_v37 = vpop.f32.mrf.mxu3  ;;  %v5670_v58 = vld [vmem:[#allocation2 + $0x718] sm:$0xf0]  ;;  %v7273_v8 = vld [vmem:[#allocation5 + $0x1ac] sm:$0xf0] }
 0x14b   :  { %2283 = vmatpush.bf16.msrb.mxu2 %v5641_v12  ;;  %v7196_v12 = vld [vmem:[#allocation2 + $0x74c] sm:$0xf]  ;;  %v6012_v49 = vld [vmem:[#allocation5 + $0x1c0] sm:$0xf]  ;;  %v5673_v4 = vor.u32 %v7188_v57, %v5670_v58 }
 0x14c   :  { %2296 = vmatpush.bf16.msrb.mxu3 %v5769_v16  ;;  %v1902_v16 = vadd.f32 %v7867_v14, %v604_v60  ;;  %v5289_v14 = vor.u32 %v7092_v15, %v5286_v21  ;;  %v7313_v60 = vld [vmem:[#allocation5 + $0x2ec] sm:$0xf0]  ;;  %v5932_v58 = vld [vmem:[#allocation5 + $0x120] sm:$0xf] }
 0x14d   :  { %2259 = vmatpush.bf16.msrb.mxu0 %v5353_v23  ;;  %2272 = vmatpush.bf16.msrb.mxu1 %v5481_v29  ;;  %v7124_v23 = vld [vmem:[#allocation2 + $0x50c] sm:$0xf]  ;;  %v5900_v29 = vld [vmem:[#allocation5 + $0xe0] sm:$0xf] }
 0x14e   :  { %v1915_v44 = vadd.f32 %v7870_v19, %v1902_v16  ;;  %v5901_v42 = vor.u32 %v7249_v30, %v5900_v29  ;;  %v6156_v19 = vld [vmem:[#allocation5 + $0x2e0] sm:$0xf]  ;;  %v7305_v29 = vld [vmem:[#allocation5 + $0x2ac] sm:$0xf0] }
 0x14f   :  { %2284 = vmatpush.bf16.msrb.mxu2 %v5625_v31  ;;  %v5705_v31 = vor.u32 %v7196_v12, %v5702_v13  ;;  %v6157_v9 = vor.u32 %v7313_v60, %v6156_v19  ;;  %v6140_v12 = vld [vmem:[#allocation5 + $0x2c0] sm:$0xf]  ;;  %v7309_v13 = vld [vmem:[#allocation5 + $0x2cc] sm:$0xf0] }
 0x150   :  { %2297 = vmatpush.bf16.msrb.mxu3 %v5753_v35  ;;  %v5558_v35 = vld [vmem:[#allocation2 + $0x638] sm:$0xf0]  ;;  %v1928_v51 = vadd.f32 %v7873_v0, %v1915_v44  ;;  %v5852_v16 = vld [vmem:[#allocation5 + $0x80] sm:$0xf]  ;;  %v7301_v44 = vld [vmem:[#allocation5 + $0x28c] sm:$0xf0] }
 0x151   :  { %2260 = vmatpush.bf16.msrb.mxu0 %v5337_v39  ;;  %2273 = vmatpush.bf16.msrb.mxu1 %v5465_v41  ;;  %v7192_v39 = vld [vmem:[#allocation2 + $0x72c] sm:$0xf]  ;;  %v5417_v41 = vor.u32 %v7124_v23, %v5414_v27  ;;  %v5561_v47 = vor.u32 %v7160_v33, %v5558_v35  ;;  %v5980_v23 = vld [vmem:[#allocation5 + $0x180] sm:$0xf]  ;;  %v7269_v27 = vld [vmem:[#allocation5 + $0x18c] sm:$0xf0] }
 0x152   :  { %v7900_v36 = vpop.f32.mrf.mxu2  ;;  %v5689_v54 = vor.u32 %v7192_v39, %v5686_v40  ;;  %v1941_v0 = vadd.f32 %v7875_v5, %v1928_v51  ;;  %v5964_v33 = vld [vmem:[#allocation5 + $0x160] sm:$0xf]  ;;  %v7265_v35 = vld [vmem:[#allocation5 + $0x16c] sm:$0xf0] }
 0x153   :  { %2285 = vmatpush.bf16.msrb.mxu2 %v5609_v46  ;;  %v6029_v46 = vor.u32 %v7281_v32, %v6028_v53  ;;  %v5981_v53 = vor.u32 %v7269_v27, %v5980_v23  ;;  %v7233_v32 = vld [vmem:[#allocation5 + $0x6c] sm:$0xf0]  ;;  %v6108_v40 = vld [vmem:[#allocation5 + $0x280] sm:$0xf] }
 0x154   :  { %2298 = vmatpush.bf16.msrb.mxu3 %v5737_v50  ;;  %v7277_v50 = vld [vmem:[#allocation5 + $0x1cc] sm:$0xf0]  ;;  %v1954_v21 = vadd.f32 %v7877_v18, %v1941_v0 }
 0x155   :  { %2261 = vmatpush.bf16.msrb.mxu0 %v5321_v56  ;;  %2274 = vmatpush.bf16.msrb.mxu1 %v5449_v61  ;;  %v5542_v56 = vld [vmem:[#allocation2 + $0x618] sm:$0xf0]  ;;  %v5885_v61 = vor.u32 %v7245_v48, %v5884_v43  ;;  %v6013_v62 = vor.u32 %v7277_v50, %v6012_v49  ;;  %v5965_v43 = vor.u32 %v7265_v35, %v5964_v33  ;;  %v6092_v49 = vld [vmem:[#allocation5 + $0x260] sm:$0xf]  ;;  %v7297_v50 = vld [vmem:[#allocation5 + $0x26c] sm:$0xf0] }
 0x156   :  { %v5545_v63 = vor.u32 %v7156_v55, %v5542_v56  ;;  %v1967_v18 = vadd.f32 %v7879_v25, %v1954_v21  ;;  %v7229_v25 = vld [vmem:[#allocation5 + $0x4c] sm:$0xf0]  ;;  %v6109_v48 = vor.u32 %v7301_v44, %v6108_v40  ;;  %v5804_v55 = vld [vmem:[#allocation5 + $0x20] sm:$0xf]  ;;  %v6093_v60 = vor.u32 %v7297_v50, %v6092_v49  ;;  %v6158_v44 = vld [vmem:[#allocation5 + $0x2f0] sm:$0xf0] }
 0x157   :  { %2286 = vmatpush.bf16.msrb.mxu2 %v5593_v1  ;;  %v5868_v1 = vld [vmem:[#allocation5 + $0xa0] sm:$0xf]  ;;  %v7225_v56 = vld [vmem:[#allocation5 + $0x2c] sm:$0xf0]  ;;  %v7307_v50 = vld [vmem:[#allocation5 + $0x2c4] sm:$0xf] }
 0x158   :  { %2299 = vmatpush.bf16.msrb.mxu3 %v5721_v7  ;;  %v5996_v7 = vld [vmem:[#allocation5 + $0x1a0] sm:$0xf]  ;;  %v5869_v15 = vor.u32 %v7241_v2, %v5868_v1  ;;  %v7257_v19 = vld [vmem:[#allocation5 + $0x12c] sm:$0xf0] }
 0x159   :  { %2262 = vmatpush.bf16.msrb.mxu0 %v5305_v6  ;;  %2275 = vmatpush.bf16.msrb.mxu1 %v5433_v20  ;;  %v2046_v6 = vpop.f32.mrf.mxu3  ;;  %v5997_v5 = vor.u32 %v7273_v8, %v5996_v7  ;;  %v7237_v20 = vld [vmem:[#allocation5 + $0x8c] sm:$0xf0]  ;;  %v5933_v0 = vor.u32 %v7257_v19, %v5932_v58  ;;  %v7303_v19 = vld [vmem:[#allocation5 + $0x2a4] sm:$0xf] }
 0x15a   :  { %v2033_v10 = vpop.f32.mrf.mxu2  ;;  %v5853_v30 = vor.u32 %v7237_v20, %v5852_v16  ;;  %v7253_v7 = vld [vmem:[#allocation5 + $0x10c] sm:$0xf0]  ;;  %v7279_v6 = vld [vmem:[#allocation5 + $0x1e4] sm:$0xf] }
 0x15b   :  { %2287 = vmatpush.bf16.msrb.mxu2 %v5577_v28  ;;  %v6124_v28 = vld [vmem:[#allocation5 + $0x2a0] sm:$0xf]  ;;  %v5902_v10 = vld [vmem:[#allocation5 + $0xf0] sm:$0xf0]  ;;  %v7289_v16 = vld [vmem:[#allocation5 + $0x22c] sm:$0xf0] }
 0x15c   :  { %2300 = vmatpush.bf16.msrb.mxu3 %v5705_v31  ;;  %v5836_v31 = vld [vmem:[#allocation5 + $0x60] sm:$0xf]  ;;  %v7285_v33 = vld [vmem:[#allocation5 + $0x20c] sm:$0xf0] }
 0x15d   :  { %2263 = vmatpush.bf16.msrb.mxu0 %v5289_v14  ;;  %2276 = vmatpush.bf16.msrb.mxu1 %v5417_v41  ;;  %v6125_v14 = vor.u32 %v7305_v29, %v6124_v28  ;;  %v2057_v39 = vpop.f32.mrf.mxu0 }
 0x15f   :  { %2288 = vmatpush.bf16.msrb.mxu2 %v5561_v47  ;;  %v5948_v47 = vld [vmem:[#allocation5 + $0x140] sm:$0xf] }
 0x160   :  { %2301 = vmatpush.bf16.msrb.mxu3 %v5689_v54  ;;  %2264 = vmatmul.bf16.vlgmr.msrb.gmra.mxu0 %v7841_v17  ;;  %v2006_v17 = vadd.f32 %v7889_v34, %v605_v3  ;;  %v7221_v3 = vld [vmem:[#allocation5 + $0xc] sm:$0xf0] }
 0x161   :  { %3102 = vmatpush.bf16.msra.mxu0 %v5901_v42  ;;  %3115 = vmatpush.bf16.msra.mxu1 %v6029_v46  ;;  %v5837_v42 = vor.u32 %v7233_v32, %v5836_v31  ;;  %v5820_v46 = vld [vmem:[#allocation5 + $0x40] sm:$0xf]  ;;  %v7275_v31 = vld [vmem:[#allocation5 + $0x1c4] sm:$0xf] }
 0x162   :  { %2277 = vmatmul.bf16.vlgmr.msrb.gmra.mxu1 %v7843_v24  ;;  %v6141_v24 = vor.u32 %v7309_v13, %v6140_v12  ;;  %v2019_v34 = vadd.f32 %v7891_v38, %v2006_v17  ;;  %v7261_v38 = vld [vmem:[#allocation5 + $0x14c] sm:$0xf0] }
 0x163   :  { %2289 = vmatpush.bf16.msrb.mxu2 %v5545_v63  ;;  %v7293_v63 = vld [vmem:[#allocation5 + $0x24c] sm:$0xf0] }
 0x164   :  { %2302 = vmatpush.bf16.msrb.mxu3 %v5673_v4  ;;  %v2032_v41 = vadd.f32 %v7900_v36, %v2019_v34  ;;  %v5949_v36 = vor.u32 %v7261_v38, %v5948_v47  ;;  %v5916_v4 = vld [vmem:[#allocation5 + $0x100] sm:$0xf]  ;;  %v7271_v47 = vld [vmem:[#allocation5 + $0x1a4] sm:$0xf]  ;;  %v5998_v38 = vld [vmem:[#allocation5 + $0x1b0] sm:$0xf0] }
 0x165   :  { %3103 = vmatpush.bf16.msra.mxu0 %v5885_v61  ;;  %3116 = vmatpush.bf16.msra.mxu1 %v6013_v62  ;;  %v2059_v61 = vpop.f32.mrf.mxu0  ;;  %v6076_v62 = vld [vmem:[#allocation5 + $0x240] sm:$0xf]  ;;  %v5917_v23 = vor.u32 %v7253_v7, %v5916_v4  ;;  %v6110_v4 = vld [vmem:[#allocation5 + $0x290] sm:$0xf0] }
 0x166   :  { %2290 = vmatmul.bf16.vlgmr.msrb.gmra.mxu2 %v7847_v52  ;;  %v1980_v52 = vadd.f32 %v7883_v11, %v1967_v18  ;;  %v2045_v54 = vadd.f32 %v7902_v37, %v2032_v41  ;;  %v5821_v11 = vor.u32 %v7229_v25, %v5820_v46  ;;  %v5788_v37 = vld [vmem:[#allocation5] sm:$0xf]  ;;  %v6077_v12 = vor.u32 %v7293_v63, %v6076_v62  ;;  %v6014_v18 = vld [vmem:[#allocation5 + $0x1d0] sm:$0xf0]  ;;  %v7231_v63 = vld [vmem:[#allocation5 + $0x64] sm:$0xf] }
 0x167   :  { %3128 = vmatpush.bf16.msra.mxu2 %v6157_v9  ;;  %2303 = vmatmul.bf16.vlgmr.msrb.gmra.mxu3 %v7849_v59  ;;  %v2070_v59 = vpop.f32.mrf.mxu1  ;;  %v7247_v9 = vld [vmem:[#allocation5 + $0xe4] sm:$0xf]  ;;  %v5789_v17 = vor.u32 %v7221_v3, %v5788_v37  ;;  %v6044_v34 = vld [vmem:[#allocation5 + $0x200] sm:$0xf]  ;;  %v6017_v41 = vor.u32 %v7275_v31, %v6014_v18 }
 0x168   :  { %v1993_v51 = vadd.f32 %v7885_v22, %v1980_v52  ;;  %v2058_v57 = vadd.f32 %v2057_v39, %v2045_v54  ;;  %v5805_v22 = vor.u32 %v7225_v56, %v5804_v55  ;;  %v5905_v27 = vor.u32 %v7247_v9, %v5902_v10  ;;  %v5854_v55 = vld [vmem:[#allocation5 + $0x90] sm:$0xf0]  ;;  %v7267_v56 = vld [vmem:[#allocation5 + $0x184] sm:$0xf] }
 0x169   :  { %3104 = vmatpush.bf16.msra.mxu0 %v5869_v15  ;;  %3117 = vmatpush.bf16.msra.mxu1 %v5997_v5  ;;  %v2083_v13 = vpop.f32.mrf.mxu2  ;;  %v6030_v15 = vld [vmem:[#allocation5 + $0x1f0] sm:$0xf0]  ;;  %v6060_v5 = vld [vmem:[#allocation5 + $0x220] sm:$0xf]  ;;  %v7299_v3 = vld [vmem:[#allocation5 + $0x284] sm:$0xf] }
 0x16a   :  { %vm2308_vm9 = vcmp.gt.f32.partialorder %v1993_v51, 0.0  ;;  %v2312_v1 = vmul.f32 0.01, %v1993_v51  ;;  %v2071_v8 = vadd.f32 %v2070_v59, %v2058_v57  ;;  %v2096_v21 = vpop.f32.mrf.mxu3  ;;  %v6033_v29 = vor.u32 %v7279_v6, %v6030_v15  ;;  %v7239_v59 = vld [vmem:[#allocation5 + $0xa4] sm:$0xf] }
 0x16b   :  { %3129 = vmatpush.bf16.msra.mxu2 %v6141_v24  ;;  %v6061_v32 = vor.u32 %v7289_v16, %v6060_v5  ;;  %v5982_v57 = vld [vmem:[#allocation5 + $0x190] sm:$0xf0]  ;;  %v7227_v10 = vld [vmem:[#allocation5 + $0x44] sm:$0xf]  ;;  %v6113_v15 = vor.u32 %v7299_v3, %v6110_v4  ;;  %v7274_v4 = vld [vmem:[#allocation5 + $0x1b4] sm:$0xf0] }
 0x16c   :  { %v2084_v20 = vadd.f32 %v2083_v13, %v2071_v8  ;;  %v2316_v24 = vsel %vm2308_vm9, %v1993_v51, %v2312_v1  ;;  %v6142_v51 = vld [vmem:[#allocation5 + $0x2d0] sm:$0xf0]  ;;  %v5985_v62 = vor.u32 %v7267_v56, %v5982_v57  ;;  %v7295_v5 = vld [vmem:[#allocation5 + $0x264] sm:$0xf] }
 0x16d   :  { %3105 = vmatpush.bf16.msra.mxu0 %v5853_v30  ;;  %3118 = vmatpush.bf16.msra.mxu1 %v5981_v53  ;;  %v7243_v30 = vld [vmem:[#allocation5 + $0xc4] sm:$0xf]  ;;  %v5886_v53 = vld [vmem:[#allocation5 + $0xd0] sm:$0xf0]  ;;  %v7921_v39 = vpack.c.bf16 %v2316_v24, %v2316_v24  ;;  %v6145_v58 = vor.u32 %v7307_v50, %v6142_v51  ;;  %v5892_v51 = vld [vmem:[#allocation5 + $0xc8] sm:$0xf] }
 0x16e   :  { %v2097_v28 = vadd.f32 %v2096_v21, %v2084_v20  ;;  %v5889_v40 = vor.u32 %v7243_v30, %v5886_v53  ;;  %v5838_v1 = vld [vmem:[#allocation5 + $0x70] sm:$0xf0]  ;;  %v7291_v30 = vld [vmem:[#allocation5 + $0x244] sm:$0xf] }
 0x16f   :  { %3130 = vmatpush.bf16.msra.mxu2 %v6125_v14  ;;  %v2072_v2 = vpop.f32.mrf.mxu1  ;;  %v7311_v14 = vld [vmem:[#allocation5 + $0x2e4] sm:$0xf]  ;;  %v5841_v8 = vor.u32 %v7231_v63, %v5838_v1  ;;  %v5822_v6 = vld [vmem:[#allocation5 + $0x50] sm:$0xf0]  ;;  %v5876_v1 = vld [vmem:[#allocation5 + $0xa8] sm:$0xf] }
 0x170   :  { %vm2309_vm10 = vcmp.gt.f32.partialorder %v2097_v28, 0.0  ;;  %v2313_v35 = vmul.f32 0.01, %v2097_v28  ;;  %v7263_v2 = vld [vmem:[#allocation5 + $0x164] sm:$0xf]  ;;  %v5825_v20 = vor.u32 %v7227_v10, %v5822_v6 }
 0x171   :  { %3106 = vmatpush.bf16.msra.mxu0 %v5837_v42  ;;  %3119 = vmatpush.bf16.msra.mxu1 %v5965_v43  ;;  %v5870_v42 = vld [vmem:[#allocation5 + $0xb0] sm:$0xf0]  ;;  %v6045_v43 = vor.u32 %v7285_v33, %v6044_v34  ;;  %v2085_v25 = vpop.f32.mrf.mxu2  ;;  %v7219_v18 = vld [vmem:[#allocation5 + $0x4] sm:$0xf] }
 0x172   :  { %v2317_v52 = vsel %vm2309_vm10, %v2097_v28, %v2313_v35  ;;  %v2098_v49 = vpop.f32.mrf.mxu3  ;;  %v5873_v54 = vor.u32 %v7239_v59, %v5870_v42  ;;  %v5950_v13 = vld [vmem:[#allocation5 + $0x150] sm:$0xf0]  ;;  %v7251_v35 = vld [vmem:[#allocation5 + $0x104] sm:$0xf]  ;;  %v7282_v42 = vld [vmem:[#allocation5 + $0x1f4] sm:$0xf0] }
 0x173   :  { %3131 = vmatpush.bf16.msra.mxu2 %v6109_v48  ;;  %v7923_v46 = vpack.c.bf16 %v2317_v52, %v2317_v52  ;;  %v6161_v48 = vor.u32 %v7311_v14, %v6158_v44  ;;  %v6094_v16 = vld [vmem:[#allocation5 + $0x270] sm:$0xf0]  ;;  %v7250_v44 = vld [vmem:[#allocation5 + $0xf4] sm:$0xf0]  ;;  %v6036_v52 = vld [vmem:[#allocation5 + $0x1e8] sm:$0xf] }
 0x174   :  { %v5934_v24 = vld [vmem:[#allocation5 + $0x130] sm:$0xf0]  ;;  %v6097_v28 = vor.u32 %v7295_v5, %v6094_v16  ;;  %v6037_v50 = vor.u32 %v7282_v42, %v6036_v52  ;;  %v7283_v56 = vld [vmem:[#allocation5 + $0x204] sm:$0xf]  ;;  %v5988_v16 = vld [vmem:[#allocation5 + $0x188] sm:$0xf] }
 0x175   :  { %3107 = vmatpush.bf16.msra.mxu0 %v5821_v11  ;;  %3120 = vmatpush.bf16.msra.mxu1 %v5949_v36  ;;  %v6001_v11 = vor.u32 %v7271_v47, %v5998_v38  ;;  %v7235_v36 = vld [vmem:[#allocation5 + $0x84] sm:$0xf]  ;;  %v6078_v53 = vld [vmem:[#allocation5 + $0x250] sm:$0xf0]  ;;  %v7230_v52 = vld [vmem:[#allocation5 + $0x54] sm:$0xf0] }
 0x176   :  { %v5857_v61 = vor.u32 %v7235_v36, %v5854_v55  ;;  %v5790_v33 = vld [vmem:[#allocation5 + $0x10] sm:$0xf0]  ;;  %v7278_v55 = vld [vmem:[#allocation5 + $0x1d4] sm:$0xf0] }
 0x177   :  { %3132 = vmatpush.bf16.msra.mxu2 %v6093_v60  ;;  %v6126_v60 = vld [vmem:[#allocation5 + $0x2b0] sm:$0xf0]  ;;  %v5793_v38 = vor.u32 %v7219_v18, %v5790_v33  ;;  %v6236_v18 = vld [vmem:[#allocation5 + $0x380] sm:$0xf]  ;;  %v7262_v42 = vld [vmem:[#allocation5 + $0x154] sm:$0xf0] }
 0x178   :  { %v6129_v37 = vor.u32 %v7303_v19, %v6126_v60  ;;  %v5918_v14 = vld [vmem:[#allocation5 + $0x110] sm:$0xf0]  ;;  %v7345_v19 = vld [vmem:[#allocation5 + $0x3ec] sm:$0xf0]  ;;  %v606_v60 = vperm.slane %v7896_v45, 2 }
 0x179   :  { %3108 = vmatpush.bf16.msra.mxu0 %v5805_v22  ;;  %3121 = vmatpush.bf16.msra.mxu1 %v5933_v0  ;;  %v5966_v22 = vld [vmem:[#allocation5 + $0x170] sm:$0xf0] }
 0x17a   :  { %v5969_v9 = vor.u32 %v7263_v2, %v5966_v22  ;;  %v6062_v25 = vld [vmem:[#allocation5 + $0x230] sm:$0xf0]  ;;  %v7242_v2 = vld [vmem:[#allocation5 + $0xb4] sm:$0xf0]  ;;  %v6004_v22 = vld [vmem:[#allocation5 + $0x1a8] sm:$0xf] }
 0x17b   :  { %3133 = vmatpush.bf16.msra.mxu2 %v6077_v12  ;;  %v7259_v12 = vld [vmem:[#allocation5 + $0x144] sm:$0xf]  ;;  %v6046_v57 = vld [vmem:[#allocation5 + $0x210] sm:$0xf0]  ;;  %v5877_v6 = vor.u32 %v7242_v2, %v5876_v1  ;;  %v7248_v2 = vld [vmem:[#allocation5 + $0xec] sm:$0xf] }
 0x17c   :  { %v5953_v21 = vor.u32 %v7259_v12, %v5950_v13  ;;  %v6005_v12 = vor.u32 %v7274_v4, %v6004_v22  ;;  %v5860_v13 = vld [vmem:[#allocation5 + $0x88] sm:$0xf]  ;;  %v5910_v22 = vld [vmem:[#allocation5 + $0xf8] sm:$0xf0] }
 0x17d   :  { %3109 = vmatpush.bf16.msra.mxu0 %v5789_v17  ;;  %3122 = vmatpush.bf16.msra.mxu1 %v5917_v23  ;;  %v7927_v0 = vpop.f32.mrf.mxu0  ;;  %v7223_v17 = vld [vmem:[#allocation5 + $0x24] sm:$0xf]  ;;  %v5806_v23 = vld [vmem:[#allocation5 + $0x30] sm:$0xf0]  ;;  %v6038_v4 = vld [vmem:[#allocation5 + $0x1f8] sm:$0xf0] }
 0x17e   :  { %v2110_v5 = vadd.f32 %v7927_v0, %v606_v60  ;;  %v7333_v0 = vld [vmem:[#allocation5 + $0x38c] sm:$0xf0] }
 0x17f   :  { %3134 = vmatpush.bf16.msra.mxu2 %v6061_v32  ;;  %v7929_v7 = vpop.f32.mrf.mxu1  ;;  %v5809_v32 = vor.u32 %v7223_v17, %v5806_v23  ;;  %v7337_v17 = vld [vmem:[#allocation5 + $0x3ac] sm:$0xf0] }
 0x180   :  { %3110 = vmatmul.bf16.vlgmr.msra.gmra.mxu0 %v7921_v39  ;;  %3123 = vmatmul.bf16.vlgmr.msra.gmra.mxu1 %v7923_v46 }
 0x181   :  { %3154 = vmatpush.bf16.msrb.mxu0 %v5905_v27  ;;  %3167 = vmatpush.bf16.msrb.mxu1 %v6033_v29  ;;  %v7255_v27 = vld [vmem:[#allocation5 + $0x124] sm:$0xf] }
 0x182   :  { %v5937_v34 = vor.u32 %v7255_v27, %v5934_v24 }
 0x183   :  { %3135 = vmatpush.bf16.msra.mxu2 %v6045_v43  ;;  %v7287_v43 = vld [vmem:[#allocation5 + $0x224] sm:$0xf] }
 0x184   :  { %v6065_v36 = vor.u32 %v7287_v43, %v6062_v25  ;;  %v7329_v43 = vld [vmem:[#allocation5 + $0x36c] sm:$0xf0] }
 0x185   :  { %3155 = vmatpush.bf16.msrb.mxu0 %v5889_v40  ;;  %3168 = vmatpush.bf16.msrb.mxu1 %v6017_v41  ;;  %v2111_v29 = vpop.f32.mrf.mxu0  ;;  %v5908_v40 = vld [vmem:[#allocation5 + $0xe8] sm:$0xf]  ;;  %v6081_v41 = vor.u32 %v7291_v30, %v6078_v53  ;;  %v2123_v30 = vadd.f32 %v7929_v7, %v2110_v5  ;;  %v6220_v7 = vld [vmem:[#allocation5 + $0x360] sm:$0xf] }
 0x186   :  { %v5909_v49 = vor.u32 %v7250_v44, %v5908_v40  ;;  %v7234_v29 = vld [vmem:[#allocation5 + $0x74] sm:$0xf0]  ;;  %v5972_v53 = vld [vmem:[#allocation5 + $0x168] sm:$0xf] }
 0x187   :  { %3180 = vmatpush.bf16.msrb.mxu2 %v6161_v48  ;;  %v2124_v31 = vpop.f32.mrf.mxu1  ;;  %v5921_v48 = vor.u32 %v7251_v35, %v5918_v14  ;;  %v6237_v14 = vor.u32 %v7333_v0, %v6236_v18  ;;  %v5828_v44 = vld [vmem:[#allocation5 + $0x48] sm:$0xf]  ;;  %v7343_v18 = vld [vmem:[#allocation5 + $0x3e4] sm:$0xf]  ;;  %v6286_v0 = vld [vmem:[#allocation5 + $0x3f0] sm:$0xf0] }
 0x188   :  { %v7266_v31 = vld [vmem:[#allocation5 + $0x174] sm:$0xf0]  ;;  %v6164_v5 = vld [vmem:[#allocation5 + $0x2e8] sm:$0xf] }
 0x189   :  { %3156 = vmatpush.bf16.msrb.mxu0 %v5873_v54  ;;  %3169 = vmatpush.bf16.msrb.mxu1 %v6001_v11  ;;  %v7931_v59 = vpop.f32.mrf.mxu2  ;;  %v7246_v54 = vld [vmem:[#allocation5 + $0xd4] sm:$0xf0]  ;;  %v6020_v11 = vld [vmem:[#allocation5 + $0x1c8] sm:$0xf]  ;;  %v5973_v40 = vor.u32 %v7266_v31, %v5972_v53 }
 0x18a   :  { %v7933_v47 = vpop.f32.mrf.mxu3  ;;  %v6021_v63 = vor.u32 %v7278_v55, %v6020_v11  ;;  %v7258_v11 = vld [vmem:[#allocation5 + $0x134] sm:$0xf0]  ;;  %v6204_v55 = vld [vmem:[#allocation5 + $0x340] sm:$0xf] }
 0x18b   :  { %3181 = vmatpush.bf16.msrb.mxu2 %v6145_v58  ;;  %v6284_v58 = vld [vmem:[#allocation5 + $0x3e0] sm:$0xf] }
 0x18d   :  { %3157 = vmatpush.bf16.msrb.mxu0 %v5857_v61  ;;  %3170 = vmatpush.bf16.msrb.mxu1 %v5985_v62  ;;  %v5893_v61 = vor.u32 %v7246_v54, %v5892_v51  ;;  %v6285_v62 = vor.u32 %v7345_v19, %v6284_v58  ;;  %v5940_v54 = vld [vmem:[#allocation5 + $0x128] sm:$0xf] }
 0x18e   :  { %v5796_v19 = vld [vmem:[#allocation5 + $0x8] sm:$0xf] }
 0x18f   :  { %3182 = vmatpush.bf16.msrb.mxu2 %v6129_v37  ;;  %v6049_v37 = vor.u32 %v7283_v56, %v6046_v57  ;;  %3141 = vmatpush.bf16.msra.mxu3 %v6285_v62  ;;  %v7325_v56 = vld [vmem:[#allocation5 + $0x34c] sm:$0xf0]  ;;  %v5924_v62 = vld [vmem:[#allocation5 + $0x108] sm:$0xf] }
 0x190   :  { %v6205_v60 = vor.u32 %v7325_v56, %v6204_v55  ;;  %v7306_v55 = vld [vmem:[#allocation5 + $0x2b4] sm:$0xf0]  ;;  %v7268_v56 = vld [vmem:[#allocation5 + $0x18c] sm:$0xf] }
 0x191   :  { %3158 = vmatpush.bf16.msrb.mxu0 %v5841_v8  ;;  %3171 = vmatpush.bf16.msrb.mxu1 %v5969_v9  ;;  %v2137_v3 = vpop.f32.mrf.mxu2  ;;  %v6268_v8 = vld [vmem:[#allocation5 + $0x3c0] sm:$0xf]  ;;  %v7341_v9 = vld [vmem:[#allocation5 + $0x3cc] sm:$0xf0] }
 0x192   :  { %v2150_v10 = vpop.f32.mrf.mxu3  ;;  %v6269_v45 = vor.u32 %v7341_v9, %v6268_v8  ;;  %v6188_v8 = vld [vmem:[#allocation5 + $0x320] sm:$0xf]  ;;  %v7321_v9 = vld [vmem:[#allocation5 + $0x32c] sm:$0xf0] }
 0x193   :  { %3183 = vmatpush.bf16.msrb.mxu2 %v6113_v15  ;;  %v7238_v15 = vld [vmem:[#allocation5 + $0x94] sm:$0xf0] }
 0x194   :  { %3142 = vmatpush.bf16.msra.mxu3 %v6269_v45  ;;  %v5861_v23 = vor.u32 %v7238_v15, %v5860_v13  ;;  %v5913_v15 = vor.u32 %v7248_v2, %v5910_v22  ;;  %v5846_v2 = vld [vmem:[#allocation5 + $0x78] sm:$0xf0]  ;;  %v7302_v22 = vld [vmem:[#allocation5 + $0x294] sm:$0xf0] }
 0x195   :  { %3159 = vmatpush.bf16.msrb.mxu0 %v5825_v20  ;;  %3172 = vmatpush.bf16.msrb.mxu1 %v5953_v21  ;;  %v7270_v20 = vld [vmem:[#allocation5 + $0x194] sm:$0xf0]  ;;  %v6252_v21 = vld [vmem:[#allocation5 + $0x3a0] sm:$0xf] }
 0x196   :  { %v6253_v27 = vor.u32 %v7337_v17, %v6252_v21  ;;  %v5989_v24 = vor.u32 %v7270_v20, %v5988_v16  ;;  %v7314_v16 = vld [vmem:[#allocation5 + $0x2f4] sm:$0xf0]  ;;  %v7244_v17 = vld [vmem:[#allocation5 + $0xcc] sm:$0xf] }
 0x197   :  { %3184 = vmatpush.bf16.msrb.mxu2 %v6097_v28  ;;  %v5844_v28 = vld [vmem:[#allocation5 + $0x68] sm:$0xf]  ;;  %v6165_v31 = vor.u32 %v7314_v16, %v6164_v5  ;;  %v7228_v5 = vld [vmem:[#allocation5 + $0x4c] sm:$0xf]  ;;  %v5830_v16 = vld [vmem:[#allocation5 + $0x58] sm:$0xf0] }
 0x198   :  { %3143 = vmatpush.bf16.msra.mxu3 %v6253_v27  ;;  %v5845_v35 = vor.u32 %v7234_v29, %v5844_v28  ;;  %v7276_v27 = vld [vmem:[#allocation5 + $0x1cc] sm:$0xf]  ;;  %v6172_v28 = vld [vmem:[#allocation5 + $0x300] sm:$0xf]  ;;  %v7317_v29 = vld [vmem:[#allocation5 + $0x30c] sm:$0xf0] }
 0x199   :  { %3160 = vmatpush.bf16.msrb.mxu0 %v5809_v32  ;;  %3173 = vmatpush.bf16.msrb.mxu1 %v5937_v34  ;;  %v2136_v34 = vadd.f32 %v7931_v59, %v2123_v30  ;;  %v6173_v53 = vor.u32 %v7317_v29, %v6172_v28 }
 0x19b   :  { %3185 = vmatpush.bf16.msrb.mxu2 %v6081_v41  ;;  %v5956_v41 = vld [vmem:[#allocation5 + $0x148] sm:$0xf]  ;;  %v2149_v25 = vadd.f32 %v7933_v47, %v2136_v34  ;;  %v5941_v47 = vor.u32 %v7258_v11, %v5940_v54  ;;  %v7236_v11 = vld [vmem:[#allocation5 + $0x8c] sm:$0xf] }
 0x19c   :  { %3144 = vmatpush.bf16.msra.mxu3 %v6237_v14  ;;  %v5957_v59 = vor.u32 %v7262_v42, %v5956_v41  ;;  %v7240_v14 = vld [vmem:[#allocation5 + $0xac] sm:$0xf]  ;;  %v7310_v42 = vld [vmem:[#allocation5 + $0x2d4] sm:$0xf0]  ;;  %v6132_v54 = vld [vmem:[#allocation5 + $0x2a8] sm:$0xf] }
 0x19d   :  { %3161 = vmatpush.bf16.msrb.mxu0 %v5793_v38  ;;  %3174 = vmatpush.bf16.msrb.mxu1 %v5921_v48  ;;  %v2161_v32 = vpop.f32.mrf.mxu0  ;;  %v5829_v38 = vor.u32 %v7230_v52, %v5828_v44  ;;  %v6221_v48 = vor.u32 %v7329_v43, %v6220_v7  ;;  %v6289_v44 = vor.u32 %v7343_v18, %v6286_v0  ;;  %v7272_v7 = vld [vmem:[#allocation5 + $0x1ac] sm:$0xf]  ;;  %v6006_v43 = vld [vmem:[#allocation5 + $0x1b8] sm:$0xf0]  ;;  %v7294_v18 = vld [vmem:[#allocation5 + $0x254] sm:$0xf0] }
 0x19e   :  { %v2162_v51 = vadd.f32 %v2161_v32, %v2149_v25  ;;  %v7256_v0 = vld [vmem:[#allocation5 + $0x12c] sm:$0xf] }
 0x19f   :  { %3186 = vmatpush.bf16.msrb.mxu2 %v6065_v36  ;;  %v2174_v33 = vpop.f32.mrf.mxu1 }
 0x1a0   :  { %3162 = vmatmul.bf16.vlgmr.msrb.gmra.mxu0 %v7921_v39  ;;  %3175 = vmatmul.bf16.vlgmr.msrb.gmra.mxu1 %v7923_v46  ;;  %v2175_v1 = vadd.f32 %v2174_v33, %v2162_v51  ;;  %v6009_v51 = vor.u32 %v7272_v7, %v6006_v43  ;;  %v6068_v43 = vld [vmem:[#allocation5 + $0x228] sm:$0xf] }
 0x1a1   :  { %3206 = vmatpush.bf16.msra.mxu0 %v5909_v49  ;;  %3219 = vmatpush.bf16.msra.mxu1 %v6037_v50  ;;  %v5812_v49 = vld [vmem:[#allocation5 + $0x28] sm:$0xf]  ;;  %v7226_v50 = vld [vmem:[#allocation5 + $0x34] sm:$0xf0] }
 0x1a2   :  { %3145 = vmatpush.bf16.msra.mxu3 %v6221_v48  ;;  %v5813_v58 = vor.u32 %v7226_v50, %v5812_v49  ;;  %v6270_v48 = vld [vmem:[#allocation5 + $0x3d0] sm:$0xf0] }
 0x1a3   :  { %3187 = vmatpush.bf16.msrb.mxu2 %v6049_v37  ;;  %v7280_v37 = vld [vmem:[#allocation5 + $0x1ec] sm:$0xf] }
 0x1a4   :  { %v6041_v21 = vor.u32 %v7280_v37, %v6038_v4  ;;  %v7264_v37 = vld [vmem:[#allocation5 + $0x16c] sm:$0xf] }
 0x1a5   :  { %3207 = vmatpush.bf16.msra.mxu0 %v5893_v61  ;;  %3220 = vmatpush.bf16.msra.mxu1 %v6021_v63  ;;  %v2163_v36 = vpop.f32.mrf.mxu0  ;;  %v7222_v61 = vld [vmem:[#allocation5 + $0x14] sm:$0xf0] }
 0x1a6   :  { %v7254_v63 = vld [vmem:[#allocation5 + $0x114] sm:$0xf0]  ;;  %3146 = vmatpush.bf16.msra.mxu3 %v6205_v60  ;;  %v5862_v36 = vld [vmem:[#allocation5 + $0x98] sm:$0xf0] }
 0x1a7   :  { %v2176_v57 = vpop.f32.mrf.mxu1  ;;  %v5925_v13 = vor.u32 %v7254_v63, %v5924_v62  ;;  %v5865_v60 = vor.u32 %v7236_v11, %v5862_v36  ;;  %v6116_v63 = vld [vmem:[#allocation5 + $0x288] sm:$0xf] }
 0x1a8   :  { %v5990_v57 = vld [vmem:[#allocation5 + $0x198] sm:$0xf0] }
 0x1a9   :  { %3208 = vmatpush.bf16.msra.mxu0 %v5877_v6  ;;  %3221 = vmatpush.bf16.msra.mxu1 %v6005_v12  ;;  %v2187_v3 = vpop.f32.mrf.mxu2  ;;  %v5797_v6 = vor.u32 %v7222_v61, %v5796_v19  ;;  %v6189_v12 = vor.u32 %v7321_v9, %v6188_v8  ;;  %v6254_v19 = vld [vmem:[#allocation5 + $0x3b0] sm:$0xf0]  ;;  %v6133_v61 = vor.u32 %v7306_v55, %v6132_v54  ;;  %v7331_v8 = vld [vmem:[#allocation5 + $0x384] sm:$0xf] }
 0x1aa   :  { %v2188_v10 = vadd.f32 %v2187_v3, %v2175_v1  ;;  %v2200_v45 = vpop.f32.mrf.mxu3  ;;  %v5993_v62 = vor.u32 %v7268_v56, %v5990_v57  ;;  %v7232_v1 = vld [vmem:[#allocation5 + $0x6c] sm:$0xf]  ;;  %v5974_v3 = vld [vmem:[#allocation5 + $0x178] sm:$0xf0]  ;;  %v6238_v9 = vld [vmem:[#allocation5 + $0x390] sm:$0xf0] }
 0x1ab   :  { %3147 = vmatpush.bf16.msra.mxu3 %v6189_v12  ;;  %v6117_v12 = vor.u32 %v7302_v22, %v6116_v63  ;;  %v6190_v54 = vld [vmem:[#allocation5 + $0x330] sm:$0xf0]  ;;  %v7516_v22 = vld [vmem:[%s8162_s4] sm:$0xf] }
 0x1ac   :  { %v2201_v20 = vadd.f32 %v2200_v45, %v2188_v10  ;;  %v5849_v45 = vor.u32 %v7232_v1, %v5846_v2 }
 0x1ad   :  { %3209 = vmatpush.bf16.msra.mxu0 %v5861_v23  ;;  %3222 = vmatpush.bf16.msra.mxu1 %v5989_v24  ;;  %v5894_v23 = vld [vmem:[#allocation5 + $0xd8] sm:$0xf0] }
 0x1ae   :  { %v6022_v24 = vld [vmem:[#allocation5 + $0x1d8] sm:$0xf0]  ;;  %vm2310_vm11 = vcmp.gt.f32.partialorder %v2201_v20, 0.0  ;;  %v2314_v30 = vmul.f32 0.01, %v2201_v20  ;;  %v5897_v32 = vor.u32 %v7244_v17, %v5894_v23 }
 0x1af   :  { %v6025_v33 = vor.u32 %v7276_v27, %v6022_v24  ;;  %3148 = vmatpush.bf16.msra.mxu3 %v6173_v53  ;;  %v5958_v17 = vld [vmem:[#allocation5 + $0x158] sm:$0xf0]  ;;  %v7327_v23 = vld [vmem:[#allocation5 + $0x364] sm:$0xf]  ;;  %v6222_v27 = vld [vmem:[#allocation5 + $0x370] sm:$0xf0]  ;;  %v5833_v24 = vor.u32 %v7228_v5, %v5830_v16 }
 0x1b0   :  { %v2318_v34 = vsel %vm2310_vm11, %v2201_v20, %v2314_v30  ;;  %v7298_v20 = vld [vmem:[#allocation5 + $0x274] sm:$0xf0]  ;;  %v6225_v28 = vor.u32 %v7327_v23, %v6222_v27  ;;  %v6084_v53 = vld [vmem:[#allocation5 + $0x248] sm:$0xf]  ;;  %v7296_v27 = vld [vmem:[#allocation5 + $0x26c] sm:$0xf] }
 0x1b1   :  { %3210 = vmatpush.bf16.msra.mxu0 %v5845_v35  ;;  %3223 = vmatpush.bf16.msra.mxu1 %v5973_v40  ;;  %v6148_v35 = vld [vmem:[#allocation5 + $0x2c8] sm:$0xf]  ;;  %v5878_v40 = vld [vmem:[#allocation5 + $0xb8] sm:$0xf0]  ;;  %v7942_v52 = vpack.c.bf16 %v2318_v34, %v2318_v34  ;;  %v2189_v41 = vpop.f32.mrf.mxu2 }
 0x1b2   :  { %v2202_v25 = vpop.f32.mrf.mxu3  ;;  %v6149_v50 = vor.u32 %v7310_v42, %v6148_v35  ;;  %v5942_v34 = vld [vmem:[#allocation5 + $0x138] sm:$0xf0]  ;;  %v7323_v35 = vld [vmem:[#allocation5 + $0x344] sm:$0xf]  ;;  %v6085_v42 = vor.u32 %v7294_v18, %v6084_v53 }
 0x1b3   :  { %3193 = vmatpush.bf16.msrb.mxu3 %v6289_v44  ;;  %3136 = vmatmul.bf16.vlgmr.msra.gmra.mxu2 %v7942_v52  ;;  %v5945_v7 = vor.u32 %v7256_v0, %v5942_v34  ;;  %v7220_v25 = vld [vmem:[#allocation5 + $0xc] sm:$0xf]  ;;  %v6086_v53 = vld [vmem:[#allocation5 + $0x258] sm:$0xf0] }
 0x1b4   :  { %3232 = vmatpush.bf16.msra.mxu2 %v6165_v31  ;;  %v7224_v31 = vld [vmem:[#allocation5 + $0x2c] sm:$0xf]  ;;  %v6070_v34 = vld [vmem:[#allocation5 + $0x238] sm:$0xf0] }
 0x1b5   :  { %3211 = vmatpush.bf16.msra.mxu0 %v5829_v38  ;;  %3224 = vmatpush.bf16.msra.mxu1 %v5957_v59  ;;  %v7339_v38 = vld [vmem:[#allocation5 + $0x3c4] sm:$0xf]  ;;  %v5881_v59 = vor.u32 %v7240_v14, %v5878_v40  ;;  %v6206_v14 = vld [vmem:[#allocation5 + $0x350] sm:$0xf0]  ;;  %v7288_v0 = vld [vmem:[#allocation5 + $0x22c] sm:$0xf] }
 0x1b6   :  { %v6273_v49 = vor.u32 %v7339_v38, %v6270_v48  ;;  %v6209_v41 = vor.u32 %v7323_v35, %v6206_v14  ;;  %v5798_v38 = vld [vmem:[#allocation5 + $0x18] sm:$0xf0]  ;;  %v7290_v48 = vld [vmem:[#allocation5 + $0x234] sm:$0xf0] }
 0x1b7   :  { %v5801_v36 = vor.u32 %v7220_v25, %v5798_v38  ;;  %v6069_v56 = vor.u32 %v7290_v48, %v6068_v43  ;;  %v7346_v43 = vld [vmem:[#allocation5 + $0x3f4] sm:$0xf0] }
 0x1b8   :  { %3194 = vmatpush.bf16.msrb.mxu3 %v6273_v49  ;;  %3233 = vmatpush.bf16.msra.mxu2 %v6149_v50  ;;  %v5926_v49 = vld [vmem:[#allocation5 + $0x118] sm:$0xf0] }
 0x1b9   :  { %3212 = vmatpush.bf16.msra.mxu0 %v5813_v58  ;;  %3225 = vmatpush.bf16.msra.mxu1 %v5941_v47  ;;  %v7335_v58 = vld [vmem:[#allocation5 + $0x3a4] sm:$0xf] }
 0x1ba   :  { %v6257_v47 = vor.u32 %v7335_v58, %v6254_v19  ;;  %v6052_v58 = vld [vmem:[#allocation5 + $0x208] sm:$0xf]  ;;  %v7286_v19 = vld [vmem:[#allocation5 + $0x214] sm:$0xf0] }
 0x1bb   :  { %v6053_v1 = vor.u32 %v7286_v19, %v6052_v58 }
 0x1bc   :  { %3195 = vmatpush.bf16.msrb.mxu3 %v6257_v47  ;;  %3234 = vmatpush.bf16.msra.mxu2 %v6133_v61  ;;  %v6166_v47 = vld [vmem:[#allocation5 + $0x2f8] sm:$0xf0]  ;;  %v7315_v61 = vld [vmem:[#allocation5 + $0x304] sm:$0xf] }
 0x1bd   :  { %3213 = vmatpush.bf16.msra.mxu0 %v5797_v6  ;;  %3226 = vmatpush.bf16.msra.mxu1 %v5925_v13  ;;  %v7947_v4 = vpop.f32.mrf.mxu0  ;;  %v6241_v6 = vor.u32 %v7331_v8, %v6238_v9  ;;  %v5977_v13 = vor.u32 %v7264_v37, %v5974_v3  ;;  %v607_v37 = vperm.slane %v7516_v22, 3  ;;  %v7308_v8 = vld [vmem:[#allocation5 + $0x2cc] sm:$0xf]  ;;  %v6150_v9 = vld [vmem:[#allocation5 + $0x2d8] sm:$0xf0] }
 0x1be   :  { %v6228_v22 = vld [vmem:[#allocation5 + $0x368] sm:$0xf] }
 0x1bf   :  { %v7949_v10 = vpop.f32.mrf.mxu1 }
 0x1c0   :  { %3214 = vmatmul.bf16.vlgmr.msra.gmra.mxu0 %v7921_v39  ;;  %3227 = vmatmul.bf16.vlgmr.msra.gmra.mxu1 %v7923_v46 }
 0x1c1   :  { %3258 = vmatpush.bf16.msrb.mxu0 %v5913_v15  ;;  %3271 = vmatpush.bf16.msrb.mxu1 %v6041_v21  ;;  %v6100_v15 = vld [vmem:[#allocation5 + $0x268] sm:$0xf]  ;;  %v7260_v21 = vld [vmem:[#allocation5 + $0x14c] sm:$0xf] }
 0x1c2   :  { %3196 = vmatpush.bf16.msrb.mxu3 %v6241_v6  ;;  %3235 = vmatpush.bf16.msra.mxu2 %v6117_v12  ;;  %v6101_v29 = vor.u32 %v7298_v20, %v6100_v15  ;;  %v5961_v30 = vor.u32 %v7260_v21, %v5958_v17  ;;  %v6153_v6 = vor.u32 %v7308_v8, %v6150_v9  ;;  %v6134_v15 = vld [vmem:[#allocation5 + $0x2b8] sm:$0xf0]  ;;  %v6212_v8 = vld [vmem:[#allocation5 + $0x348] sm:$0xf]  ;;  %v7326_v9 = vld [vmem:[#allocation5 + $0x354] sm:$0xf0] }
 0x1c3   :  { %3188 = vmatmul.bf16.vlgmr.msrb.gmra.mxu2 %v7942_v52  ;;  %v2214_v12 = vadd.f32 %v7947_v4, %v607_v37  ;;  %v6118_v20 = vld [vmem:[#allocation5 + $0x298] sm:$0xf0]  ;;  %v7330_v37 = vld [vmem:[#allocation5 + $0x374] sm:$0xf0] }
 0x1c5   :  { %3259 = vmatpush.bf16.msrb.mxu0 %v5897_v32  ;;  %3272 = vmatpush.bf16.msrb.mxu1 %v6025_v33  ;;  %v5814_v32 = vld [vmem:[#allocation5 + $0x38] sm:$0xf0]  ;;  %v2215_v33 = vpop.f32.mrf.mxu0  ;;  %v2227_v16 = vadd.f32 %v7949_v10, %v2214_v12  ;;  %v6196_v12 = vld [vmem:[#allocation5 + $0x328] sm:$0xf] }
 0x1c6   :  { %3197 = vmatpush.bf16.msrb.mxu3 %v6225_v28  ;;  %v5817_v44 = vor.u32 %v7224_v31, %v5814_v32  ;;  %3236 = vmatpush.bf16.msra.mxu2 %v6101_v29 }
 0x1c7   :  { %v2228_v40 = vpop.f32.mrf.mxu1 }
 0x1c8   :  { %v6073_v40 = vor.u32 %v7288_v0, %v6070_v34  ;;  %v7328_v34 = vld [vmem:[#allocation5 + $0x36c] sm:$0xf] }
 0x1c9   :  { %3260 = vmatpush.bf16.msrb.mxu0 %v5881_v59  ;;  %3273 = vmatpush.bf16.msrb.mxu1 %v6009_v51  ;;  %v7252_v59 = vld [vmem:[#allocation5 + $0x10c] sm:$0xf]  ;;  %v2239_v50 = vpop.f32.mrf.mxu2  ;;  %v7319_v51 = vld [vmem:[#allocation5 + $0x324] sm:$0xf] }
 0x1ca   :  { %3198 = vmatpush.bf16.msrb.mxu3 %v6209_v41  ;;  %v2252_v11 = vpop.f32.mrf.mxu3  ;;  %v6193_v55 = vor.u32 %v7319_v51, %v6190_v54  ;;  %3237 = vmatpush.bf16.msra.mxu2 %v6085_v42  ;;  %v5929_v57 = vor.u32 %v7252_v59, %v5926_v49  ;;  %v2240_v17 = vadd.f32 %v2239_v50, %v2227_v16  ;;  %v7284_v41 = vld [vmem:[#allocation5 + $0x20c] sm:$0xf]  ;;  %v6054_v42 = vld [vmem:[#allocation5 + $0x218] sm:$0xf0]  ;;  %v6276_v51 = vld [vmem:[#allocation5 + $0x3c8] sm:$0xf] }
 0x1cb   :  { %v6057_v38 = vor.u32 %v7284_v41, %v6054_v42  ;;  %v7342_v54 = vld [vmem:[#allocation5 + $0x3d4] sm:$0xf0] }
 0x1cc   :  { %v2253_v28 = vadd.f32 %v2252_v11, %v2240_v17  ;;  %v7318_v16 = vld [vmem:[#allocation5 + $0x314] sm:$0xf0] }
 0x1cd   :  { %3261 = vmatpush.bf16.msrb.mxu0 %v5865_v60  ;;  %3274 = vmatpush.bf16.msrb.mxu1 %v5993_v62  ;;  %v7312_v60 = vld [vmem:[#allocation5 + $0x2ec] sm:$0xf]  ;;  %v6174_v62 = vld [vmem:[#allocation5 + $0x310] sm:$0xf0] }
 0x1ce   :  { %3199 = vmatpush.bf16.msrb.mxu3 %v6193_v55  ;;  %v6177_v63 = vor.u32 %v7315_v61, %v6174_v62  ;;  %3238 = vmatpush.bf16.msra.mxu2 %v6069_v56  ;;  %v6169_v2 = vor.u32 %v7312_v60, %v6166_v47  ;;  %v7966_v55 = vld [vmem:[%s8164_s6] sm:$0xf]  ;;  %v6260_v56 = vld [vmem:[#allocation5 + $0x3a8] sm:$0xf]  ;;  %v7334_v47 = vld [vmem:[#allocation5 + $0x394] sm:$0xf0] }
 0x1cf   :  { %v2454_v58 = vperm.slane %v7966_v55, 0  ;;  %v6244_v60 = vld [vmem:[#allocation5 + $0x388] sm:$0xf] }
 0x1d1   :  { %3262 = vmatpush.bf16.msrb.mxu0 %v5849_v45  ;;  %3275 = vmatpush.bf16.msrb.mxu1 %v5977_v13  ;;  %v2241_v3 = vpop.f32.mrf.mxu2  ;;  %v7304_v13 = vld [vmem:[#allocation5 + $0x2ac] sm:$0xf] }
 0x1d2   :  { %3200 = vmatpush.bf16.msrb.mxu3 %v6177_v63  ;;  %v2254_v45 = vpop.f32.mrf.mxu3  ;;  %3239 = vmatpush.bf16.msra.mxu2 %v6053_v1  ;;  %v6137_v5 = vor.u32 %v7304_v13, %v6134_v15  ;;  %v6245_v1 = vor.u32 %v7334_v47, %v6244_v60  ;;  %v6229_v3 = vor.u32 %v7330_v37, %v6228_v22  ;;  %v7322_v13 = vld [vmem:[#allocation5 + $0x334] sm:$0xf0]  ;;  %v6364_v60 = vld [vmem:[#allocation7 + $0x80] sm:$0xf]  ;;  %v7365_v47 = vld [vmem:[#allocation7 + $0x8c] sm:$0xf0] }
 0x1d3   :  { %v6197_v15 = vor.u32 %v7322_v13, %v6196_v12  ;;  %v6540_v22 = vld [vmem:[#allocation7 + $0x1e0] sm:$0xf] }
 0x1d5   :  { %3263 = vmatpush.bf16.msrb.mxu0 %v5833_v24  ;;  %3276 = vmatpush.bf16.msrb.mxu1 %v5961_v30  ;;  %v6102_v24 = vld [vmem:[#allocation5 + $0x278] sm:$0xf0]  ;;  %v7292_v30 = vld [vmem:[#allocation5 + $0x24c] sm:$0xf] }
 0x1d6   :  { %3284 = vmatpush.bf16.msrb.mxu2 %v6169_v2  ;;  %v6105_v4 = vor.u32 %v7296_v27, %v6102_v24  ;;  %v6089_v18 = vor.u32 %v7292_v30, %v6086_v53  ;;  %v7336_v24 = vld [vmem:[#allocation5 + $0x3ac] sm:$0xf]  ;;  %v6246_v53 = vld [vmem:[#allocation5 + $0x398] sm:$0xf0] }
 0x1d7   :  { %3240 = vmatmul.bf16.vlgmr.msra.gmra.mxu2 %v7942_v52  ;;  %v7332_v30 = vld [vmem:[#allocation5 + $0x38c] sm:$0xf] }
 0x1d9   :  { %3264 = vmatpush.bf16.msrb.mxu0 %v5817_v44  ;;  %3277 = vmatpush.bf16.msrb.mxu1 %v5945_v7  ;;  %v6292_v7 = vld [vmem:[#allocation5 + $0x3e8] sm:$0xf] }
 0x1da   :  { %3285 = vmatpush.bf16.msrb.mxu2 %v6153_v6  ;;  %v6293_v59 = vor.u32 %v7346_v43, %v6292_v7  ;;  %v6213_v6 = vor.u32 %v7326_v9, %v6212_v8  ;;  %v7320_v7 = vld [vmem:[#allocation5 + $0x32c] sm:$0xf]  ;;  %v6198_v43 = vld [vmem:[#allocation5 + $0x338] sm:$0xf0] }
 0x1dd   :  { %3265 = vmatpush.bf16.msrb.mxu0 %v5801_v36  ;;  %3278 = vmatpush.bf16.msrb.mxu1 %v5929_v57  ;;  %v2265_v21 = vpop.f32.mrf.mxu0  ;;  %v6277_v36 = vor.u32 %v7342_v54, %v6276_v51  ;;  %v7338_v57 = vld [vmem:[#allocation5 + $0x3b4] sm:$0xf0]  ;;  %v6201_v51 = vor.u32 %v7320_v7, %v6198_v43 }
 0x1de   :  { %3286 = vmatpush.bf16.msrb.mxu2 %v6137_v5  ;;  %v2266_v29 = vadd.f32 %v2265_v21, %v2253_v28  ;;  %v6261_v19 = vor.u32 %v7338_v57, %v6260_v56  ;;  %v6180_v5 = vld [vmem:[#allocation5 + $0x308] sm:$0xf]  ;;  %v6262_v28 = vld [vmem:[#allocation5 + $0x3b8] sm:$0xf0]  ;;  %v6380_v57 = vld [vmem:[#allocation7 + $0xa0] sm:$0xf] }
 0x1df   :  { %v2278_v23 = vpop.f32.mrf.mxu1  ;;  %v6181_v21 = vor.u32 %v7318_v16, %v6180_v5  ;;  %v7405_v5 = vld [vmem:[#allocation7 + $0x1cc] sm:$0xf0] }
 0x1e0   :  { %3266 = vmatmul.bf16.vlgmr.msrb.gmra.mxu0 %v7921_v39  ;;  %3279 = vmatmul.bf16.vlgmr.msrb.gmra.mxu1 %v7923_v46  ;;  %v7300_v39 = vld [vmem:[#allocation5 + $0x28c] sm:$0xf]  ;;  %v2279_v10 = vadd.f32 %v2278_v23, %v2266_v29  ;;  %v6265_v29 = vor.u32 %v7336_v24, %v6262_v28 }
 0x1e1   :  { %v6121_v46 = vor.u32 %v7300_v39, %v6118_v20  ;;  %v7344_v39 = vld [vmem:[#allocation5 + $0x3ec] sm:$0xf]  ;;  %v6294_v20 = vld [vmem:[#allocation5 + $0x3f8] sm:$0xf0] }
 0x1e2   :  { %v6297_v17 = vor.u32 %v7344_v39, %v6294_v20  ;;  %v7340_v23 = vld [vmem:[#allocation5 + $0x3cc] sm:$0xf]  ;;  %v6316_v39 = vld [vmem:[#allocation7 + $0x20] sm:$0xf]  ;;  %v7353_v20 = vld [vmem:[#allocation7 + $0x2c] sm:$0xf0] }
 0x1e3   :  { %3287 = vmatpush.bf16.msrb.mxu2 %v6121_v46  ;;  %v6278_v46 = vld [vmem:[#allocation5 + $0x3d8] sm:$0xf0] }
 0x1e4   :  { %v6281_v27 = vor.u32 %v7340_v23, %v6278_v46  ;;  %v7401_v23 = vld [vmem:[#allocation7 + $0x1ac] sm:$0xf0] }
 0x1e5   :  { %v2267_v31 = vpop.f32.mrf.mxu0 }
 0x1e7   :  { %v2280_v32 = vpop.f32.mrf.mxu1  ;;  %3288 = vmatpush.bf16.msrb.mxu2 %v6105_v4  ;;  %v2455_v4 = vperm.slane %v7966_v55, 1 }
 0x1e9   :  { %v2291_v33 = vpop.f32.mrf.mxu2 }
 0x1ea   :  { %v2292_v35 = vadd.f32 %v2291_v33, %v2279_v10  ;;  %v2304_v14 = vpop.f32.mrf.mxu3  ;;  %v6249_v10 = vor.u32 %v7332_v30, %v6246_v53  ;;  %v6230_v33 = vld [vmem:[#allocation5 + $0x378] sm:$0xf0]  ;;  %v6492_v30 = vld [vmem:[#allocation7 + $0x180] sm:$0xf] }
 0x1eb   :  { %3289 = vmatpush.bf16.msrb.mxu2 %v6089_v18 }
 0x1ec   :  { %v2305_v44 = vadd.f32 %v2304_v14, %v2292_v35  ;;  %v6233_v35 = vor.u32 %v7328_v34, %v6230_v33  ;;  %v7324_v14 = vld [vmem:[#allocation5 + $0x34c] sm:$0xf]  ;;  %v6476_v33 = vld [vmem:[#allocation7 + $0x160] sm:$0xf] }
 0x1ee   :  { %vm2311_vm12 = vcmp.gt.f32.partialorder %v2305_v44, 0.0  ;;  %v2315_v25 = vmul.f32 0.01, %v2305_v44 }
 0x1ef   :  { %3290 = vmatpush.bf16.msrb.mxu2 %v6073_v40  ;;  %v6214_v40 = vld [vmem:[#allocation5 + $0x358] sm:$0xf0] }
 0x1f0   :  { %v2319_v48 = vsel %vm2311_vm12, %v2305_v44, %v2315_v25  ;;  %v6217_v42 = vor.u32 %v7324_v14, %v6214_v40  ;;  %v6412_v25 = vld [vmem:[#allocation7 + $0xe0] sm:$0xf] }
 0x1f1   :  { %v7960_v49 = vpack.c.bf16 %v2319_v48, %v2319_v48  ;;  %v2293_v50 = vpop.f32.mrf.mxu2  ;;  %v6668_v14 = vld [vmem:[#allocation7 + $0x2e0] sm:$0xf] }
 0x1f2   :  { %v2306_v11 = vpop.f32.mrf.mxu3  ;;  %v7373_v50 = vld [vmem:[#allocation7 + $0xcc] sm:$0xf0] }
 0x1f3   :  { %3291 = vmatpush.bf16.msrb.mxu2 %v6057_v38  ;;  %3149 = vmatmul.bf16.vlgmr.msra.gmra.mxu3 %v7960_v49  ;;  %v7377_v38 = vld [vmem:[#allocation7 + $0xec] sm:$0xf0]  ;;  %v7316_v11 = vld [vmem:[#allocation5 + $0x30c] sm:$0xf] }
 0x1f4   :  { %3245 = vmatpush.bf16.msra.mxu3 %v6293_v59  ;;  %v6413_v48 = vor.u32 %v7377_v38, %v6412_v25  ;;  %v6396_v59 = vld [vmem:[#allocation7 + $0xc0] sm:$0xf] }
 0x1f5   :  { %v6397_v54 = vor.u32 %v7373_v50, %v6396_v59  ;;  %v6460_v38 = vld [vmem:[#allocation7 + $0x140] sm:$0xf]  ;;  %v7437_v50 = vld [vmem:[#allocation7 + $0x2cc] sm:$0xf0] }
 0x1f6   :  { %3292 = vmatmul.bf16.vlgmr.msrb.gmra.mxu2 %v7942_v52  ;;  %4104 = vmatpush.bf16.msra.mxu0 %v6413_v48  ;;  %v7389_v48 = vld [vmem:[#allocation7 + $0x14c] sm:$0xf0]  ;;  %v6652_v59 = vld [vmem:[#allocation7 + $0x2c0] sm:$0xf] }
 0x1f8   :  { %3246 = vmatpush.bf16.msra.mxu3 %v6277_v36  ;;  %v6182_v36 = vld [vmem:[#allocation5 + $0x318] sm:$0xf0] }
 0x1f9   :  { %v6185_v56 = vor.u32 %v7316_v11, %v6182_v36  ;;  %v6461_v11 = vor.u32 %v7389_v48, %v6460_v38  ;;  %v6653_v36 = vor.u32 %v7437_v50, %v6652_v59  ;;  %v7347_v48 = vld [vmem:[#allocation7 + $0x4] sm:$0xf]  ;;  %v6302_v59 = vld [vmem:[#allocation7 + $0x10] sm:$0xf0] }
 0x1fa   :  { %4105 = vmatpush.bf16.msra.mxu0 %v6397_v54  ;;  %v6382_v54 = vld [vmem:[#allocation7 + $0xb0] sm:$0xf0]  ;;  %v7395_v50 = vld [vmem:[#allocation7 + $0x184] sm:$0xf] }
 0x1fc   :  { %3247 = vmatpush.bf16.msra.mxu3 %v6261_v19 }
 0x1fd   :  { %v3111_v61 = vpop.f32.mrf.mxu0  ;;  %v3124_v63 = vpop.f32.mrf.mxu1 }
 0x1fe   :  { %v3112_v62 = vadd.f32 %v3111_v61, %v2454_v58  ;;  %v7369_v58 = vld [vmem:[#allocation7 + $0xac] sm:$0xf0]  ;;  %v6365_v61 = vor.u32 %v7365_v47, %v6364_v60  ;;  %v7363_v47 = vld [vmem:[#allocation7 + $0x84] sm:$0xf] }
 0x1ff   :  { %v6381_v19 = vor.u32 %v7369_v58, %v6380_v57  ;;  %v7385_v58 = vld [vmem:[#allocation7 + $0x12c] sm:$0xf0] }
 0x200   :  { %v7970_v2 = vadd.f32 %v3124_v63, %v3112_v62  ;;  %3248 = vmatpush.bf16.msra.mxu3 %v6245_v1  ;;  %v2456_v62 = vperm.slane %v7966_v55, 2  ;;  %v6348_v63 = vld [vmem:[#allocation7 + $0x60] sm:$0xf]  ;;  %v7361_v1 = vld [vmem:[#allocation7 + $0x6c] sm:$0xf0] }
 0x201   :  { %4106 = vmatpush.bf16.msra.mxu0 %v6381_v19  ;;  %v6349_v37 = vor.u32 %v7361_v1, %v6348_v63  ;;  %v6636_v19 = vld [vmem:[#allocation7 + $0x2a0] sm:$0xf]  ;;  %v7433_v60 = vld [vmem:[#allocation7 + $0x2ac] sm:$0xf0] }
 0x202   :  { %v6637_v63 = vor.u32 %v7433_v60, %v6636_v19  ;;  %v6428_v1 = vld [vmem:[#allocation7 + $0x100] sm:$0xf]  ;;  %v7473_v60 = vld [vmem:[#allocation7 + $0x3ec] sm:$0xf0] }
 0x203   :  { %3201 = vmatmul.bf16.vlgmr.msrb.gmra.mxu3 %v7960_v49 }
 0x204   :  { %3249 = vmatpush.bf16.msra.mxu3 %v6229_v3  ;;  %v7409_v3 = vld [vmem:[#allocation7 + $0x1ec] sm:$0xf0] }
 0x205   :  { %v3113_v52 = vpop.f32.mrf.mxu0  ;;  %v3126_v45 = vpop.f32.mrf.mxu1  ;;  %4107 = vmatpush.bf16.msra.mxu0 %v6365_v61  ;;  %v6541_v9 = vor.u32 %v7409_v3, %v6540_v22  ;;  %v6366_v61 = vld [vmem:[#allocation7 + $0x90] sm:$0xf0]  ;;  %v7381_v22 = vld [vmem:[#allocation7 + $0x10c] sm:$0xf0]  ;;  %v6620_v3 = vld [vmem:[#allocation7 + $0x280] sm:$0xf] }
 0x206   :  { %v6332_v52 = vld [vmem:[#allocation7 + $0x40] sm:$0xf]  ;;  %v7357_v45 = vld [vmem:[#allocation7 + $0x4c] sm:$0xf0] }
 0x207   :  { %4117 = vmatpush.bf16.msra.mxu1 %v6541_v9  ;;  %v7359_v9 = vld [vmem:[#allocation7 + $0x64] sm:$0xf] }
 0x208   :  { %3250 = vmatpush.bf16.msra.mxu3 %v6213_v6  ;;  %v6524_v6 = vld [vmem:[#allocation7 + $0x1c0] sm:$0xf] }
 0x209   :  { %4108 = vmatpush.bf16.msra.mxu0 %v6349_v37  ;;  %v6369_v37 = vor.u32 %v7363_v47, %v6366_v61  ;;  %v7391_v47 = vld [vmem:[#allocation7 + $0x164] sm:$0xf]  ;;  %v6478_v61 = vld [vmem:[#allocation7 + $0x170] sm:$0xf0] }
 0x20c   :  { %3251 = vmatpush.bf16.msra.mxu3 %v6197_v15  ;;  %v6333_v15 = vor.u32 %v7357_v45, %v6332_v52  ;;  %v6350_v45 = vld [vmem:[#allocation7 + $0x70] sm:$0xf0] }
 0x20e   :  { %4109 = vmatpush.bf16.msra.mxu0 %v6333_v15  ;;  %v6429_v15 = vor.u32 %v7381_v22, %v6428_v1  ;;  %v7439_v1 = vld [vmem:[#allocation7 + $0x2e4] sm:$0xf]  ;;  %v6670_v22 = vld [vmem:[#allocation7 + $0x2f0] sm:$0xf0] }
 0x210   :  { %3252 = vmatpush.bf16.msra.mxu3 %v6181_v21  ;;  %v6508_v21 = vld [vmem:[#allocation7 + $0x1a0] sm:$0xf] }
 0x211   :  { %v6509_v24 = vor.u32 %v7401_v23, %v6508_v21  ;;  %v7425_v21 = vld [vmem:[#allocation7 + $0x26c] sm:$0xf0]  ;;  %v6334_v23 = vld [vmem:[#allocation7 + $0x50] sm:$0xf0] }
 0x213   :  { %3253 = vmatmul.bf16.vlgmr.msra.gmra.mxu3 %v7960_v49 }
 0x214   :  { %3297 = vmatpush.bf16.msrb.mxu3 %v6297_v17  ;;  %v6317_v17 = vor.u32 %v7353_v20, %v6316_v39  ;;  %v6604_v20 = vld [vmem:[#allocation7 + $0x260] sm:$0xf] }
 0x216   :  { %4110 = vmatpush.bf16.msra.mxu0 %v6317_v17  ;;  %v7355_v17 = vld [vmem:[#allocation7 + $0x44] sm:$0xf] }
 0x218   :  { %3298 = vmatpush.bf16.msrb.mxu3 %v6281_v27 }
 0x21c   :  { %3299 = vmatpush.bf16.msrb.mxu3 %v6265_v29  ;;  %v7349_v29 = vld [vmem:[#allocation7 + $0xc] sm:$0xf0] }
 0x21d   :  { %v3163_v31 = vpop.f32.mrf.mxu0  ;;  %v3176_v18 = vpop.f32.mrf.mxu1 }
 0x21e   :  { %v3164_v32 = vadd.f32 %v3163_v31, %v2455_v4  ;;  %v6300_v4 = vld [vmem:[#allocation7] sm:$0xf]  ;;  %v7397_v31 = vld [vmem:[#allocation7 + $0x18c] sm:$0xf0] }
 0x21f   :  { %v6301_v53 = vor.u32 %v7349_v29, %v6300_v4 }
 0x220   :  { %v7975_v0 = vadd.f32 %v3176_v18, %v3164_v32  ;;  %3300 = vmatpush.bf16.msrb.mxu3 %v6249_v10  ;;  %v7375_v32 = vld [vmem:[#allocation7 + $0xe4] sm:$0xf]  ;;  %v6414_v18 = vld [vmem:[#allocation7 + $0xf0] sm:$0xf0]  ;;  %v6493_v10 = vor.u32 %v7397_v31, %v6492_v30  ;;  %v6605_v30 = vor.u32 %v7425_v21, %v6604_v20  ;;  %v7465_v20 = vld [vmem:[#allocation7 + $0x3ac] sm:$0xf0] }
 0x221   :  { %v6417_v34 = vor.u32 %v7375_v32, %v6414_v18  ;;  %4111 = vmatpush.bf16.msra.mxu0 %v6301_v53  ;;  %v6588_v18 = vld [vmem:[#allocation7 + $0x240] sm:$0xf] }
 0x224   :  { %3301 = vmatpush.bf16.msrb.mxu3 %v6233_v35  ;;  %v7393_v35 = vld [vmem:[#allocation7 + $0x16c] sm:$0xf0] }
 0x225   :  { %v3165_v44 = vpop.f32.mrf.mxu0  ;;  %v3178_v41 = vpop.f32.mrf.mxu1  ;;  %4156 = vmatpush.bf16.msrb.mxu0 %v6417_v34  ;;  %v6477_v40 = vor.u32 %v7393_v35, %v6476_v33  ;;  %v7351_v33 = vld [vmem:[#allocation7 + $0x24] sm:$0xf]  ;;  %v6318_v35 = vld [vmem:[#allocation7 + $0x30] sm:$0xf0] }
 0x226   :  { %v7441_v44 = vld [vmem:[#allocation7 + $0x2ec] sm:$0xf0]  ;;  %v7371_v41 = vld [vmem:[#allocation7 + $0xc4] sm:$0xf] }
 0x227   :  { %v6669_v43 = vor.u32 %v7441_v44, %v6668_v14  ;;  %v7399_v14 = vld [vmem:[#allocation7 + $0x1a4] sm:$0xf]  ;;  %v6510_v44 = vld [vmem:[#allocation7 + $0x1b0] sm:$0xf0] }
 0x228   :  { %3302 = vmatpush.bf16.msrb.mxu3 %v6217_v42  ;;  %v6398_v42 = vld [vmem:[#allocation7 + $0xd0] sm:$0xf0] }
 0x229   :  { %v6401_v25 = vor.u32 %v7371_v41, %v6398_v42  ;;  %4130 = vmatpush.bf16.msra.mxu2 %v6669_v43  ;;  %v6513_v42 = vor.u32 %v7399_v14, %v6510_v44  ;;  %v6572_v43 = vld [vmem:[#allocation7 + $0x220] sm:$0xf]  ;;  %v7457_v14 = vld [vmem:[#allocation7 + $0x36c] sm:$0xf0]  ;;  %v7423_v44 = vld [vmem:[#allocation7 + $0x264] sm:$0xf] }
 0x22b   :  { %4157 = vmatpush.bf16.msrb.mxu0 %v6401_v25  ;;  %v7417_v25 = vld [vmem:[#allocation7 + $0x22c] sm:$0xf0] }
 0x22c   :  { %3303 = vmatpush.bf16.msrb.mxu3 %v6201_v51  ;;  %v7367_v51 = vld [vmem:[#allocation7 + $0xa4] sm:$0xf]  ;;  %v6573_v38 = vor.u32 %v7417_v25, %v6572_v43  ;;  %v7453_v43 = vld [vmem:[#allocation7 + $0x34c] sm:$0xf0] }
 0x22d   :  { %v6385_v57 = vor.u32 %v7367_v51, %v6382_v54  ;;  %4131 = vmatpush.bf16.msra.mxu2 %v6653_v36  ;;  %v6305_v54 = vor.u32 %v7347_v48, %v6302_v59  ;;  %v6590_v48 = vld [vmem:[#allocation7 + $0x250] sm:$0xf0] }
 0x22f   :  { %4158 = vmatpush.bf16.msrb.mxu0 %v6385_v57  ;;  %v7413_v57 = vld [vmem:[#allocation7 + $0x20c] sm:$0xf0] }
 0x230   :  { %3304 = vmatpush.bf16.msrb.mxu3 %v6185_v56  ;;  %v6444_v56 = vld [vmem:[#allocation7 + $0x120] sm:$0xf] }
 0x231   :  { %4132 = vmatpush.bf16.msra.mxu2 %v6637_v63  ;;  %v6481_v63 = vor.u32 %v7391_v47, %v6478_v61  ;;  %v7378_v47 = vld [vmem:[#allocation7 + $0xf4] sm:$0xf0] }
 0x233   :  { %3305 = vmatmul.bf16.vlgmr.msrb.gmra.mxu3 %v7960_v49  ;;  %v6525_v49 = vor.u32 %v7405_v5, %v6524_v6  ;;  %v7407_v6 = vld [vmem:[#allocation7 + $0x1e4] sm:$0xf]  ;;  %4159 = vmatpush.bf16.msrb.mxu0 %v6369_v37  ;;  %v6673_v37 = vor.u32 %v7439_v1, %v6670_v22  ;;  %v6404_v1 = vld [vmem:[#allocation7 + $0xc8] sm:$0xf]  ;;  %v6684_v22 = vld [vmem:[#allocation7 + $0x300] sm:$0xf] }
 0x235   :  { %4118 = vmatpush.bf16.msra.mxu1 %v6525_v49  ;;  %v6353_v49 = vor.u32 %v7359_v9, %v6350_v45  ;;  %v7387_v45 = vld [vmem:[#allocation7 + $0x144] sm:$0xf] }
 0x236   :  { %v7981_v46 = vpop.f32.mrf.mxu2 }
 0x237   :  { %4160 = vmatpush.bf16.msrb.mxu0 %v6353_v49 }
 0x239   :  { %4119 = vmatpush.bf16.msra.mxu1 %v6509_v24  ;;  %v6526_v24 = vld [vmem:[#allocation7 + $0x1d0] sm:$0xf0] }
 0x23d   :  { %v3215_v8 = vpop.f32.mrf.mxu0  ;;  %v3228_v13 = vpop.f32.mrf.mxu1  ;;  %4120 = vmatpush.bf16.msra.mxu1 %v6493_v10  ;;  %v7421_v10 = vld [vmem:[#allocation7 + $0x24c] sm:$0xf0] }
 0x23e   :  { %v3216_v12 = vadd.f32 %v3215_v8, %v2456_v62  ;;  %v3139_v7 = vpop.f32.mrf.mxu2  ;;  %v6445_v62 = vor.u32 %v7385_v58, %v6444_v56  ;;  %v7429_v8 = vld [vmem:[#allocation7 + $0x28c] sm:$0xf0]  ;;  %v6589_v34 = vor.u32 %v7421_v10, %v6588_v18  ;;  %v6556_v56 = vld [vmem:[#allocation7 + $0x200] sm:$0xf]  ;;  %v7427_v18 = vld [vmem:[#allocation7 + $0x284] sm:$0xf] }
 0x23f   :  { %v6621_v5 = vor.u32 %v7429_v8, %v6620_v3  ;;  %v6796_v58 = vld [vmem:[#allocation7 + $0x3e0] sm:$0xf]  ;;  %v6557_v19 = vor.u32 %v7413_v57, %v6556_v56  ;;  %v7469_v8 = vld [vmem:[#allocation7 + $0x3cc] sm:$0xf0] }
 0x240   :  { %v7979_v16 = vadd.f32 %v3228_v13, %v3216_v12  ;;  %v6542_v12 = vld [vmem:[#allocation7 + $0x1f0] sm:$0xf0]  ;;  %v2457_v13 = vperm.slane %v7966_v55, 3  ;;  %v6337_v55 = vor.u32 %v7355_v17, %v6334_v23  ;;  %v6780_v3 = vld [vmem:[#allocation7 + $0x3c0] sm:$0xf] }
 0x241   :  { %4121 = vmatpush.bf16.msra.mxu1 %v6477_v40  ;;  %v6545_v39 = vor.u32 %v7407_v6, %v6542_v12  ;;  %4133 = vmatpush.bf16.msra.mxu2 %v6621_v5  ;;  %v6321_v40 = vor.u32 %v7351_v33, %v6318_v35  ;;  %v6781_v9 = vor.u32 %v7469_v8, %v6780_v3  ;;  %v6462_v6 = vld [vmem:[#allocation7 + $0x150] sm:$0xf0]  ;;  %v7435_v12 = vld [vmem:[#allocation7 + $0x2c4] sm:$0xf]  ;;  %v6732_v35 = vld [vmem:[#allocation7 + $0x360] sm:$0xf] }
 0x242   :  { %4161 = vmatpush.bf16.msrb.mxu0 %v6337_v55  ;;  %v6654_v5 = vld [vmem:[#allocation7 + $0x2d0] sm:$0xf0]  ;;  %v7383_v17 = vld [vmem:[#allocation7 + $0x124] sm:$0xf] }
 0x243   :  { %v6657_v49 = vor.u32 %v7435_v12, %v6654_v5  ;;  %v6446_v23 = vld [vmem:[#allocation7 + $0x130] sm:$0xf0]  ;;  %v7411_v3 = vld [vmem:[#allocation7 + $0x204] sm:$0xf] }
 0x244   :  { %v6558_v8 = vld [vmem:[#allocation7 + $0x210] sm:$0xf0] }
 0x245   :  { %v3217_v27 = vpop.f32.mrf.mxu0  ;;  %v3230_v28 = vpop.f32.mrf.mxu1  ;;  %4122 = vmatpush.bf16.msra.mxu1 %v6461_v11  ;;  %4134 = vmatpush.bf16.msra.mxu2 %v6605_v30  ;;  %v6494_v11 = vld [vmem:[#allocation7 + $0x190] sm:$0xf0]  ;;  %v7461_v30 = vld [vmem:[#allocation7 + $0x38c] sm:$0xf0]  ;;  %v6561_v12 = vor.u32 %v7411_v3, %v6558_v8  ;;  %v7350_v3 = vld [vmem:[#allocation7 + $0x14] sm:$0xf0] }
 0x246   :  { %v7983_v52 = vpop.f32.mrf.mxu2  ;;  %v7403_v27 = vld [vmem:[#allocation7 + $0x1c4] sm:$0xf]  ;;  %4162 = vmatpush.bf16.msrb.mxu0 %v6321_v40  ;;  %v6497_v36 = vor.u32 %v7395_v50, %v6494_v11  ;;  %v6733_v40 = vor.u32 %v7457_v14, %v6732_v35  ;;  %v3138_v50 = vadd.f32 %v7981_v46, %v7970_v2  ;;  %v6700_v11 = vld [vmem:[#allocation7 + $0x320] sm:$0xf]  ;;  %v7362_v35 = vld [vmem:[#allocation7 + $0x74] sm:$0xf0] }
 0x247   :  { %v6529_v53 = vor.u32 %v7403_v27, %v6526_v24  ;;  %v7431_v27 = vld [vmem:[#allocation7 + $0x2a4] sm:$0xf]  ;;  %v6449_v24 = vor.u32 %v7383_v17, %v6446_v23  ;;  %v6782_v23 = vld [vmem:[#allocation7 + $0x3d0] sm:$0xf0]  ;;  %v6548_v14 = vld [vmem:[#allocation7 + $0x1e8] sm:$0xf] }
 0x248   :  { %v7467_v17 = vld [vmem:[#allocation7 + $0x3c4] sm:$0xf]  ;;  %v6500_v8 = vld [vmem:[#allocation7 + $0x188] sm:$0xf] }
 0x249   :  { %4123 = vmatpush.bf16.msra.mxu1 %v6445_v62  ;;  %4135 = vmatpush.bf16.msra.mxu2 %v6589_v34  ;;  %v6797_v62 = vor.u32 %v7473_v60, %v6796_v58  ;;  %v6622_v34 = vld [vmem:[#allocation7 + $0x290] sm:$0xf0]  ;;  %v7415_v58 = vld [vmem:[#allocation7 + $0x224] sm:$0xf]  ;;  %v6420_v60 = vld [vmem:[#allocation7 + $0xe8] sm:$0xf] }
 0x24a   :  { %4163 = vmatpush.bf16.msrb.mxu0 %v6305_v54  ;;  %v6625_v33 = vor.u32 %v7427_v18, %v6622_v34  ;;  %v6421_v46 = vor.u32 %v7378_v47, %v6420_v60  ;;  %v7354_v60 = vld [vmem:[#allocation7 + $0x34] sm:$0xf0]  ;;  %v6516_v47 = vld [vmem:[#allocation7 + $0x1a8] sm:$0xf] }
 0x24b   :  { %4143 = vmatpush.bf16.msra.mxu3 %v6797_v62 }
 0x24d   :  { %4124 = vmatpush.bf16.msra.mxu1 %v6429_v15  ;;  %4136 = vmatpush.bf16.msra.mxu2 %v6573_v38  ;;  %v6465_v15 = vor.u32 %v7387_v45, %v6462_v6  ;;  %v7419_v38 = vld [vmem:[#allocation7 + $0x244] sm:$0xf]  ;;  %v7374_v45 = vld [vmem:[#allocation7 + $0xd4] sm:$0xf0] }
 0x24e   :  { %v3191_v32 = vpop.f32.mrf.mxu2  ;;  %v6593_v59 = vor.u32 %v7419_v38, %v6590_v48  ;;  %v6532_v48 = vld [vmem:[#allocation7 + $0x1c8] sm:$0xf] }
 0x24f   :  { %4144 = vmatpush.bf16.msra.mxu3 %v6781_v9  ;;  %v6430_v32 = vld [vmem:[#allocation7 + $0x110] sm:$0xf0] }
 0x251   :  { %4169 = vmatpush.bf16.msrb.mxu1 %v6545_v39  ;;  %4137 = vmatpush.bf16.msra.mxu2 %v6557_v19  ;;  %v6764_v39 = vld [vmem:[#allocation7 + $0x3a0] sm:$0xf]  ;;  %v6574_v19 = vld [vmem:[#allocation7 + $0x230] sm:$0xf0] }
 0x252   :  { %v6765_v21 = vor.u32 %v7465_v20, %v6764_v39  ;;  %v6577_v61 = vor.u32 %v7415_v58, %v6574_v19  ;;  %v6405_v39 = vor.u32 %v7374_v45, %v6404_v1  ;;  %v6388_v20 = vld [vmem:[#allocation7 + $0xa8] sm:$0xf]  ;;  %v6718_v1 = vld [vmem:[#allocation7 + $0x350] sm:$0xf0]  ;;  %v7398_v45 = vld [vmem:[#allocation7 + $0x194] sm:$0xf0] }
 0x253   :  { %v6324_v19 = vld [vmem:[#allocation7 + $0x28] sm:$0xf] }
 0x254   :  { %4145 = vmatpush.bf16.msra.mxu3 %v6765_v21  ;;  %v7370_v21 = vld [vmem:[#allocation7 + $0xb4] sm:$0xf0] }
 0x255   :  { %4170 = vmatpush.bf16.msrb.mxu1 %v6529_v53  ;;  %4182 = vmatpush.bf16.msrb.mxu2 %v6673_v37  ;;  %v7379_v53 = vld [vmem:[#allocation7 + $0x104] sm:$0xf]  ;;  %v7445_v37 = vld [vmem:[#allocation7 + $0x30c] sm:$0xf0] }
 0x256   :  { %v6433_v10 = vor.u32 %v7379_v53, %v6430_v32  ;;  %v6685_v6 = vor.u32 %v7445_v37, %v6684_v22  ;;  %v3190_v53 = vadd.f32 %v7983_v52, %v7975_v0  ;;  %v6340_v0 = vld [vmem:[#allocation7 + $0x48] sm:$0xf]  ;;  %v7358_v52 = vld [vmem:[#allocation7 + $0x54] sm:$0xf0] }
 0x257   :  { %v6308_v37 = vld [vmem:[#allocation7 + $0x8] sm:$0xf] }
 0x259   :  { %4171 = vmatpush.bf16.msrb.mxu1 %v6513_v42  ;;  %4183 = vmatpush.bf16.msrb.mxu2 %v6657_v49 }
 0x25a   :  { %v7988_v51 = vpop.f32.mrf.mxu2 }
 0x25d   :  { %v3267_v28 = vpop.f32.mrf.mxu0  ;;  %v3280_v29 = vpop.f32.mrf.mxu1  ;;  %4172 = vmatpush.bf16.msrb.mxu1 %v6497_v36  ;;  %v7449_v36 = vld [vmem:[#allocation7 + $0x32c] sm:$0xf0] }
 0x25e   :  { %v3268_v4 = vadd.f32 %v3267_v28, %v2457_v13  ;;  %v6638_v28 = vld [vmem:[#allocation7 + $0x2b0] sm:$0xf0]  ;;  %v6701_v57 = vor.u32 %v7449_v36, %v6700_v11 }
 0x25f   :  { %v6734_v11 = vld [vmem:[#allocation7 + $0x370] sm:$0xf0] }
 0x260   :  { %v7986_v31 = vadd.f32 %v3280_v29, %v3268_v4  ;;  %v6641_v4 = vor.u32 %v7431_v27, %v6638_v28  ;;  %v6748_v29 = vld [vmem:[#allocation7 + $0x380] sm:$0xf]  ;;  %v6389_v28 = vor.u32 %v7370_v21, %v6388_v20  ;;  %v6484_v20 = vld [vmem:[#allocation7 + $0x168] sm:$0xf] }
 0x261   :  { %4173 = vmatpush.bf16.msrb.mxu1 %v6481_v63  ;;  %v6749_v55 = vor.u32 %v7461_v30, %v6748_v29  ;;  %v7366_v29 = vld [vmem:[#allocation7 + $0x94] sm:$0xf0]  ;;  %v7463_v30 = vld [vmem:[#allocation7 + $0x3a4] sm:$0xf] }
 0x262   :  { %v3243_v13 = vpop.f32.mrf.mxu2  ;;  %4184 = vmatpush.bf16.msrb.mxu2 %v6641_v4  ;;  %v6372_v4 = vld [vmem:[#allocation7 + $0x88] sm:$0xf] }
 0x263   :  { %4146 = vmatpush.bf16.msra.mxu3 %v6749_v55  ;;  %v7471_v13 = vld [vmem:[#allocation7 + $0x3e4] sm:$0xf]  ;;  %v6766_v55 = vld [vmem:[#allocation7 + $0x3b0] sm:$0xf0]  ;;  %v6373_v34 = vor.u32 %v7366_v29, %v6372_v4  ;;  %v7372_v29 = vld [vmem:[#allocation7 + $0xcc] sm:$0xf] }
 0x264   :  { %v6769_v32 = vor.u32 %v7463_v30, %v6766_v55  ;;  %v7443_v30 = vld [vmem:[#allocation7 + $0x304] sm:$0xf]  ;;  %v6686_v55 = vld [vmem:[#allocation7 + $0x310] sm:$0xf0] }
 0x265   :  { %v3269_v41 = vpop.f32.mrf.mxu0  ;;  %v3282_v7 = vpop.f32.mrf.mxu1  ;;  %4174 = vmatpush.bf16.msrb.mxu1 %v6465_v15  ;;  %v6798_v15 = vld [vmem:[#allocation7 + $0x3f0] sm:$0xf0] }
 0x266   :  { %4185 = vmatpush.bf16.msrb.mxu2 %v6625_v33  ;;  %v6606_v41 = vld [vmem:[#allocation7 + $0x270] sm:$0xf0]  ;;  %v6716_v7 = vld [vmem:[#allocation7 + $0x340] sm:$0xf]  ;;  %v6801_v5 = vor.u32 %v7471_v13, %v6798_v15  ;;  %v6356_v33 = vld [vmem:[#allocation7 + $0x68] sm:$0xf]  ;;  %v3242_v13 = vadd.f32 %v7988_v51, %v7979_v16 }
 0x267   :  { %v6609_v42 = vor.u32 %v7423_v44, %v6606_v41  ;;  %4147 = vmatpush.bf16.msra.mxu3 %v6733_v40  ;;  %v6717_v25 = vor.u32 %v7453_v43, %v6716_v7  ;;  %v7410_v40 = vld [vmem:[#allocation7 + $0x1f4] sm:$0xf0]  ;;  %v7459_v44 = vld [vmem:[#allocation7 + $0x384] sm:$0xf]  ;;  %v6750_v41 = vld [vmem:[#allocation7 + $0x390] sm:$0xf0] }
 0x268   :  { %v6753_v7 = vor.u32 %v7459_v44, %v6750_v41  ;;  %v6549_v38 = vor.u32 %v7410_v40, %v6548_v14  ;;  %v7376_v15 = vld [vmem:[#allocation7 + $0xec] sm:$0xf]  ;;  %v6406_v51 = vld [vmem:[#allocation7 + $0xd8] sm:$0xf0]  ;;  %v7390_v14 = vld [vmem:[#allocation7 + $0x154] sm:$0xf0] }
 0x269   :  { %4175 = vmatpush.bf16.msrb.mxu1 %v6449_v24  ;;  %v6785_v24 = vor.u32 %v7467_v17, %v6782_v23  ;;  %v6309_v17 = vor.u32 %v7350_v3, %v6308_v37  ;;  %v6501_v23 = vor.u32 %v7398_v45, %v6500_v8  ;;  %v6660_v40 = vld [vmem:[#allocation7 + $0x2c8] sm:$0xf]  ;;  %v7438_v44 = vld [vmem:[#allocation7 + $0x2d4] sm:$0xf0]  ;;  %v7368_v41 = vld [vmem:[#allocation7 + $0xac] sm:$0xf] }
 0x26a   :  { %4186 = vmatpush.bf16.msrb.mxu2 %v6609_v42  ;;  %v6612_v3 = vld [vmem:[#allocation7 + $0x268] sm:$0xf]  ;;  %v7426_v45 = vld [vmem:[#allocation7 + $0x274] sm:$0xf0] }
 0x26b   :  { %4148 = vmatpush.bf16.msra.mxu3 %v6717_v25  ;;  %v6357_v25 = vor.u32 %v7362_v35, %v6356_v33  ;;  %v6409_v33 = vor.u32 %v7372_v29, %v6406_v51  ;;  %v6468_v35 = vld [vmem:[#allocation7 + $0x148] sm:$0xf]  ;;  %v6310_v51 = vld [vmem:[#allocation7 + $0x18] sm:$0xf0] }
 0x26c   :  { %v6580_v29 = vld [vmem:[#allocation7 + $0x228] sm:$0xf] }
 0x26d   :  { %4176 = vmatpush.bf16.msrb.mxu1 %v6433_v10 }
 0x26e   :  { %4187 = vmatpush.bf16.msrb.mxu2 %v6593_v59 }
 0x26f   :  { %4149 = vmatpush.bf16.msra.mxu3 %v6701_v57  ;;  %v6341_v57 = vor.u32 %v7358_v52, %v6340_v0  ;;  %v6452_v0 = vld [vmem:[#allocation7 + $0x128] sm:$0xf]  ;;  %v7386_v52 = vld [vmem:[#allocation7 + $0x134] sm:$0xf0] }
 0x272   :  { %4188 = vmatpush.bf16.msrb.mxu2 %v6577_v61  ;;  %v7402_v61 = vld [vmem:[#allocation7 + $0x1b4] sm:$0xf0] }
 0x273   :  { %4150 = vmatpush.bf16.msra.mxu3 %v6685_v6  ;;  %v7447_v6 = vld [vmem:[#allocation7 + $0x324] sm:$0xf] }
 0x276   :  { %v3150_v54 = vpop.f32.mrf.mxu3  ;;  %4189 = vmatpush.bf16.msrb.mxu2 %v6561_v12  ;;  %v6702_v12 = vld [vmem:[#allocation7 + $0x330] sm:$0xf0] }
 0x277   :  { %v3151_v56 = vadd.f32 %v3150_v54, %v3138_v50  ;;  %4195 = vmatpush.bf16.msrb.mxu3 %v6801_v5  ;;  %v7406_v50 = vld [vmem:[#allocation7 + $0x1d4] sm:$0xf0]  ;;  %v7455_v54 = vld [vmem:[#allocation7 + $0x364] sm:$0xf]  ;;  %v6422_v5 = vld [vmem:[#allocation7 + $0xf8] sm:$0xf0] }
 0x278   :  { %v6737_v36 = vor.u32 %v7455_v54, %v6734_v11  ;;  %v6533_v58 = vor.u32 %v7406_v50, %v6532_v48  ;;  %v6425_v4 = vor.u32 %v7376_v15, %v6422_v5  ;;  %v6644_v48 = vld [vmem:[#allocation7 + $0x2a8] sm:$0xf]  ;;  %v7434_v50 = vld [vmem:[#allocation7 + $0x2b4] sm:$0xf0]  ;;  %v7364_v54 = vld [vmem:[#allocation7 + $0x8c] sm:$0xf]  ;;  %v6613_v5 = vor.u32 %v7426_v45, %v6612_v3 }
 0x279   :  { %vm3310_vm13 = vcmp.gt.f32.partialorder %v3151_v56, 0.0  ;;  %v3314_v62 = vmul.f32 0.01, %v3151_v56  ;;  %v7992_v63 = vpop.f32.mrf.mxu2  ;;  %v6374_v11 = vld [vmem:[#allocation7 + $0x98] sm:$0xf0] }
 0x27a   :  { %v6534_v15 = vld [vmem:[#allocation7 + $0x1d8] sm:$0xf0]  ;;  %v7432_v3 = vld [vmem:[#allocation7 + $0x2ac] sm:$0xf] }
 0x27b   :  { %v3318_v2 = vsel %vm3310_vm13, %v3151_v56, %v3314_v62  ;;  %4196 = vmatpush.bf16.msrb.mxu3 %v6785_v24  ;;  %v7451_v62 = vld [vmem:[#allocation7 + $0x344] sm:$0xf]  ;;  %v6676_v24 = vld [vmem:[#allocation7 + $0x2e8] sm:$0xf] }
 0x27c   :  { %v7994_v9 = vpack.c.bf16 %v3318_v2, %v3318_v2  ;;  %v6721_v22 = vor.u32 %v7451_v62, %v6718_v1  ;;  %v6325_v2 = vor.u32 %v7354_v60, %v6324_v19  ;;  %v7382_v19 = vld [vmem:[#allocation7 + $0x114] sm:$0xf0]  ;;  %v6628_v60 = vld [vmem:[#allocation7 + $0x288] sm:$0xf]  ;;  %v6358_v62 = vld [vmem:[#allocation7 + $0x78] sm:$0xf0] }
 0x27d   :  { %v7408_v1 = vld [vmem:[#allocation7 + $0x1ec] sm:$0xf] }
 0x27e   :  { %v3152_v49 = vpop.f32.mrf.mxu3  ;;  %4112 = vmatmul.bf16.vlgmr.msra.gmra.mxu0 %v7994_v9 }
 0x27f   :  { %4208 = vmatpush.bf16.msra.mxu0 %v6421_v46  ;;  %4197 = vmatpush.bf16.msrb.mxu3 %v6769_v32  ;;  %v6517_v46 = vor.u32 %v7402_v61, %v6516_v47  ;;  %v6705_v49 = vor.u32 %v7447_v6, %v6702_v12  ;;  %v7430_v47 = vld [vmem:[#allocation7 + $0x294] sm:$0xf0]  ;;  %v7360_v61 = vld [vmem:[#allocation7 + $0x6c] sm:$0xf]  ;;  %v6342_v12 = vld [vmem:[#allocation7 + $0x58] sm:$0xf0] }
 0x280   :  { %v6361_v37 = vor.u32 %v7360_v61, %v6358_v62  ;;  %v7356_v6 = vld [vmem:[#allocation7 + $0x4c] sm:$0xf] }
 0x281   :  { %v3295_v27 = vpop.f32.mrf.mxu2 }
 0x282   :  { %v7394_v27 = vld [vmem:[#allocation7 + $0x174] sm:$0xf0] }
 0x283   :  { %4209 = vmatpush.bf16.msra.mxu0 %v6405_v39  ;;  %4198 = vmatpush.bf16.msrb.mxu3 %v6753_v7 }
 0x286   :  { %v3202_v18 = vpop.f32.mrf.mxu3 }
 0x287   :  { %v3203_v10 = vadd.f32 %v3202_v18, %v3190_v53  ;;  %4210 = vmatpush.bf16.msra.mxu0 %v6389_v28  ;;  %4199 = vmatpush.bf16.msrb.mxu3 %v6737_v36  ;;  %v7442_v28 = vld [vmem:[#allocation7 + $0x2f4] sm:$0xf0]  ;;  %v6689_v53 = vor.u32 %v7443_v30, %v6686_v55  ;;  %v6485_v18 = vor.u32 %v7394_v27, %v6484_v20  ;;  %v7400_v27 = vld [vmem:[#allocation7 + $0x1ac] sm:$0xf] }
 0x288   :  { %v6453_v36 = vor.u32 %v7386_v52, %v6452_v0  ;;  %v7418_v55 = vld [vmem:[#allocation7 + $0x234] sm:$0xf0] }
 0x289   :  { %vm3311_vm14 = vcmp.gt.f32.partialorder %v3203_v10, 0.0  ;;  %v3315_v42 = vmul.f32 0.01, %v3203_v10 }
 0x28b   :  { %v3319_v43 = vsel %vm3311_vm14, %v3203_v10, %v3315_v42  ;;  %4211 = vmatpush.bf16.msra.mxu0 %v6373_v34  ;;  %4200 = vmatpush.bf16.msrb.mxu3 %v6721_v22  ;;  %v6677_v34 = vor.u32 %v7442_v28, %v6676_v24  ;;  %v6390_v42 = vld [vmem:[#allocation7 + $0xb8] sm:$0xf0] }
 0x28c   :  { %v7999_v59 = vpack.c.bf16 %v3319_v43, %v3319_v43  ;;  %v6469_v43 = vor.u32 %v7390_v14, %v6468_v35  ;;  %v6550_v22 = vld [vmem:[#allocation7 + $0x1f8] sm:$0xf0]  ;;  %v6581_v14 = vor.u32 %v7418_v55, %v6580_v29  ;;  %v7454_v55 = vld [vmem:[#allocation7 + $0x354] sm:$0xf0] }
 0x28d   :  { %v6553_v8 = vor.u32 %v7408_v1, %v6550_v22  ;;  %v6518_v24 = vld [vmem:[#allocation7 + $0x1b8] sm:$0xf0]  ;;  %v6772_v22 = vld [vmem:[#allocation7 + $0x3a8] sm:$0xf] }
 0x28e   :  { %v3204_v56 = vpop.f32.mrf.mxu3  ;;  %4125 = vmatmul.bf16.vlgmr.msra.gmra.mxu1 %v7999_v59  ;;  %4164 = vmatmul.bf16.vlgmr.msrb.gmra.mxu0 %v7994_v9  ;;  %v6521_v30 = vor.u32 %v7400_v27, %v6518_v24  ;;  %v7458_v27 = vld [vmem:[#allocation7 + $0x374] sm:$0xf0]  ;;  %v7424_v24 = vld [vmem:[#allocation7 + $0x26c] sm:$0xf] }
 0x28f   :  { %4212 = vmatpush.bf16.msra.mxu0 %v6357_v25  ;;  %4221 = vmatpush.bf16.msra.mxu1 %v6549_v38  ;;  %v6661_v25 = vor.u32 %v7438_v44, %v6660_v40  ;;  %v6393_v38 = vor.u32 %v7368_v41, %v6390_v42  ;;  %v6645_v56 = vor.u32 %v7434_v50, %v6644_v48  ;;  %v7414_v44 = vld [vmem:[#allocation7 + $0x214] sm:$0xf0]  ;;  %v6804_v41 = vld [vmem:[#allocation7 + $0x3e8] sm:$0xf] }
 0x290   :  { %4201 = vmatpush.bf16.msrb.mxu3 %v6705_v49  ;;  %v6345_v49 = vor.u32 %v7356_v6, %v6342_v12  ;;  %v7474_v42 = vld [vmem:[#allocation7 + $0x3f4] sm:$0xf0]  ;;  %v6756_v12 = vld [vmem:[#allocation7 + $0x388] sm:$0xf] }
 0x291   :  { %v6805_v48 = vor.u32 %v7474_v42, %v6804_v41  ;;  %v7446_v41 = vld [vmem:[#allocation7 + $0x314] sm:$0xf0]  ;;  %v7412_v42 = vld [vmem:[#allocation7 + $0x20c] sm:$0xf] }
 0x293   :  { %4213 = vmatpush.bf16.msra.mxu0 %v6341_v57  ;;  %4222 = vmatpush.bf16.msra.mxu1 %v6533_v58  ;;  %v6377_v57 = vor.u32 %v7364_v54, %v6374_v11  ;;  %v6436_v58 = vld [vmem:[#allocation7 + $0x108] sm:$0xf] }
 0x294   :  { %4202 = vmatpush.bf16.msrb.mxu3 %v6689_v53  ;;  %v3294_v53 = vadd.f32 %v7992_v63, %v7986_v31  ;;  %v6678_v31 = vld [vmem:[#allocation7 + $0x2f8] sm:$0xf0] }
 0x296   :  { %v3254_v39 = vpop.f32.mrf.mxu3 }
 0x297   :  { %v3255_v21 = vadd.f32 %v3254_v39, %v3242_v13  ;;  %4214 = vmatpush.bf16.msra.mxu0 %v6325_v2  ;;  %4223 = vmatpush.bf16.msra.mxu1 %v6517_v46  ;;  %v6437_v2 = vor.u32 %v7382_v19, %v6436_v58  ;;  %v6629_v46 = vor.u32 %v7430_v47, %v6628_v60  ;;  %v7404_v13 = vld [vmem:[#allocation7 + $0x1cc] sm:$0xf]  ;;  %v6596_v39 = vld [vmem:[#allocation7 + $0x248] sm:$0xf]  ;;  %v6470_v58 = vld [vmem:[#allocation7 + $0x158] sm:$0xf0] }
 0x298   :  { %v6537_v20 = vor.u32 %v7404_v13, %v6534_v15  ;;  %v7436_v19 = vld [vmem:[#allocation7 + $0x2cc] sm:$0xf]  ;;  %v6662_v60 = vld [vmem:[#allocation7 + $0x2d8] sm:$0xf0]  ;;  %v7462_v13 = vld [vmem:[#allocation7 + $0x394] sm:$0xf0] }
 0x299   :  { %vm3312_vm15 = vcmp.gt.f32.partialorder %v3255_v21, 0.0  ;;  %v3316_v16 = vmul.f32 0.01, %v3255_v21  ;;  %v6665_v1 = vor.u32 %v7436_v19, %v6662_v60  ;;  %v7380_v15 = vld [vmem:[#allocation7 + $0x10c] sm:$0xf] }
 0x29a   :  { %v6742_v19 = vld [vmem:[#allocation7 + $0x378] sm:$0xf0] }
 0x29b   :  { %v3320_v32 = vsel %vm3312_vm15, %v3255_v21, %v3316_v16  ;;  %4215 = vmatpush.bf16.msra.mxu0 %v6309_v17  ;;  %4224 = vmatpush.bf16.msra.mxu1 %v6501_v23  ;;  %v7422_v21 = vld [vmem:[#allocation7 + $0x254] sm:$0xf0]  ;;  %v7352_v17 = vld [vmem:[#allocation7 + $0x2c] sm:$0xf]  ;;  %v6326_v23 = vld [vmem:[#allocation7 + $0x38] sm:$0xf0] }
 0x29c   :  { %v8005_v10 = vpack.c.bf16 %v3320_v32, %v3320_v32  ;;  %v6597_v28 = vor.u32 %v7422_v21, %v6596_v39  ;;  %v7348_v16 = vld [vmem:[#allocation7 + $0xc] sm:$0xf]  ;;  %v6630_v39 = vld [vmem:[#allocation7 + $0x298] sm:$0xf0] }
 0x29d   :  { %v7396_v32 = vld [vmem:[#allocation7 + $0x18c] sm:$0xf]  ;;  %v6313_v40 = vor.u32 %v7348_v16, %v6310_v51  ;;  %v6598_v51 = vld [vmem:[#allocation7 + $0x258] sm:$0xf0] }
 0x29e   :  { %v3256_v7 = vpop.f32.mrf.mxu3  ;;  %4138 = vmatmul.bf16.vlgmr.msra.gmra.mxu2 %v8005_v10  ;;  %4177 = vmatmul.bf16.vlgmr.msrb.gmra.mxu1 %v7999_v59  ;;  %v7420_v16 = vld [vmem:[#allocation7 + $0x24c] sm:$0xf] }
 0x29f   :  { %4260 = vmatpush.bf16.msrb.mxu0 %v6425_v4  ;;  %4225 = vmatpush.bf16.msra.mxu1 %v6485_v18  ;;  %v6329_v4 = vor.u32 %v7352_v17, %v6326_v23  ;;  %v6502_v18 = vld [vmem:[#allocation7 + $0x198] sm:$0xf0]  ;;  %v6740_v23 = vld [vmem:[#allocation7 + $0x368] sm:$0xf] }
 0x2a0   :  { %4216 = vmatmul.bf16.vlgmr.msra.gmra.mxu0 %v7994_v9  ;;  %4234 = vmatpush.bf16.msra.mxu2 %v6677_v34  ;;  %v6505_v7 = vor.u32 %v7396_v32, %v6502_v18  ;;  %v6601_v32 = vor.u32 %v7420_v16, %v6598_v51  ;;  %v6708_v18 = vld [vmem:[#allocation7 + $0x328] sm:$0xf]  ;;  %v7486_v16 = vld [vmem:[%s8167_s9 + $0x58] sm:$0xff] }
 0x2a1   :  { %v7498_v51 = vld [vmem:[%s8167_s9 + $0xb8] sm:$0xff] }
 0x2a3   :  { %4261 = vmatpush.bf16.msrb.mxu0 %v6409_v33  ;;  %4226 = vmatpush.bf16.msra.mxu1 %v6469_v43  ;;  %v6564_v33 = vld [vmem:[#allocation7 + $0x208] sm:$0xf]  ;;  %v7392_v43 = vld [vmem:[#allocation7 + $0x16c] sm:$0xf] }
 0x2a4   :  { %4235 = vmatpush.bf16.msra.mxu2 %v6661_v25  ;;  %v6486_v25 = vld [vmem:[#allocation7 + $0x178] sm:$0xf0]  ;;  %v6565_v52 = vor.u32 %v7414_v44, %v6564_v33  ;;  %v7416_v33 = vld [vmem:[#allocation7 + $0x22c] sm:$0xf]  ;;  %v6692_v44 = vld [vmem:[#allocation7 + $0x308] sm:$0xf] }
 0x2a5   :  { %v6489_v54 = vor.u32 %v7392_v43, %v6486_v25  ;;  %v7472_v43 = vld [vmem:[#allocation7 + $0x3ec] sm:$0xf]  ;;  %v6806_v25 = vld [vmem:[#allocation7 + $0x3f8] sm:$0xf0] }
 0x2a7   :  { %4262 = vmatpush.bf16.msrb.mxu0 %v6393_v38  ;;  %4227 = vmatpush.bf16.msra.mxu1 %v6453_v36  ;;  %v7440_v38 = vld [vmem:[#allocation7 + $0x2ec] sm:$0xf]  ;;  %v6788_v36 = vld [vmem:[#allocation7 + $0x3c8] sm:$0xf] }
 0x2a8   :  { %4236 = vmatpush.bf16.msra.mxu2 %v6645_v56  ;;  %v6681_v11 = vor.u32 %v7440_v38, %v6678_v31  ;;  %v7470_v56 = vld [vmem:[#allocation7 + $0x3d4] sm:$0xf0]  ;;  %v6693_v38 = vor.u32 %v7446_v41, %v6692_v44  ;;  %v7468_v31 = vld [vmem:[#allocation7 + $0x3cc] sm:$0xf]  ;;  %v7483_v44 = vld [vmem:[%s8167_s9 + $0x40] sm:$0xff] }
 0x2a9   :  { %v6789_v61 = vor.u32 %v7470_v56, %v6788_v36  ;;  %v7460_v36 = vld [vmem:[#allocation7 + $0x38c] sm:$0xf]  ;;  %v6758_v56 = vld [vmem:[#allocation7 + $0x398] sm:$0xf0]  ;;  %v7495_v41 = vld [vmem:[%s8167_s9 + $0xa0] sm:$0xff] }
 0x2ab   :  { %4263 = vmatpush.bf16.msrb.mxu0 %v6377_v57  ;;  %4228 = vmatpush.bf16.msra.mxu1 %v6437_v2  ;;  %v7388_v57 = vld [vmem:[#allocation7 + $0x14c] sm:$0xf]  ;;  %v7466_v2 = vld [vmem:[#allocation7 + $0x3b4] sm:$0xf0] }
 0x2ac   :  { %4237 = vmatpush.bf16.msra.mxu2 %v6629_v46  ;;  %v6473_v62 = vor.u32 %v7388_v57, %v6470_v58  ;;  %v7384_v46 = vld [vmem:[#allocation7 + $0x12c] sm:$0xf]  ;;  %v6773_v45 = vor.u32 %v7466_v2, %v6772_v22  ;;  %v6761_v57 = vor.u32 %v7460_v36, %v6758_v56  ;;  %v6710_v22 = vld [vmem:[#allocation7 + $0x338] sm:$0xf0] }
 0x2ad   :  { %v7456_v58 = vld [vmem:[#allocation7 + $0x36c] sm:$0xf] }
 0x2ae   :  { %4190 = vmatmul.bf16.vlgmr.msrb.gmra.mxu2 %v8005_v10  ;;  %4229 = vmatmul.bf16.vlgmr.msra.gmra.mxu1 %v7999_v59  ;;  %v6745_v60 = vor.u32 %v7456_v58, %v6742_v19  ;;  %v7506_v58 = vld [vmem:[%s8167_s9 + $0xf8] sm:$0xff] }
 0x2af   :  { %4264 = vmatpush.bf16.msrb.mxu0 %v6361_v37  ;;  %4273 = vmatpush.bf16.msrb.mxu1 %v6553_v8  ;;  %v6454_v37 = vld [vmem:[#allocation7 + $0x138] sm:$0xf0] }
 0x2b0   :  { %4238 = vmatpush.bf16.msra.mxu2 %v6613_v5  ;;  %v6646_v8 = vld [vmem:[#allocation7 + $0x2b8] sm:$0xf0] }
 0x2b1   :  { %v6649_v6 = vor.u32 %v7432_v3, %v6646_v8  ;;  %v6438_v5 = vld [vmem:[#allocation7 + $0x118] sm:$0xf0] }
 0x2b2   :  { %v6441_v21 = vor.u32 %v7380_v15, %v6438_v5 }
 0x2b3   :  { %4265 = vmatpush.bf16.msrb.mxu0 %v6345_v49  ;;  %4274 = vmatpush.bf16.msrb.mxu1 %v6537_v20  ;;  %v7428_v49 = vld [vmem:[#allocation7 + $0x28c] sm:$0xf]  ;;  %v6757_v20 = vor.u32 %v7462_v13, %v6756_v12 }
 0x2b4   :  { %4239 = vmatpush.bf16.msra.mxu2 %v6597_v28  ;;  %v6633_v17 = vor.u32 %v7428_v49, %v6630_v39  ;;  %v6614_v28 = vld [vmem:[#allocation7 + $0x278] sm:$0xf0]  ;;  %v7480_v13 = vld [vmem:[%s8167_s9 + $0x28] sm:$0xff] }
 0x2b5   :  { %v6617_v29 = vor.u32 %v7424_v24, %v6614_v28  ;;  %v7490_v49 = vld [vmem:[%s8167_s9 + $0x78] sm:$0xff]  ;;  %v7488_v24 = vld [vmem:[%s8167_s9 + $0x68] sm:$0xff] }
 0x2b6   :  { %v3306_v34 = vpop.f32.mrf.mxu3  ;;  %v7478_v39 = vld [vmem:[%s8167_s9 + $0x18] sm:$0xff] }
 0x2b7   :  { %v3307_v35 = vadd.f32 %v3306_v34, %v3294_v53  ;;  %4266 = vmatpush.bf16.msrb.mxu0 %v6329_v4  ;;  %4275 = vmatpush.bf16.msrb.mxu1 %v6521_v30  ;;  %v6741_v4 = vor.u32 %v7458_v27, %v6740_v23  ;;  %v6724_v30 = vld [vmem:[#allocation7 + $0x348] sm:$0xf]  ;;  %v7450_v34 = vld [vmem:[#allocation7 + $0x334] sm:$0xf0] }
 0x2b8   :  { %4240 = vmatpush.bf16.msra.mxu2 %v6581_v14  ;;  %v6725_v53 = vor.u32 %v7454_v55, %v6724_v30  ;;  %v6709_v14 = vor.u32 %v7450_v34, %v6708_v18  ;;  %v7476_v27 = vld [vmem:[%s8167_s9 + $0x8] sm:$0xff]  ;;  %v7497_v18 = vld [vmem:[%s8167_s9 + $0xb0] sm:$0xff] }
 0x2b9   :  { %vm3313_vm1 = vcmp.gt.f32.partialorder %v3307_v35, 0.0  ;;  %v3317_v0 = vmul.f32 0.01, %v3307_v35 }
 0x2bb   :  { %v3321_v63 = vsel %vm3313_vm1, %v3307_v35, %v3317_v0  ;;  %4267 = vmatpush.bf16.msrb.mxu0 %v6313_v40  ;;  %4276 = vmatpush.bf16.msrb.mxu1 %v6505_v7  ;;  %v6582_v35 = vld [vmem:[#allocation7 + $0x238] sm:$0xf0]  ;;  %v6809_v0 = vor.u32 %v7472_v43, %v6806_v25 }
 0x2bc   :  { %v8014_v50 = vpack.c.bf16 %v3321_v63, %v3321_v63  ;;  %4241 = vmatpush.bf16.msra.mxu2 %v6565_v52  ;;  %v6585_v40 = vor.u32 %v7416_v33, %v6582_v35  ;;  %v6566_v7 = vld [vmem:[#allocation7 + $0x218] sm:$0xf0]  ;;  %v7484_v33 = vld [vmem:[%s8167_s9 + $0x48] sm:$0xff] }
 0x2bd   :  { %v6790_v63 = vld [vmem:[#allocation7 + $0x3d8] sm:$0xf0]  ;;  %v7496_v35 = vld [vmem:[%s8167_s9 + $0xa8] sm:$0xff] }
 0x2be   :  { %v3308_v47 = vpop.f32.mrf.mxu3  ;;  %4151 = vmatmul.bf16.vlgmr.msra.gmra.mxu3 %v8014_v50  ;;  %4268 = vmatmul.bf16.vlgmr.msrb.gmra.mxu0 %v7994_v9  ;;  %v6457_v9 = vor.u32 %v7384_v46, %v6454_v37  ;;  %v6793_v52 = vor.u32 %v7468_v31, %v6790_v63  ;;  %v7444_v46 = vld [vmem:[#allocation7 + $0x30c] sm:$0xf]  ;;  %v7494_v43 = vld [vmem:[%s8167_s9 + $0x98] sm:$0xff] }
 0x2bf   :  { %4247 = vmatpush.bf16.msra.mxu3 %v6805_v48  ;;  %4277 = vmatpush.bf16.msrb.mxu1 %v6489_v54  ;;  %v7464_v48 = vld [vmem:[#allocation7 + $0x3ac] sm:$0xf]  ;;  %v6774_v54 = vld [vmem:[#allocation7 + $0x3b8] sm:$0xf0] }
 0x2c0   :  { %4286 = vmatpush.bf16.msrb.mxu2 %v6681_v11  ;;  %v6777_v11 = vor.u32 %v7464_v48, %v6774_v54  ;;  %v7452_v47 = vld [vmem:[#allocation7 + $0x34c] sm:$0xf] }
 0x2c1   :  { %4242 = vmatmul.bf16.vlgmr.msra.gmra.mxu2 %v8005_v10  ;;  %v7492_v48 = vld [vmem:[%s8167_s9 + $0x88] sm:$0xff] }
 0x2c3   :  { %4248 = vmatpush.bf16.msra.mxu3 %v6789_v61  ;;  %4278 = vmatpush.bf16.msrb.mxu1 %v6473_v62  ;;  %v6726_v61 = vld [vmem:[#allocation7 + $0x358] sm:$0xf0] }
 0x2c4   :  { %4287 = vmatpush.bf16.msrb.mxu2 %v6665_v1  ;;  %v6729_v62 = vor.u32 %v7452_v47, %v6726_v61  ;;  %v7448_v1 = vld [vmem:[#allocation7 + $0x32c] sm:$0xf] }
 0x2c5   :  { %v6713_v2 = vor.u32 %v7448_v1, %v6710_v22  ;;  %v7504_v1 = vld [vmem:[%s8167_s9 + $0xe8] sm:$0xff] }
 0x2c6   :  { %v7508_v22 = vld [vmem:[%s8169_s11 + $0x8] sm:$0xff] }
 0x2c7   :  { %4249 = vmatpush.bf16.msra.mxu3 %v6773_v45  ;;  %4279 = vmatpush.bf16.msrb.mxu1 %v6457_v9  ;;  %v7482_v45 = vld [vmem:[%s8167_s9 + $0x38] sm:$0xff]  ;;  %v7481_v9 = vld [vmem:[%s8167_s9 + $0x30] sm:$0xff] }
 0x2c8   :  { %4288 = vmatpush.bf16.msrb.mxu2 %v6649_v6  ;;  %4588 = vmatpush.bf16.msra.mxu0 %v7482_v45 }
 0x2cb   :  { %4250 = vmatpush.bf16.msra.mxu3 %v6757_v20  ;;  %4280 = vmatpush.bf16.msrb.mxu1 %v6441_v21  ;;  %v7477_v20 = vld [vmem:[%s8167_s9 + $0x10] sm:$0xff] }
 0x2cc   :  { %4289 = vmatpush.bf16.msrb.mxu2 %v6633_v17  ;;  %4589 = vmatpush.bf16.msra.mxu0 %v7481_v9  ;;  %v7489_v21 = vld [vmem:[%s8167_s9 + $0x70] sm:$0xff] }
 0x2ce   :  { %4203 = vmatmul.bf16.vlgmr.msrb.gmra.mxu3 %v8014_v50  ;;  %4281 = vmatmul.bf16.vlgmr.msrb.gmra.mxu1 %v7999_v59  ;;  %v6569_v59 = vor.u32 %v7412_v42, %v6566_v7 }
 0x2cf   :  { %4251 = vmatpush.bf16.msra.mxu3 %v6741_v4  ;;  %4601 = vmatpush.bf16.msra.mxu1 %v7490_v49  ;;  %v7475_v4 = vld [vmem:[%s8167_s9] sm:$0xff] }
 0x2d0   :  { %4290 = vmatpush.bf16.msrb.mxu2 %v6617_v29  ;;  %4590 = vmatpush.bf16.msra.mxu0 %v7480_v13  ;;  %v7487_v29 = vld [vmem:[%s8167_s9 + $0x60] sm:$0xff] }
 0x2d3   :  { %4252 = vmatpush.bf16.msra.mxu3 %v6725_v53  ;;  %4602 = vmatpush.bf16.msra.mxu1 %v7489_v21  ;;  %v7500_v21 = vld [vmem:[%s8167_s9 + $0xc8] sm:$0xff] }
 0x2d4   :  { %4291 = vmatpush.bf16.msrb.mxu2 %v6601_v32  ;;  %v7485_v32 = vld [vmem:[%s8167_s9 + $0x50] sm:$0xff] }
 0x2d7   :  { %4253 = vmatpush.bf16.msra.mxu3 %v6709_v14  ;;  %4603 = vmatpush.bf16.msra.mxu1 %v7488_v24 }
 0x2d8   :  { %4292 = vmatpush.bf16.msrb.mxu2 %v6585_v40  ;;  %v8089_v40 = vld [vmem:[%s8166_s8] sm:$0xf]  ;;  %s4677_s8 = sshll.u32 %s7624_s3, 4  ;;  %s4678_s8 = int_to_ptr.vmem [resolvable:$true] %s4677_s8 }
 0x2d9   :  { %v3456_v7 = vperm.slane %v8089_v40, 0  ;;  %v3457_v47 = vperm.slane %v8089_v40, 1  ;;  %v3458_v49 = vperm.slane %v8089_v40, 2 }
 0x2db   :  { %4254 = vmatpush.bf16.msra.mxu3 %v6693_v38  ;;  %4604 = vmatpush.bf16.msra.mxu1 %v7487_v29  ;;  %v7493_v38 = vld [vmem:[%s8167_s9 + $0x90] sm:$0xff] }
 0x2dc   :  { %4293 = vmatpush.bf16.msrb.mxu2 %v6569_v59 }
 0x2de   :  { %4255 = vmatmul.bf16.vlgmr.msra.gmra.mxu3 %v8014_v50 }
 0x2df   :  { %4299 = vmatpush.bf16.msrb.mxu3 %v6809_v0  ;;  %4294 = vmatmul.bf16.vlgmr.msrb.gmra.mxu2 %v8005_v10  ;;  %v6694_v10 = vld [vmem:[#allocation7 + $0x318] sm:$0xf0] }
 0x2e0   :  { %v6697_v37 = vor.u32 %v7444_v46, %v6694_v10  ;;  %4605 = vmatpush.bf16.msra.mxu1 %v7486_v16  ;;  %4614 = vmatpush.bf16.msra.mxu2 %v7498_v51 }
 0x2e3   :  { %4300 = vmatpush.bf16.msrb.mxu3 %v6793_v52 }
 0x2e4   :  { %4606 = vmatpush.bf16.msra.mxu1 %v7485_v32  ;;  %4615 = vmatpush.bf16.msra.mxu2 %v7497_v18  ;;  %v3459_v32 = vperm.slane %v8089_v40, 3 }
 0x2e7   :  { %4301 = vmatpush.bf16.msrb.mxu3 %v6777_v11 }
 0x2e8   :  { %4607 = vmatpush.bf16.msra.mxu1 %v7484_v33  ;;  %4616 = vmatpush.bf16.msra.mxu2 %v7496_v35 }
 0x2eb   :  { %4302 = vmatpush.bf16.msrb.mxu3 %v6761_v57  ;;  %v7491_v57 = vld [vmem:[%s8167_s9 + $0x80] sm:$0xff] }
 0x2ec   :  { %4608 = vmatpush.bf16.msra.mxu1 %v7483_v44  ;;  %4617 = vmatpush.bf16.msra.mxu2 %v7495_v41 }
 0x2ef   :  { %4303 = vmatpush.bf16.msrb.mxu3 %v6745_v60 }
 0x2f0   :  { %4618 = vmatpush.bf16.msra.mxu2 %v7494_v43 }
 0x2f3   :  { %4304 = vmatpush.bf16.msrb.mxu3 %v6729_v62  ;;  %v7505_v62 = vld [vmem:[%s8167_s9 + $0xf0] sm:$0xff] }
 0x2f4   :  { %4619 = vmatpush.bf16.msra.mxu2 %v7493_v38 }
 0x2f7   :  { %4305 = vmatpush.bf16.msrb.mxu3 %v6713_v2 }
 0x2f8   :  { %4620 = vmatpush.bf16.msra.mxu2 %v7492_v48 }
 0x2fb   :  { %4306 = vmatpush.bf16.msrb.mxu3 %v6697_v37  ;;  %v4113_v3 = vpop.f32.mrf.mxu0 }
 0x2fc   :  { %v4114_v59 = vadd.f32 %v4113_v3, %v3456_v7  ;;  %4621 = vmatpush.bf16.msra.mxu2 %v7491_v57  ;;  %v7503_v3 = vld [vmem:[%s8167_s9 + $0xe0] sm:$0xff] }
 0x2fe   :  { %4307 = vmatmul.bf16.vlgmr.msrb.gmra.mxu3 %v8014_v50  ;;  %v7479_v50 = vld [vmem:[%s8167_s9 + $0x20] sm:$0xff] }
 0x2ff   :  { %4591 = vmatpush.bf16.msra.mxu0 %v7479_v50  ;;  %4627 = vmatpush.bf16.msra.mxu3 %v7506_v58 }
 0x303   :  { %v4115_v8 = vpop.f32.mrf.mxu0  ;;  %4592 = vmatpush.bf16.msra.mxu0 %v7478_v39  ;;  %4628 = vmatpush.bf16.msra.mxu3 %v7505_v62 }
 0x307   :  { %4593 = vmatpush.bf16.msra.mxu0 %v7477_v20  ;;  %4629 = vmatpush.bf16.msra.mxu3 %v7504_v1 }
 0x30b   :  { %v4126_v6 = vpop.f32.mrf.mxu1  ;;  %v8030_v12 = vpop.f32.mrf.mxu0  ;;  %4594 = vmatpush.bf16.msra.mxu0 %v7476_v27  ;;  %4630 = vmatpush.bf16.msra.mxu3 %v7503_v3  ;;  %v7507_v27 = vld [vmem:[%s8169_s11] sm:$0xff] }
 0x30c   :  { %v4127_v31 = vadd.f32 %v4126_v6, %v4114_v59  ;;  %v4166_v2 = vadd.f32 %v8030_v12, %v3457_v47  ;;  %v7502_v6 = vld [vmem:[%s8167_s9 + $0xd8] sm:$0xff] }
 0x30f   :  { %4595 = vmatpush.bf16.msra.mxu0 %v7475_v4  ;;  %4631 = vmatpush.bf16.msra.mxu3 %v7502_v6  ;;  %v7499_v4 = vld [vmem:[%s8167_s9 + $0xc0] sm:$0xff] }
 0x313   :  { %v4128_v15 = vpop.f32.mrf.mxu1  ;;  %v4167_v5 = vpop.f32.mrf.mxu0  ;;  %4662 = vmatpush.bf16.msrb.mxu0 %v7508_v22 }
 0x314   :  { %v7501_v5 = vld [vmem:[%s8167_s9 + $0xd0] sm:$0xff] }
 0x315   :  { %4632 = vmatpush.bf16.msra.mxu3 %v7501_v5 }
 0x317   :  { %4663 = vmatpush.bf16.msrb.mxu0 %v7507_v27 }
 0x319   :  { %4633 = vmatpush.bf16.msra.mxu3 %v7500_v21 }
 0x31b   :  { %v8050_v17 = vpop.f32.mrf.mxu1 }
 0x31c   :  { %v4179_v37 = vadd.f32 %v8050_v17, %v4166_v2 }
 0x31d   :  { %v8052_v23 = vpop.f32.mrf.mxu0  ;;  %4634 = vmatpush.bf16.msra.mxu3 %v7499_v4 }
 0x31e   :  { %v4218_v20 = vadd.f32 %v8052_v23, %v3458_v49 }
 0x321   :  { %v4139_v28 = vpop.f32.mrf.mxu2 }
 0x322   :  { %v4140_v63 = vadd.f32 %v4139_v28, %v4127_v31 }
 0x323   :  { %v4180_v30 = vpop.f32.mrf.mxu1 }
 0x325   :  { %v4219_v55 = vpop.f32.mrf.mxu0 }
 0x329   :  { %v4141_v53 = vpop.f32.mrf.mxu2 }
 0x32b   :  { %v8078_v34 = vpop.f32.mrf.mxu1 }
 0x32c   :  { %v4231_v17 = vadd.f32 %v8078_v34, %v4218_v20 }
 0x331   :  { %v4191_v14 = vpop.f32.mrf.mxu2 }
 0x332   :  { %v4192_v8 = vadd.f32 %v4191_v14, %v4179_v37 }
 0x333   :  { %v4232_v42 = vpop.f32.mrf.mxu1 }
 0x339   :  { %v4193_v0 = vpop.f32.mrf.mxu2 }
 0x33b   :  { %v8101_v25 = vpop.f32.mrf.mxu0 }
 0x33c   :  { %v4270_v18 = vadd.f32 %v8101_v25, %v3459_v32  ;;  %v7515_v25 = vld [vmem:[%s8168_s10] ss:$0 sm:$0xff] }
 0x341   :  { %v4152_v52 = vpop.f32.mrf.mxu3 }
 0x342   :  { %v4153_v54 = vadd.f32 %v4152_v52, %v4140_v63 }
 0x343   :  { %v4271_v11 = vpop.f32.mrf.mxu0 }
 0x344   :  { %vm4312_vm2 = vcmp.gt.f32.partialorder %v4153_v54, 0.0  ;;  %v4316_v36 = vmul.f32 0.01, %v4153_v54  ;;  %v4243_v56 = vpop.f32.mrf.mxu2 }
 0x345   :  { %v4244_v24 = vadd.f32 %v4243_v56, %v4231_v17 }
 0x346   :  { %v4320_v19 = vsel %vm4312_vm2, %v4153_v54, %v4316_v36 }
 0x347   :  { %v4324_v60 = vpack.c.bf16 %v4320_v19, %v4320_v19 }
 0x349   :  { %v4154_v61 = vpop.f32.mrf.mxu3  ;;  %4596 = vmatmul.bf16.vlgmr.msra.gmra.mxu0 %v4324_v60 }
 0x34b   :  { %v4282_v46 = vpop.f32.mrf.mxu1 }
 0x34c   :  { %v4245_v10 = vpop.f32.mrf.mxu2  ;;  %v4283_v34 = vadd.f32 %v4282_v46, %v4270_v18 }
 0x351   :  { %v4204_v45 = vpop.f32.mrf.mxu3 }
 0x352   :  { %v4205_v9 = vadd.f32 %v4204_v45, %v4192_v8 }
 0x353   :  { %v4284_v13 = vpop.f32.mrf.mxu1 }
 0x354   :  { %vm4313_vm3 = vcmp.gt.f32.partialorder %v4205_v9, 0.0  ;;  %v4317_v12 = vmul.f32 0.01, %v4205_v9 }
 0x356   :  { %v4321_v50 = vsel %vm4313_vm3, %v4205_v9, %v4317_v12 }
 0x357   :  { %v4325_v15 = vpack.c.bf16 %v4321_v50, %v4321_v50 }
 0x359   :  { %v4206_v39 = vpop.f32.mrf.mxu3  ;;  %4609 = vmatmul.bf16.vlgmr.msra.gmra.mxu1 %v4325_v15  ;;  %6946 = vmatmul.msk.bf16.vlgmr.msrb.gmra.mxu0 %vm206_vm0, %v7753_v26  ;;  %vm4670_vm0 = vcmask 130048  }
 0x361   :  { %v4256_v28 = vpop.f32.mrf.mxu3 }
 0x362   :  { %v4257_v29 = vadd.f32 %v4256_v28, %v4244_v24  ;;  %v4295_v23 = vpop.f32.mrf.mxu2 }
 0x363   :  { %v4296_v33 = vadd.f32 %v4295_v23, %v4283_v34 }
 0x364   :  { %vm4314_vm4 = vcmp.gt.f32.partialorder %v4257_v29, 0.0  ;;  %v4318_v30 = vmul.f32 0.01, %v4257_v29 }
 0x366   :  { %v4322_v55 = vsel %vm4314_vm4, %v4257_v29, %v4318_v30 }
 0x367   :  { %v4326_v16 = vpack.c.bf16 %v4322_v55, %v4322_v55 }
 0x369   :  { %v4258_v51 = vpop.f32.mrf.mxu3  ;;  %4622 = vmatmul.bf16.vlgmr.msra.gmra.mxu2 %v4326_v16 }
 0x36a   :  { %v4297_v53 = vpop.f32.mrf.mxu2 }
 0x381   :  { %v4308_v35 = vpop.f32.mrf.mxu3 }
 0x382   :  { %v4309_v14 = vadd.f32 %v4308_v35, %v4296_v33 }
 0x384   :  { %vm4315_vm5 = vcmp.gt.f32.partialorder %v4309_v14, 0.0  ;;  %v4319_v44 = vmul.f32 0.01, %v4309_v14 }
 0x386   :  { %v4323_v41 = vsel %vm4315_vm5, %v4309_v14, %v4319_v44 }
 0x387   :  { %v4327_v42 = vpack.c.bf16 %v4323_v41, %v4323_v41 }
 0x389   :  { %v4310_v7 = vpop.f32.mrf.mxu3  ;;  %4635 = vmatmul.bf16.vlgmr.msra.gmra.mxu3 %v4327_v42 }
 0x3c6   :  { %v4597_v26 = vpop.f32.mrf.mxu0 }
 0x3c7   :  { %v4598_v52 = vadd.f32 %v7515_v25, %v4597_v26 }
 0x3ce   :  { %v4599_v43 = vpop.f32.mrf.mxu0 }
 0x3d6   :  { %v4610_v38 = vpop.f32.mrf.mxu1  ;;  %v4665_v0 = vpop.f32.mrf.mxu0 }
 0x3d7   :  { %v4611_v48 = vadd.f32 %v4610_v38, %v4598_v52 }
 0x3de   :  { %v4612_v59 = vpop.f32.mrf.mxu1  ;;  %v4667_v31 = vpop.f32.mrf.mxu0 }
 0x3ec   :  { %v4623_v63 = vpop.f32.mrf.mxu2 }
 0x3ed   :  { %v4624_v54 = vadd.f32 %v4623_v63, %v4611_v48 }
 0x3f4   :  { %v4625_v40 = vpop.f32.mrf.mxu2 }
 0x40c   :  { %v4636_v11 = vpop.f32.mrf.mxu3 }
 0x40d   :  { %v4637_v36 = vadd.f32 %v4636_v11, %v4624_v54 }
 0x40f   :  { %v4669_v56 = vadd.f32 %v4665_v0, %v4637_v36 }
 0x411   :  { %4671 = vst.msk [vmem:[#allocation8] sm:$0xff] %vm4670_vm0, %v4669_v56 }
 0x412   :  { %4682 = dma.vmem_to_hbm [thread:$0]  %s4678_s8, 128, %s4680_s2, [#allocation4]  }
 0x414   :  { %v4638_v57 = vpop.f32.mrf.mxu3 }
 0x415   :  { %7617 = dma.done.wait [#allocation4], 128  }
 0x416   :  { %7618 = vsyncadd [#allocation4], 4294967168 }
 0x417   :  { %4687 = vsyncpa [#allocation3], 1 }
 0x418   :  { %4688 = vsyncpa [#allocation6], 1 }
 0x419   :  { %4689 = vsyncpa [#allocation4], 1 }

</bundles_post_ra>
